<compile_context>
chip_gen: v7x
topology: tpu7x:2x2x1
jax: 0.10.0
libtpu: 0.0.40
codegen_flags: <defaults>
</compile_context>

<pallas_src>
import functools

import jax
import jax.numpy as jnp
import numpy as np
from jax import lax
from jax.experimental import pallas as pl
from jax.experimental.pallas import tpu as pltpu


def _round_up(x, m):
    return ((x + m - 1) // m) * m


def _vmem_tile_bytes(shape, dtype):
    """Rough VMEM footprint of one buffer with (sublane, lane) tile padding."""
    itemsize = jnp.dtype(dtype).itemsize
    sub = 8 * 4 // itemsize          # 8 rows for f32 tiles, 16 for bf16
    dims = list(shape)
    if len(dims) == 1:
        dims = [1] + dims
    lead = 1
    for d in dims[:-2]:
        lead *= int(d)
    return lead * _round_up(dims[-2], sub) * _round_up(dims[-1], 128) * itemsize


def _lstm_chunk_kernel(x_ref, wih_ref, whh_ref, b_ref, h_out_ref,
                       pre_sc, h_sc, c_sc, *,
                       seq_len, time_padded, n_streams, unroll):
    """One grid step = (batch block, time chunk).

    x_ref    : (Tc, Bb, I)    compute dtype (bf16 or f32)
    wih_ref  : (I, 4*Hp)      compute dtype, gate-padded W_ih^T
    whh_ref  : (Hp, 4*Hp)     compute dtype, gate-padded W_hh^T
    b_ref    : (1, 4*Hp)      f32, gate-padded (b_ih + b_hh)
    h_out_ref: (Bb, Hp)       f32, last hidden state (lane-dense output slab)
    pre_sc   : (Tc, Bb, 4*Hp) compute dtype scratch (hoisted input projection)
    h_sc/c_sc: (Bb, Hp)       f32 state carried across time chunks
    """
    t_chunk = pl.program_id(1)
    nt = pl.num_programs(1)
    Tc, Bb, I = x_ref.shape
    Hp = h_sc.shape[-1]
    sb = Bb // n_streams
    compute_dtype = whh_ref.dtype

    @pl.when(t_chunk == 0)
    def _():
        h_sc[...] = jnp.zeros_like(h_sc)
        c_sc[...] = jnp.zeros_like(c_sc)

    # Input projection hoisted out of the recurrence: one big MXU matmul per
    # chunk (reshape keeps the minor/lane dim -> layout-free). Computed in
    # f32, stored once in the (possibly bf16) pre-gate scratch.
    x2d = x_ref[...].reshape(Tc * Bb, I)
    pre = jnp.dot(x2d, wih_ref[...], preferred_element_type=jnp.float32)
    pre = pre.reshape(Tc, Bb, 4 * Hp) + b_ref[...]
    pre_sc[...] = pre.astype(pre_sc.dtype)

    def make_step(masked):
        def step(s, carry):
            hs, cs = carry
            pre_s = pre_sc[s].astype(jnp.float32)          # (Bb, 4*Hp)
            if masked:
                valid = (t_chunk * Tc + s) < seq_len
            new_h, new_c = [], []
            # n_streams independent sub-recurrences interleave so one
            # stream's EUP/VPU work hides the other's MXU latency.
            for k in range(n_streams):
                h, c = hs[k], cs[k]
                gates = pre_s[k * sb:(k + 1) * sb, :] + jnp.dot(
                    h.astype(compute_dtype), whh_ref[...],
                    preferred_element_type=jnp.float32)
                # Gate slices are lane-aligned (each gate owns an Hp slab).
                i_g = jax.nn.sigmoid(gates[:, 0 * Hp:1 * Hp])
                f_g = jax.nn.sigmoid(gates[:, 1 * Hp:2 * Hp])
                g_g = jnp.tanh(gates[:, 2 * Hp:3 * Hp])
                o_g = jax.nn.sigmoid(gates[:, 3 * Hp:4 * Hp])
                c_new = f_g * c + i_g * g_g
                h_new = o_g * jnp.tanh(c_new)
                if masked:
                    # Padded trailing timesteps: keep state unchanged.
                    h_new = jnp.where(valid, h_new, h)
                    c_new = jnp.where(valid, c_new, c)
                new_h.append(h_new)
                new_c.append(c_new)
            return tuple(new_h), tuple(new_c)
        return step

    h0 = tuple(h_sc[k * sb:(k + 1) * sb, :] for k in range(n_streams))
    c0 = tuple(c_sc[k * sb:(k + 1) * sb, :] for k in range(n_streams))

    def run_loop(carry, masked):
        return lax.fori_loop(0, Tc, make_step(masked), carry, unroll=unroll)

    if time_padded:
        # Only the last time chunk contains padded steps -> only it pays for
        # the per-step state-preserving selects.
        hs, cs = lax.cond(t_chunk == nt - 1,
                          lambda carry: run_loop(carry, True),
                          lambda carry: run_loop(carry, False),
                          (h0, c0))
    else:
        hs, cs = run_loop((h0, c0), False)

    for k in range(n_streams):
        h_sc[k * sb:(k + 1) * sb, :] = hs[k]
        c_sc[k * sb:(k + 1) * sb, :] = cs[k]

    # NOTE: correctness here relies on the output block index being constant
    # over the (innermost, "arbitrary") time axis, so the out block stays
    # resident until this final write. Do not reorder the grid axes or make
    # the out index_map depend on t.
    @pl.when(t_chunk == nt - 1)
    def _():
        h_out_ref[...] = h_sc[...].astype(h_out_ref.dtype)


def lstm_classifier_forward(x, params, *, compute_dtype=jnp.bfloat16,
                            time_chunk=64, batch_block=None):
    """x: (B, inp_size, T) float32, mirroring the PyTorch forward input."""
    w_ih, w_hh, b_ih, b_hh, w_cls, b_cls = (
        params["w_ih"], params["w_hh"], params["b_ih"], params["b_hh"],
        params["w_cls"], params["b_cls"])

    B, inp_size, T = x.shape
    H = w_hh.shape[1]
    assert T >= 1, "empty sequence: output would be undefined"

    f32 = jnp.float32
    itemsize = jnp.dtype(compute_dtype).itemsize
    sub_m = 8 * 4 // itemsize          # native sublane tile: 8 (f32), 16 (bf16)

    # ---- Padding / chunking choices -------------------------------------
    Hp = _round_up(H, 128)             # lane-aligned per-gate width
    Bp = _round_up(max(B, sub_m), sub_m)
    if batch_block is None:
        # Split into 2 batch blocks whenever each block keeps >= 1 native
        # sublane tile -> the "parallel" axis can shard across v7x's 2 TCs.
        if Bp >= 2 * sub_m:
            Bp = _round_up(Bp, 2 * sub_m)
            b_blk = Bp // 2
        else:
            b_blk = Bp
    else:
        b_blk = _round_up(min(batch_block, Bp), sub_m)
        Bp = _round_up(Bp, b_blk)
    nb = Bp // b_blk

    Tc = min(T, time_chunk)            # timesteps per grid invocation
    Tp = pl.cdiv(T, Tc) * Tc
    nt = Tp // Tc
    time_padded = (Tp != T)

    # Interleave two independent recurrences when each stream still spans at
    # least one native sublane tile of rows.
    n_streams = 2 if (b_blk % (2 * sub_m) == 0) else 1

    # Full unroll unless the per-step gate live range would spill the vregs.
    gate_bytes = b_blk * 4 * Hp * 4
    unroll = True if gate_bytes <= (96 << 10) else 8

    pre_dtype = compute_dtype          # bf16 pre-gate scratch halves VMEM use

    # ---- Gate-padded, transposed weights: gate g lives at cols [g*Hp, g*Hp+H)
    wih_p = jnp.zeros((inp_size, 4 * Hp), f32)
    whh_p = jnp.zeros((Hp, 4 * Hp), f32)
    b_p = jnp.zeros((1, 4 * Hp), f32)
    b_sum = (b_ih + b_hh).astype(f32)
    for g in range(4):
        wih_p = wih_p.at[:, g * Hp:g * Hp + H].set(
            w_ih[g * H:(g + 1) * H, :].T.astype(f32))
        whh_p = whh_p.at[:H, g * Hp:g * Hp + H].set(
            w_hh[g * H:(g + 1) * H, :].T.astype(f32))
        b_p = b_p.at[0, g * Hp:g * Hp + H].set(b_sum[g * H:(g + 1) * H])
    wih_p = wih_p.astype(compute_dtype)
    whh_p = whh_p.astype(compute_dtype)

    # ---- x: (B, I, T) -> (nb, Tp, b_blk, I): block index on the leading dim
    # makes every block DMA one contiguous run, even when nb > 1.
    x_tm = jnp.transpose(x, (2, 0, 1)).astype(f32)                 # (T, B, I)
    x_p = jnp.zeros((Tp, Bp, inp_size), f32).at[:T, :B, :].set(x_tm)
    x_p = x_p.reshape(Tp, nb, b_blk, inp_size).transpose(1, 0, 2, 3)
    x_p = x_p.astype(compute_dtype)

    # ---- Explicit VMEM budget (double-buffered x & out, weights counted at
    # 2 buffers to stay valid in the single-buffer fallback path) -----------
    est = (2 * _vmem_tile_bytes((Tc, b_blk, inp_size), compute_dtype)   # x
           + _vmem_tile_bytes((Tc, b_blk, 4 * Hp), pre_dtype)           # pre_sc
           + 2 * (_vmem_tile_bytes((inp_size, 4 * Hp), compute_dtype)
                  + _vmem_tile_bytes((Hp, 4 * Hp), compute_dtype)
                  + _vmem_tile_bytes((1, 4 * Hp), f32))                 # weights
           + 2 * _vmem_tile_bytes((b_blk, Hp), f32)                     # h, c
           + 2 * _vmem_tile_bytes((b_blk, Hp), f32))                    # out
    vmem_limit = int(min(max(est * 3 // 2 + (4 << 20), 16 << 20), 56 << 20))

    kernel = functools.partial(_lstm_chunk_kernel, seq_len=T,
                               time_padded=time_padded,
                               n_streams=n_streams, unroll=unroll)

    def _run_pallas(single_buffer_weights):
        # Constant-index weights/bias gain nothing from double-buffering;
        # Buffered(1) halves their VMEM footprint.
        w_mode = dict(pipeline_mode=pl.Buffered(1)) if single_buffer_weights else {}
        grid_spec = pltpu.PrefetchScalarGridSpec(
            num_scalar_prefetch=0,
            grid=(nb, nt),
            in_specs=[
                pl.BlockSpec((None, Tc, b_blk, inp_size),
                             lambda b, t: (b, t, 0, 0)),                  # x
                pl.BlockSpec((inp_size, 4 * Hp), lambda b, t: (0, 0),
                             **w_mode),                                   # Wih^T
                pl.BlockSpec((Hp, 4 * Hp), lambda b, t: (0, 0),
                             **w_mode),                                   # Whh^T
                pl.BlockSpec((1, 4 * Hp), lambda b, t: (0, 0),
                             **w_mode),                                   # bias
            ],
            out_specs=pl.BlockSpec((b_blk, Hp), lambda b, t: (b, 0)),
            scratch_shapes=[
                pltpu.VMEM((Tc, b_blk, 4 * Hp), pre_dtype),   # pre-gates
                pltpu.VMEM((b_blk, Hp), f32),                 # h
                pltpu.VMEM((b_blk, Hp), f32),                 # c
            ],
        )
        out = pl.pallas_call(
            kernel,
            out_shape=jax.ShapeDtypeStruct((Bp, Hp), f32),
            grid_spec=grid_spec,
            compiler_params=pltpu.CompilerParams(
                dimension_semantics=("parallel", "arbitrary"),
                vmem_limit_bytes=vmem_limit),
        )(x_p, wih_p, whh_p, b_p)
        return jax.block_until_ready(out)

    try:
        h_last_p = _run_pallas(True)
    except Exception:
        # pipeline_mode=Buffered(1) unsupported by this JAX/Mosaic build:
        # fall back to default (double-buffered) weight specs.
        h_last_p = _run_pallas(False)

    # Classifier kept outside the kernel: C << 128 lanes would lower to masked
    # partial stores in-kernel; XLA fuses this tiny matmul cheaply.
    h_last = h_last_p[:B, :H].astype(f32)
    return h_last @ w_cls.T.astype(f32) + b_cls.astype(f32)


def reference_forward(x, params):
    """Pure-JAX reference matching PyTorch nn.LSTM + Linear semantics."""
    w_ih, w_hh, b_ih, b_hh, w_cls, b_cls = (
        params["w_ih"], params["w_hh"], params["b_ih"], params["b_hh"],
        params["w_cls"], params["b_cls"])
    B, _, T = x.shape
    H = w_hh.shape[1]
    xs = jnp.transpose(x, (2, 0, 1))   # (T, B, I)

    def step(carry, x_t):
        h, c = carry
        gates = x_t @ w_ih.T + h @ w_hh.T + b_ih + b_hh
        i = jax.nn.sigmoid(gates[:, 0 * H:1 * H])
        f = jax.nn.sigmoid(gates[:, 1 * H:2 * H])
        g = jnp.tanh(gates[:, 2 * H:3 * H])
        o = jax.nn.sigmoid(gates[:, 3 * H:4 * H])
        c = f * c + i * g
        h = o * jnp.tanh(c)
        return (h, c), None

    h0 = jnp.zeros((B, H), jnp.float32)
    (h_last, _), _ = jax.lax.scan(step, (h0, h0), xs)
    return h_last @ w_cls.T + b_cls


def make_params(key, inp_size, hidden_size, n_classes):
    k = 1.0 / np.sqrt(hidden_size)
    keys = jax.random.split(key, 6)
    u = lambda kk, shape: jax.random.uniform(kk, shape, jnp.float32, -k, k)
    return {
        "w_ih": u(keys[0], (4 * hidden_size, inp_size)),
        "w_hh": u(keys[1], (4 * hidden_size, hidden_size)),
        "b_ih": u(keys[2], (4 * hidden_size,)),
        "b_hh": u(keys[3], (4 * hidden_size,)),
        "w_cls": u(keys[4], (n_classes, hidden_size)),
        "b_cls": u(keys[5], (n_classes,)),
    }


if __name__ == "__main__":
    key = jax.random.PRNGKey(0)

    # ---- Test 1: tiny shapes, f32 matmul path -> tight check --------------
    B, inp_size, T = 2, 16, 8
    hidden_size, n_classes = 32, 8
    k1, k2 = jax.random.split(key)
    x = jax.random.normal(k1, (B, inp_size, T), jnp.float32)
    params = make_params(k2, inp_size, hidden_size, n_classes)
    ref = jax.block_until_ready(reference_forward(x, params))
    out = jax.block_until_ready(
        lstm_classifier_forward(x, params, compute_dtype=jnp.float32))
    assert out.shape == (B, n_classes)
    np.testing.assert_allclose(np.asarray(out), np.asarray(ref),
                               rtol=1e-4, atol=1e-4)

    # ---- Test 2: bf16 default path, nb=2 batch blocks, padded last chunk --
    B2, I2, T2, H2, C2 = 20, 16, 70, 48, 5
    k3, k4 = jax.random.split(k2)
    x2 = jax.random.normal(k3, (B2, I2, T2), jnp.float32)
    p2 = make_params(k4, I2, H2, C2)
    ref2 = jax.block_until_ready(reference_forward(x2, p2))
    out2 = jax.block_until_ready(
        lstm_classifier_forward(x2, p2, compute_dtype=jnp.bfloat16,
                                time_chunk=32))
    np.testing.assert_allclose(np.asarray(out2), np.asarray(ref2),
                               rtol=8e-2, atol=8e-2)

    # ---- Test 3: f32, nb=2 and two interleaved recurrence streams ---------
    B3, I3, T3, H3, C3 = 32, 16, 20, 32, 8
    k5, k6 = jax.random.split(k4)
    x3 = jax.random.normal(k5, (B3, I3, T3), jnp.float32)
    p3 = make_params(k6, I3, H3, C3)
    ref3 = jax.block_until_ready(reference_forward(x3, p3))
    out3 = jax.block_until_ready(
        lstm_classifier_forward(x3, p3, compute_dtype=jnp.float32))
    np.testing.assert_allclose(np.asarray(out3), np.asarray(ref3),
                               rtol=1e-4, atol=1e-4)

    print("KERNEL_OK")
</pallas_src>

<mosaic_0001>
module attributes {stable_mosaic.version = 11 : i64} {
  func.func @_lstm_chunk_kernel(%arg0: i32, %arg1: i32, %arg2: memref<1x8x8x16xf32, #tpu.memory_space<vmem>>, %arg3: memref<16x512xf32, #tpu.memory_space<vmem>>, %arg4: memref<128x512xf32, #tpu.memory_space<vmem>>, %arg5: memref<1x512xf32, #tpu.memory_space<vmem>>, %arg6: memref<8x128xf32, #tpu.memory_space<vmem>>, %arg7: memref<8x8x512xf32, #tpu.memory_space<vmem>>, %arg8: memref<8x128xf32, #tpu.memory_space<vmem>>, %arg9: memref<8x128xf32, #tpu.memory_space<vmem>>) attributes {dimension_semantics = [#tpu.dimension_semantics<parallel>, #tpu.dimension_semantics<arbitrary>], iteration_bounds = array<i64: 1, 1>, scalar_prefetch = 0 : i64, scratch_operands = 3 : i64, tpu.core_type = #tpu.core_type<tc>, window_params = [{transform_indices = @transform_0, window_bounds = array<i64: 1, 8, 8, 16>}, {pipeline_mode = #tpu.pipeline_mode<synchronous>, transform_indices = @transform_1, window_bounds = array<i64: 16, 512>}, {pipeline_mode = #tpu.pipeline_mode<synchronous>, transform_indices = @transform_2, window_bounds = array<i64: 128, 512>}, {pipeline_mode = #tpu.pipeline_mode<synchronous>, transform_indices = @transform_3, window_bounds = array<i64: 1, 512>}, {transform_indices = @transform_4, window_bounds = array<i64: 8, 128>}]} {
    %c0_i32 = arith.constant 0 : i32
    %0 = arith.cmpi eq, %arg1, %c0_i32 : i32
    %1 = arith.extui %0 : i1 to i32
    %c0_i32_0 = arith.constant 0 : i32
    %2 = arith.cmpi ne, %1, %c0_i32_0 : i32
    scf.if %2 {
      %cst_86 = arith.constant 0.000000e+00 : f32
      %269 = vector.broadcast %cst_86 : f32 to vector<8x128xf32>
      %c0_87 = arith.constant 0 : index
      %c0_88 = arith.constant 0 : index
      %270 = vector.load %arg8[%c0_87, %c0_88] : memref<8x128xf32, #tpu.memory_space<vmem>>, vector<8x128xf32>
      tpu.vector_store %arg8[%c0_87, %c0_88], %269 {strides = array<i32>} : memref<8x128xf32, #tpu.memory_space<vmem>>, vector<8x128xf32>,
      %cst_89 = arith.constant 0.000000e+00 : f32
      %271 = vector.broadcast %cst_89 : f32 to vector<8x128xf32>
      %c0_90 = arith.constant 0 : index
      %c0_91 = arith.constant 0 : index
      %272 = vector.load %arg9[%c0_90, %c0_91] : memref<8x128xf32, #tpu.memory_space<vmem>>, vector<8x128xf32>
      tpu.vector_store %arg9[%c0_90, %c0_91], %271 {strides = array<i32>} : memref<8x128xf32, #tpu.memory_space<vmem>>, vector<8x128xf32>,
    } else {
    }
    %c0 = arith.constant 0 : index
    %c0_1 = arith.constant 0 : index
    %c0_2 = arith.constant 0 : index
    %c0_3 = arith.constant 0 : index
    %3 = vector.load %arg2[%c0, %c0_1, %c0_2, %c0_3] : memref<1x8x8x16xf32, #tpu.memory_space<vmem>>, vector<1x8x8x16xf32>
    %4 = vector.shape_cast %3 : vector<1x8x8x16xf32> to vector<8x8x16xf32>
    %5 = vector.shape_cast %4 : vector<8x8x16xf32> to vector<64x16xf32>
    %c0_4 = arith.constant 0 : index
    %c0_5 = arith.constant 0 : index
    %6 = vector.load %arg3[%c0_4, %c0_5] : memref<16x512xf32, #tpu.memory_space<vmem>>, vector<16x512xf32>
    %cst = arith.constant dense<0.000000e+00> : vector<64x512xf32>
    %7 = tpu.matmul %5, %6, %cst {dimension_numbers = #tpu.dot_dimension_numbers<[1], [0], [0], [1], [0, 0, 1, 1], [], []>} : vector<64x16xf32>, vector<16x512xf32>, vector<64x512xf32> -> vector<64x512xf32>
    %8 = vector.shape_cast %7 : vector<64x512xf32> to vector<8x8x512xf32>
    %c0_6 = arith.constant 0 : index
    %c0_7 = arith.constant 0 : index
    %9 = vector.load %arg5[%c0_6, %c0_7] : memref<1x512xf32, #tpu.memory_space<vmem>>, vector<1x512xf32>
    %10 = vector.shape_cast %9 : vector<1x512xf32> to vector<1x1x512xf32>
    %11 = vector.broadcast %10 : vector<1x1x512xf32> to vector<8x8x512xf32>
    %12 = arith.addf %8, %11 : vector<8x8x512xf32>
    %c0_8 = arith.constant 0 : index
    %c0_9 = arith.constant 0 : index
    %c0_10 = arith.constant 0 : index
    %13 = vector.load %arg7[%c0_8, %c0_9, %c0_10] : memref<8x8x512xf32, #tpu.memory_space<vmem>>, vector<8x8x512xf32>
    tpu.vector_store %arg7[%c0_8, %c0_9, %c0_10], %12 {strides = array<i32>} : memref<8x8x512xf32, #tpu.memory_space<vmem>>, vector<8x8x512xf32>,
    %c0_11 = arith.constant 0 : index
    %c0_12 = arith.constant 0 : index
    %14 = vector.load %arg8[%c0_11, %c0_12] : memref<8x128xf32, #tpu.memory_space<vmem>>, vector<8x128xf32>
    %c0_13 = arith.constant 0 : index
    %c0_14 = arith.constant 0 : index
    %15 = vector.load %arg9[%c0_13, %c0_14] : memref<8x128xf32, #tpu.memory_space<vmem>>, vector<8x128xf32>
    %c0_i32_15 = arith.constant 0 : i32
    %16 = arith.index_cast %c0_i32_15 : i32 to index
    %c0_16 = arith.constant 0 : index
    %c0_17 = arith.constant 0 : index
    %17 = vector.load %arg7[%16, %c0_16, %c0_17] : memref<8x8x512xf32, #tpu.memory_space<vmem>>, vector<1x8x512xf32>
    %18 = vector.shape_cast %17 : vector<1x8x512xf32> to vector<8x512xf32>
    %c0_18 = arith.constant 0 : index
    %c0_19 = arith.constant 0 : index
    %19 = vector.load %arg4[%c0_18, %c0_19] : memref<128x512xf32, #tpu.memory_space<vmem>>, vector<128x512xf32>
    %cst_20 = arith.constant dense<0.000000e+00> : vector<8x512xf32>
    %20 = tpu.matmul %14, %19, %cst_20 {dimension_numbers = #tpu.dot_dimension_numbers<[1], [0], [0], [1], [0, 0, 1, 1], [], []>} : vector<8x128xf32>, vector<128x512xf32>, vector<8x512xf32> -> vector<8x512xf32>
    %21 = arith.addf %18, %20 : vector<8x512xf32>
    %22 = vector.extract_strided_slice %21 {offsets = [0, 0], sizes = [8, 128], strides = [1, 1]} : vector<8x512xf32> to vector<8x128xf32>
    %23 = arith.negf %22 : vector<8x128xf32>
    %24 = math.exp %23 : vector<8x128xf32>
    %cst_21 = arith.constant 1.000000e+00 : f32
    %25 = vector.broadcast %cst_21 : f32 to vector<8x128xf32>
    %26 = arith.addf %25, %24 : vector<8x128xf32>
    %27 = arith.divf %25, %26 : vector<8x128xf32>
    %28 = vector.extract_strided_slice %21 {offsets = [0, 128], sizes = [8, 128], strides = [1, 1]} : vector<8x512xf32> to vector<8x128xf32>
    %29 = arith.negf %28 : vector<8x128xf32>
    %30 = math.exp %29 : vector<8x128xf32>
    %cst_22 = arith.constant 1.000000e+00 : f32
    %31 = vector.broadcast %cst_22 : f32 to vector<8x128xf32>
    %32 = arith.addf %31, %30 : vector<8x128xf32>
    %33 = arith.divf %31, %32 : vector<8x128xf32>
    %34 = vector.extract_strided_slice %21 {offsets = [0, 256], sizes = [8, 128], strides = [1, 1]} : vector<8x512xf32> to vector<8x128xf32>
    %35 = math.tanh %34 : vector<8x128xf32>
    %36 = vector.extract_strided_slice %21 {offsets = [0, 384], sizes = [8, 128], strides = [1, 1]} : vector<8x512xf32> to vector<8x128xf32>
    %37 = arith.negf %36 : vector<8x128xf32>
    %38 = math.exp %37 : vector<8x128xf32>
    %cst_23 = arith.constant 1.000000e+00 : f32
    %39 = vector.broadcast %cst_23 : f32 to vector<8x128xf32>
    %40 = arith.addf %39, %38 : vector<8x128xf32>
    %41 = arith.divf %39, %40 : vector<8x128xf32>
    %42 = arith.mulf %33, %15 : vector<8x128xf32>
    %43 = arith.mulf %27, %35 : vector<8x128xf32>
    %44 = arith.addf %42, %43 : vector<8x128xf32>
    %45 = math.tanh %44 : vector<8x128xf32>
    %46 = arith.mulf %41, %45 : vector<8x128xf32>
    %c1_i32 = arith.constant 1 : i32
    %47 = arith.index_cast %c1_i32 : i32 to index
    %c0_24 = arith.constant 0 : index
    %c0_25 = arith.constant 0 : index
    %48 = vector.load %arg7[%47, %c0_24, %c0_25] : memref<8x8x512xf32, #tpu.memory_space<vmem>>, vector<1x8x512xf32>
    %49 = vector.shape_cast %48 : vector<1x8x512xf32> to vector<8x512xf32>
    %c0_26 = arith.constant 0 : index
    %c0_27 = arith.constant 0 : index
    %50 = vector.load %arg4[%c0_26, %c0_27] : memref<128x512xf32, #tpu.memory_space<vmem>>, vector<128x512xf32>
    %cst_28 = arith.constant dense<0.000000e+00> : vector<8x512xf32>
    %51 = tpu.matmul %46, %50, %cst_28 {dimension_numbers = #tpu.dot_dimension_numbers<[1], [0], [0], [1], [0, 0, 1, 1], [], []>} : vector<8x128xf32>, vector<128x512xf32>, vector<8x512xf32> -> vector<8x512xf32>
    %52 = arith.addf %49, %51 : vector<8x512xf32>
    %53 = vector.extract_strided_slice %52 {offsets = [0, 0], sizes = [8, 128], strides = [1, 1]} : vector<8x512xf32> to vector<8x128xf32>
    %54 = arith.negf %53 : vector<8x128xf32>
    %55 = math.exp %54 : vector<8x128xf32>
    %cst_29 = arith.constant 1.000000e+00 : f32
    %56 = vector.broadcast %cst_29 : f32 to vector<8x128xf32>
    %57 = arith.addf %56, %55 : vector<8x128xf32>
    %58 = arith.divf %56, %57 : vector<8x128xf32>
    %59 = vector.extract_strided_slice %52 {offsets = [0, 128], sizes = [8, 128], strides = [1, 1]} : vector<8x512xf32> to vector<8x128xf32>
    %60 = arith.negf %59 : vector<8x128xf32>
    %61 = math.exp %60 : vector<8x128xf32>
    %cst_30 = arith.constant 1.000000e+00 : f32
    %62 = vector.broadcast %cst_30 : f32 to vector<8x128xf32>
    %63 = arith.addf %62, %61 : vector<8x128xf32>
    %64 = arith.divf %62, %63 : vector<8x128xf32>
    %65 = vector.extract_strided_slice %52 {offsets = [0, 256], sizes = [8, 128], strides = [1, 1]} : vector<8x512xf32> to vector<8x128xf32>
    %66 = math.tanh %65 : vector<8x128xf32>
    %67 = vector.extract_strided_slice %52 {offsets = [0, 384], sizes = [8, 128], strides = [1, 1]} : vector<8x512xf32> to vector<8x128xf32>
    %68 = arith.negf %67 : vector<8x128xf32>
    %69 = math.exp %68 : vector<8x128xf32>
    %cst_31 = arith.constant 1.000000e+00 : f32
    %70 = vector.broadcast %cst_31 : f32 to vector<8x128xf32>
    %71 = arith.addf %70, %69 : vector<8x128xf32>
    %72 = arith.divf %70, %71 : vector<8x128xf32>
    %73 = arith.mulf %64, %44 : vector<8x128xf32>
    %74 = arith.mulf %58, %66 : vector<8x128xf32>
    %75 = arith.addf %73, %74 : vector<8x128xf32>
    %76 = math.tanh %75 : vector<8x128xf32>
    %77 = arith.mulf %72, %76 : vector<8x128xf32>
    %c2_i32 = arith.constant 2 : i32
    %78 = arith.index_cast %c2_i32 : i32 to index
    %c0_32 = arith.constant 0 : index
    %c0_33 = arith.constant 0 : index
    %79 = vector.load %arg7[%78, %c0_32, %c0_33] : memref<8x8x512xf32, #tpu.memory_space<vmem>>, vector<1x8x512xf32>
    %80 = vector.shape_cast %79 : vector<1x8x512xf32> to vector<8x512xf32>
    %c0_34 = arith.constant 0 : index
    %c0_35 = arith.constant 0 : index
    %81 = vector.load %arg4[%c0_34, %c0_35] : memref<128x512xf32, #tpu.memory_space<vmem>>, vector<128x512xf32>
    %cst_36 = arith.constant dense<0.000000e+00> : vector<8x512xf32>
    %82 = tpu.matmul %77, %81, %cst_36 {dimension_numbers = #tpu.dot_dimension_numbers<[1], [0], [0], [1], [0, 0, 1, 1], [], []>} : vector<8x128xf32>, vector<128x512xf32>, vector<8x512xf32> -> vector<8x512xf32>
    %83 = arith.addf %80, %82 : vector<8x512xf32>
    %84 = vector.extract_strided_slice %83 {offsets = [0, 0], sizes = [8, 128], strides = [1, 1]} : vector<8x512xf32> to vector<8x128xf32>
    %85 = arith.negf %84 : vector<8x128xf32>
    %86 = math.exp %85 : vector<8x128xf32>
    %cst_37 = arith.constant 1.000000e+00 : f32
    %87 = vector.broadcast %cst_37 : f32 to vector<8x128xf32>
    %88 = arith.addf %87, %86 : vector<8x128xf32>
    %89 = arith.divf %87, %88 : vector<8x128xf32>
    %90 = vector.extract_strided_slice %83 {offsets = [0, 128], sizes = [8, 128], strides = [1, 1]} : vector<8x512xf32> to vector<8x128xf32>
    %91 = arith.negf %90 : vector<8x128xf32>
    %92 = math.exp %91 : vector<8x128xf32>
    %cst_38 = arith.constant 1.000000e+00 : f32
    %93 = vector.broadcast %cst_38 : f32 to vector<8x128xf32>
    %94 = arith.addf %93, %92 : vector<8x128xf32>
    %95 = arith.divf %93, %94 : vector<8x128xf32>
    %96 = vector.extract_strided_slice %83 {offsets = [0, 256], sizes = [8, 128], strides = [1, 1]} : vector<8x512xf32> to vector<8x128xf32>
    %97 = math.tanh %96 : vector<8x128xf32>
    %98 = vector.extract_strided_slice %83 {offsets = [0, 384], sizes = [8, 128], strides = [1, 1]} : vector<8x512xf32> to vector<8x128xf32>
    %99 = arith.negf %98 : vector<8x128xf32>
    %100 = math.exp %99 : vector<8x128xf32>
    %cst_39 = arith.constant 1.000000e+00 : f32
    %101 = vector.broadcast %cst_39 : f32 to vector<8x128xf32>
    %102 = arith.addf %101, %100 : vector<8x128xf32>
    %103 = arith.divf %101, %102 : vector<8x128xf32>
    %104 = arith.mulf %95, %75 : vector<8x128xf32>
    %105 = arith.mulf %89, %97 : vector<8x128xf32>
    %106 = arith.addf %104, %105 : vector<8x128xf32>
    %107 = math.tanh %106 : vector<8x128xf32>
    %108 = arith.mulf %103, %107 : vector<8x128xf32>
    %c3_i32 = arith.constant 3 : i32
    %109 = arith.index_cast %c3_i32 : i32 to index
    %c0_40 = arith.constant 0 : index
    %c0_41 = arith.constant 0 : index
    %110 = vector.load %arg7[%109, %c0_40, %c0_41] : memref<8x8x512xf32, #tpu.memory_space<vmem>>, vector<1x8x512xf32>
    %111 = vector.shape_cast %110 : vector<1x8x512xf32> to vector<8x512xf32>
    %c0_42 = arith.constant 0 : index
    %c0_43 = arith.constant 0 : index
    %112 = vector.load %arg4[%c0_42, %c0_43] : memref<128x512xf32, #tpu.memory_space<vmem>>, vector<128x512xf32>
    %cst_44 = arith.constant dense<0.000000e+00> : vector<8x512xf32>
    %113 = tpu.matmul %108, %112, %cst_44 {dimension_numbers = #tpu.dot_dimension_numbers<[1], [0], [0], [1], [0, 0, 1, 1], [], []>} : vector<8x128xf32>, vector<128x512xf32>, vector<8x512xf32> -> vector<8x512xf32>
    %114 = arith.addf %111, %113 : vector<8x512xf32>
    %115 = vector.extract_strided_slice %114 {offsets = [0, 0], sizes = [8, 128], strides = [1, 1]} : vector<8x512xf32> to vector<8x128xf32>
    %116 = arith.negf %115 : vector<8x128xf32>
    %117 = math.exp %116 : vector<8x128xf32>
    %cst_45 = arith.constant 1.000000e+00 : f32
    %118 = vector.broadcast %cst_45 : f32 to vector<8x128xf32>
    %119 = arith.addf %118, %117 : vector<8x128xf32>
    %120 = arith.divf %118, %119 : vector<8x128xf32>
    %121 = vector.extract_strided_slice %114 {offsets = [0, 128], sizes = [8, 128], strides = [1, 1]} : vector<8x512xf32> to vector<8x128xf32>
    %122 = arith.negf %121 : vector<8x128xf32>
    %123 = math.exp %122 : vector<8x128xf32>
    %cst_46 = arith.constant 1.000000e+00 : f32
    %124 = vector.broadcast %cst_46 : f32 to vector<8x128xf32>
    %125 = arith.addf %124, %123 : vector<8x128xf32>
    %126 = arith.divf %124, %125 : vector<8x128xf32>
    %127 = vector.extract_strided_slice %114 {offsets = [0, 256], sizes = [8, 128], strides = [1, 1]} : vector<8x512xf32> to vector<8x128xf32>
    %128 = math.tanh %127 : vector<8x128xf32>
    %129 = vector.extract_strided_slice %114 {offsets = [0, 384], sizes = [8, 128], strides = [1, 1]} : vector<8x512xf32> to vector<8x128xf32>
    %130 = arith.negf %129 : vector<8x128xf32>
    %131 = math.exp %130 : vector<8x128xf32>
    %cst_47 = arith.constant 1.000000e+00 : f32
    %132 = vector.broadcast %cst_47 : f32 to vector<8x128xf32>
    %133 = arith.addf %132, %131 : vector<8x128xf32>
    %134 = arith.divf %132, %133 : vector<8x128xf32>
    %135 = arith.mulf %126, %106 : vector<8x128xf32>
    %136 = arith.mulf %120, %128 : vector<8x128xf32>
    %137 = arith.addf %135, %136 : vector<8x128xf32>
    %138 = math.tanh %137 : vector<8x128xf32>
    %139 = arith.mulf %134, %138 : vector<8x128xf32>
    %c4_i32 = arith.constant 4 : i32
    %140 = arith.index_cast %c4_i32 : i32 to index
    %c0_48 = arith.constant 0 : index
    %c0_49 = arith.constant 0 : index
    %141 = vector.load %arg7[%140, %c0_48, %c0_49] : memref<8x8x512xf32, #tpu.memory_space<vmem>>, vector<1x8x512xf32>
    %142 = vector.shape_cast %141 : vector<1x8x512xf32> to vector<8x512xf32>
    %c0_50 = arith.constant 0 : index
    %c0_51 = arith.constant 0 : index
    %143 = vector.load %arg4[%c0_50, %c0_51] : memref<128x512xf32, #tpu.memory_space<vmem>>, vector<128x512xf32>
    %cst_52 = arith.constant dense<0.000000e+00> : vector<8x512xf32>
    %144 = tpu.matmul %139, %143, %cst_52 {dimension_numbers = #tpu.dot_dimension_numbers<[1], [0], [0], [1], [0, 0, 1, 1], [], []>} : vector<8x128xf32>, vector<128x512xf32>, vector<8x512xf32> -> vector<8x512xf32>
    %145 = arith.addf %142, %144 : vector<8x512xf32>
    %146 = vector.extract_strided_slice %145 {offsets = [0, 0], sizes = [8, 128], strides = [1, 1]} : vector<8x512xf32> to vector<8x128xf32>
    %147 = arith.negf %146 : vector<8x128xf32>
    %148 = math.exp %147 : vector<8x128xf32>
    %cst_53 = arith.constant 1.000000e+00 : f32
    %149 = vector.broadcast %cst_53 : f32 to vector<8x128xf32>
    %150 = arith.addf %149, %148 : vector<8x128xf32>
    %151 = arith.divf %149, %150 : vector<8x128xf32>
    %152 = vector.extract_strided_slice %145 {offsets = [0, 128], sizes = [8, 128], strides = [1, 1]} : vector<8x512xf32> to vector<8x128xf32>
    %153 = arith.negf %152 : vector<8x128xf32>
    %154 = math.exp %153 : vector<8x128xf32>
    %cst_54 = arith.constant 1.000000e+00 : f32
    %155 = vector.broadcast %cst_54 : f32 to vector<8x128xf32>
    %156 = arith.addf %155, %154 : vector<8x128xf32>
    %157 = arith.divf %155, %156 : vector<8x128xf32>
    %158 = vector.extract_strided_slice %145 {offsets = [0, 256], sizes = [8, 128], strides = [1, 1]} : vector<8x512xf32> to vector<8x128xf32>
    %159 = math.tanh %158 : vector<8x128xf32>
    %160 = vector.extract_strided_slice %145 {offsets = [0, 384], sizes = [8, 128], strides = [1, 1]} : vector<8x512xf32> to vector<8x128xf32>
    %161 = arith.negf %160 : vector<8x128xf32>
    %162 = math.exp %161 : vector<8x128xf32>
    %cst_55 = arith.constant 1.000000e+00 : f32
    %163 = vector.broadcast %cst_55 : f32 to vector<8x128xf32>
    %164 = arith.addf %163, %162 : vector<8x128xf32>
    %165 = arith.divf %163, %164 : vector<8x128xf32>
    %166 = arith.mulf %157, %137 : vector<8x128xf32>
    %167 = arith.mulf %151, %159 : vector<8x128xf32>
    %168 = arith.addf %166, %167 : vector<8x128xf32>
    %169 = math.tanh %168 : vector<8x128xf32>
    %170 = arith.mulf %165, %169 : vector<8x128xf32>
    %c5_i32 = arith.constant 5 : i32
    %171 = arith.index_cast %c5_i32 : i32 to index
    %c0_56 = arith.constant 0 : index
    %c0_57 = arith.constant 0 : index
    %172 = vector.load %arg7[%171, %c0_56, %c0_57] : memref<8x8x512xf32, #tpu.memory_space<vmem>>, vector<1x8x512xf32>
    %173 = vector.shape_cast %172 : vector<1x8x512xf32> to vector<8x512xf32>
    %c0_58 = arith.constant 0 : index
    %c0_59 = arith.constant 0 : index
    %174 = vector.load %arg4[%c0_58, %c0_59] : memref<128x512xf32, #tpu.memory_space<vmem>>, vector<128x512xf32>
    %cst_60 = arith.constant dense<0.000000e+00> : vector<8x512xf32>
    %175 = tpu.matmul %170, %174, %cst_60 {dimension_numbers = #tpu.dot_dimension_numbers<[1], [0], [0], [1], [0, 0, 1, 1], [], []>} : vector<8x128xf32>, vector<128x512xf32>, vector<8x512xf32> -> vector<8x512xf32>
    %176 = arith.addf %173, %175 : vector<8x512xf32>
    %177 = vector.extract_strided_slice %176 {offsets = [0, 0], sizes = [8, 128], strides = [1, 1]} : vector<8x512xf32> to vector<8x128xf32>
    %178 = arith.negf %177 : vector<8x128xf32>
    %179 = math.exp %178 : vector<8x128xf32>
    %cst_61 = arith.constant 1.000000e+00 : f32
    %180 = vector.broadcast %cst_61 : f32 to vector<8x128xf32>
    %181 = arith.addf %180, %179 : vector<8x128xf32>
    %182 = arith.divf %180, %181 : vector<8x128xf32>
    %183 = vector.extract_strided_slice %176 {offsets = [0, 128], sizes = [8, 128], strides = [1, 1]} : vector<8x512xf32> to vector<8x128xf32>
    %184 = arith.negf %183 : vector<8x128xf32>
    %185 = math.exp %184 : vector<8x128xf32>
    %cst_62 = arith.constant 1.000000e+00 : f32
    %186 = vector.broadcast %cst_62 : f32 to vector<8x128xf32>
    %187 = arith.addf %186, %185 : vector<8x128xf32>
    %188 = arith.divf %186, %187 : vector<8x128xf32>
    %189 = vector.extract_strided_slice %176 {offsets = [0, 256], sizes = [8, 128], strides = [1, 1]} : vector<8x512xf32> to vector<8x128xf32>
    %190 = math.tanh %189 : vector<8x128xf32>
    %191 = vector.extract_strided_slice %176 {offsets = [0, 384], sizes = [8, 128], strides = [1, 1]} : vector<8x512xf32> to vector<8x128xf32>
    %192 = arith.negf %191 : vector<8x128xf32>
    %193 = math.exp %192 : vector<8x128xf32>
    %cst_63 = arith.constant 1.000000e+00 : f32
    %194 = vector.broadcast %cst_63 : f32 to vector<8x128xf32>
    %195 = arith.addf %194, %193 : vector<8x128xf32>
    %196 = arith.divf %194, %195 : vector<8x128xf32>
    %197 = arith.mulf %188, %168 : vector<8x128xf32>
    %198 = arith.mulf %182, %190 : vector<8x128xf32>
    %199 = arith.addf %197, %198 : vector<8x128xf32>
    %200 = math.tanh %199 : vector<8x128xf32>
    %201 = arith.mulf %196, %200 : vector<8x128xf32>
    %c6_i32 = arith.constant 6 : i32
    %202 = arith.index_cast %c6_i32 : i32 to index
    %c0_64 = arith.constant 0 : index
    %c0_65 = arith.constant 0 : index
    %203 = vector.load %arg7[%202, %c0_64, %c0_65] : memref<8x8x512xf32, #tpu.memory_space<vmem>>, vector<1x8x512xf32>
    %204 = vector.shape_cast %203 : vector<1x8x512xf32> to vector<8x512xf32>
    %c0_66 = arith.constant 0 : index
    %c0_67 = arith.constant 0 : index
    %205 = vector.load %arg4[%c0_66, %c0_67] : memref<128x512xf32, #tpu.memory_space<vmem>>, vector<128x512xf32>
    %cst_68 = arith.constant dense<0.000000e+00> : vector<8x512xf32>
    %206 = tpu.matmul %201, %205, %cst_68 {dimension_numbers = #tpu.dot_dimension_numbers<[1], [0], [0], [1], [0, 0, 1, 1], [], []>} : vector<8x128xf32>, vector<128x512xf32>, vector<8x512xf32> -> vector<8x512xf32>
    %207 = arith.addf %204, %206 : vector<8x512xf32>
    %208 = vector.extract_strided_slice %207 {offsets = [0, 0], sizes = [8, 128], strides = [1, 1]} : vector<8x512xf32> to vector<8x128xf32>
    %209 = arith.negf %208 : vector<8x128xf32>
    %210 = math.exp %209 : vector<8x128xf32>
    %cst_69 = arith.constant 1.000000e+00 : f32
    %211 = vector.broadcast %cst_69 : f32 to vector<8x128xf32>
    %212 = arith.addf %211, %210 : vector<8x128xf32>
    %213 = arith.divf %211, %212 : vector<8x128xf32>
    %214 = vector.extract_strided_slice %207 {offsets = [0, 128], sizes = [8, 128], strides = [1, 1]} : vector<8x512xf32> to vector<8x128xf32>
    %215 = arith.negf %214 : vector<8x128xf32>
    %216 = math.exp %215 : vector<8x128xf32>
    %cst_70 = arith.constant 1.000000e+00 : f32
    %217 = vector.broadcast %cst_70 : f32 to vector<8x128xf32>
    %218 = arith.addf %217, %216 : vector<8x128xf32>
    %219 = arith.divf %217, %218 : vector<8x128xf32>
    %220 = vector.extract_strided_slice %207 {offsets = [0, 256], sizes = [8, 128], strides = [1, 1]} : vector<8x512xf32> to vector<8x128xf32>
    %221 = math.tanh %220 : vector<8x128xf32>
    %222 = vector.extract_strided_slice %207 {offsets = [0, 384], sizes = [8, 128], strides = [1, 1]} : vector<8x512xf32> to vector<8x128xf32>
    %223 = arith.negf %222 : vector<8x128xf32>
    %224 = math.exp %223 : vector<8x128xf32>
    %cst_71 = arith.constant 1.000000e+00 : f32
    %225 = vector.broadcast %cst_71 : f32 to vector<8x128xf32>
    %226 = arith.addf %225, %224 : vector<8x128xf32>
    %227 = arith.divf %225, %226 : vector<8x128xf32>
    %228 = arith.mulf %219, %199 : vector<8x128xf32>
    %229 = arith.mulf %213, %221 : vector<8x128xf32>
    %230 = arith.addf %228, %229 : vector<8x128xf32>
    %231 = math.tanh %230 : vector<8x128xf32>
    %232 = arith.mulf %227, %231 : vector<8x128xf32>
    %c7_i32 = arith.constant 7 : i32
    %233 = arith.index_cast %c7_i32 : i32 to index
    %c0_72 = arith.constant 0 : index
    %c0_73 = arith.constant 0 : index
    %234 = vector.load %arg7[%233, %c0_72, %c0_73] : memref<8x8x512xf32, #tpu.memory_space<vmem>>, vector<1x8x512xf32>
    %235 = vector.shape_cast %234 : vector<1x8x512xf32> to vector<8x512xf32>
    %c0_74 = arith.constant 0 : index
    %c0_75 = arith.constant 0 : index
    %236 = vector.load %arg4[%c0_74, %c0_75] : memref<128x512xf32, #tpu.memory_space<vmem>>, vector<128x512xf32>
    %cst_76 = arith.constant dense<0.000000e+00> : vector<8x512xf32>
    %237 = tpu.matmul %232, %236, %cst_76 {dimension_numbers = #tpu.dot_dimension_numbers<[1], [0], [0], [1], [0, 0, 1, 1], [], []>} : vector<8x128xf32>, vector<128x512xf32>, vector<8x512xf32> -> vector<8x512xf32>
    %238 = arith.addf %235, %237 : vector<8x512xf32>
    %239 = vector.extract_strided_slice %238 {offsets = [0, 0], sizes = [8, 128], strides = [1, 1]} : vector<8x512xf32> to vector<8x128xf32>
    %240 = arith.negf %239 : vector<8x128xf32>
    %241 = math.exp %240 : vector<8x128xf32>
    %cst_77 = arith.constant 1.000000e+00 : f32
    %242 = vector.broadcast %cst_77 : f32 to vector<8x128xf32>
    %243 = arith.addf %242, %241 : vector<8x128xf32>
    %244 = arith.divf %242, %243 : vector<8x128xf32>
    %245 = vector.extract_strided_slice %238 {offsets = [0, 128], sizes = [8, 128], strides = [1, 1]} : vector<8x512xf32> to vector<8x128xf32>
    %246 = arith.negf %245 : vector<8x128xf32>
    %247 = math.exp %246 : vector<8x128xf32>
    %cst_78 = arith.constant 1.000000e+00 : f32
    %248 = vector.broadcast %cst_78 : f32 to vector<8x128xf32>
    %249 = arith.addf %248, %247 : vector<8x128xf32>
    %250 = arith.divf %248, %249 : vector<8x128xf32>
    %251 = vector.extract_strided_slice %238 {offsets = [0, 256], sizes = [8, 128], strides = [1, 1]} : vector<8x512xf32> to vector<8x128xf32>
    %252 = math.tanh %251 : vector<8x128xf32>
    %253 = vector.extract_strided_slice %238 {offsets = [0, 384], sizes = [8, 128], strides = [1, 1]} : vector<8x512xf32> to vector<8x128xf32>
    %254 = arith.negf %253 : vector<8x128xf32>
    %255 = math.exp %254 : vector<8x128xf32>
    %cst_79 = arith.constant 1.000000e+00 : f32
    %256 = vector.broadcast %cst_79 : f32 to vector<8x128xf32>
    %257 = arith.addf %256, %255 : vector<8x128xf32>
    %258 = arith.divf %256, %257 : vector<8x128xf32>
    %259 = arith.mulf %250, %230 : vector<8x128xf32>
    %260 = arith.mulf %244, %252 : vector<8x128xf32>
    %261 = arith.addf %259, %260 : vector<8x128xf32>
    %262 = math.tanh %261 : vector<8x128xf32>
    %263 = arith.mulf %258, %262 : vector<8x128xf32>
    %c8_i32 = arith.constant 8 : i32
    %c0_80 = arith.constant 0 : index
    %c0_81 = arith.constant 0 : index
    %264 = vector.load %arg8[%c0_80, %c0_81] : memref<8x128xf32, #tpu.memory_space<vmem>>, vector<8x128xf32>
    tpu.vector_store %arg8[%c0_80, %c0_81], %263 {strides = array<i32>} : memref<8x128xf32, #tpu.memory_space<vmem>>, vector<8x128xf32>,
    %c0_82 = arith.constant 0 : index
    %c0_83 = arith.constant 0 : index
    %265 = vector.load %arg9[%c0_82, %c0_83] : memref<8x128xf32, #tpu.memory_space<vmem>>, vector<8x128xf32>
    tpu.vector_store %arg9[%c0_82, %c0_83], %261 {strides = array<i32>} : memref<8x128xf32, #tpu.memory_space<vmem>>, vector<8x128xf32>,
    %c0_i32_84 = arith.constant 0 : i32
    %266 = arith.cmpi eq, %arg1, %c0_i32_84 : i32
    %267 = arith.extui %266 : i1 to i32
    %c0_i32_85 = arith.constant 0 : i32
    %268 = arith.cmpi ne, %267, %c0_i32_85 : i32
    scf.if %268 {
      %c0_86 = arith.constant 0 : index
      %c0_87 = arith.constant 0 : index
      %269 = vector.load %arg8[%c0_86, %c0_87] : memref<8x128xf32, #tpu.memory_space<vmem>>, vector<8x128xf32>
      %c0_88 = arith.constant 0 : index
      %c0_89 = arith.constant 0 : index
      %270 = vector.load %arg6[%c0_88, %c0_89] : memref<8x128xf32, #tpu.memory_space<vmem>>, vector<8x128xf32>
      tpu.vector_store %arg6[%c0_88, %c0_89], %269 {strides = array<i32>} : memref<8x128xf32, #tpu.memory_space<vmem>>, vector<8x128xf32>,
    } else {
    }
    return
  }
  func.func @transform_0(%arg0: i32, %arg1: i32) -> (i32, i32, i32, i32) {
    %c0_i32 = arith.constant 0 : i32
    %c0_i32_0 = arith.constant 0 : i32
    %c0_i32_1 = arith.constant 0 : i32
    return %arg0, %arg1, %c0_i32, %c0_i32_0 : i32, i32, i32, i32
  }
  func.func @transform_1(%arg0: i32, %arg1: i32) -> (i32, i32) {
    %c0_i32 = arith.constant 0 : i32
    %c0_i32_0 = arith.constant 0 : i32
    %c0_i32_1 = arith.constant 0 : i32
    return %c0_i32, %c0_i32_0 : i32, i32
  }
  func.func @transform_2(%arg0: i32, %arg1: i32) -> (i32, i32) {
    %c0_i32 = arith.constant 0 : i32
    %c0_i32_0 = arith.constant 0 : i32
    %c0_i32_1 = arith.constant 0 : i32
    return %c0_i32, %c0_i32_0 : i32, i32
  }
  func.func @transform_3(%arg0: i32, %arg1: i32) -> (i32, i32) {
    %c0_i32 = arith.constant 0 : i32
    %c0_i32_0 = arith.constant 0 : i32
    %c0_i32_1 = arith.constant 0 : i32
    return %c0_i32, %c0_i32_0 : i32, i32
  }
  func.func @transform_4(%arg0: i32, %arg1: i32) -> (i32, i32) {
    %c0_i32 = arith.constant 0 : i32
    %c0_i32_0 = arith.constant 0 : i32
    return %arg0, %c0_i32 : i32, i32
  }
}

module attributes {stable_mosaic.version = 11 : i64} {
  func.func @_lstm_chunk_kernel(%arg0: i32, %arg1: i32, %arg2: memref<1x8x8x16xf32, #tpu.memory_space<vmem>>, %arg3: memref<16x512xf32, #tpu.memory_space<vmem>>, %arg4: memref<128x512xf32, #tpu.memory_space<vmem>>, %arg5: memref<1x512xf32, #tpu.memory_space<vmem>>, %arg6: memref<8x128xf32, #tpu.memory_space<vmem>>, %arg7: memref<8x8x512xf32, #tpu.memory_space<vmem>>, %arg8: memref<8x128xf32, #tpu.memory_space<vmem>>, %arg9: memref<8x128xf32, #tpu.memory_space<vmem>>) attributes {dimension_semantics = [#tpu.dimension_semantics<parallel>, #tpu.dimension_semantics<arbitrary>], iteration_bounds = array<i64: 1, 1>, scalar_prefetch = 0 : i64, scratch_operands = 3 : i64, tpu.core_type = #tpu.core_type<tc>, window_params = [{transform_indices = @transform_0, window_bounds = array<i64: 1, 8, 8, 16>}, {pipeline_mode = #tpu.pipeline_mode<synchronous>, transform_indices = @transform_1, window_bounds = array<i64: 16, 512>}, {pipeline_mode = #tpu.pipeline_mode<synchronous>, transform_indices = @transform_2, window_bounds = array<i64: 128, 512>}, {pipeline_mode = #tpu.pipeline_mode<synchronous>, transform_indices = @transform_3, window_bounds = array<i64: 1, 512>}, {transform_indices = @transform_4, window_bounds = array<i64: 8, 128>}]} {
    %c0_i32 = arith.constant 0 : i32
    %0 = arith.cmpi eq, %arg1, %c0_i32 : i32
    %1 = arith.extui %0 : i1 to i32
    %c0_i32_0 = arith.constant 0 : i32
    %2 = arith.cmpi ne, %1, %c0_i32_0 : i32
    scf.if %2 {
      %cst_86 = arith.constant 0.000000e+00 : f32
      %269 = vector.broadcast %cst_86 : f32 to vector<8x128xf32>
      %c0_87 = arith.constant 0 : index
      %c0_88 = arith.constant 0 : index
      %270 = vector.load %arg8[%c0_87, %c0_88] : memref<8x128xf32, #tpu.memory_space<vmem>>, vector<8x128xf32>
      tpu.vector_store %arg8[%c0_87, %c0_88], %269 {strides = array<i32>} : memref<8x128xf32, #tpu.memory_space<vmem>>, vector<8x128xf32>,
      %cst_89 = arith.constant 0.000000e+00 : f32
      %271 = vector.broadcast %cst_89 : f32 to vector<8x128xf32>
      %c0_90 = arith.constant 0 : index
      %c0_91 = arith.constant 0 : index
      %272 = vector.load %arg9[%c0_90, %c0_91] : memref<8x128xf32, #tpu.memory_space<vmem>>, vector<8x128xf32>
      tpu.vector_store %arg9[%c0_90, %c0_91], %271 {strides = array<i32>} : memref<8x128xf32, #tpu.memory_space<vmem>>, vector<8x128xf32>,
    } else {
    }
    %c0 = arith.constant 0 : index
    %c0_1 = arith.constant 0 : index
    %c0_2 = arith.constant 0 : index
    %c0_3 = arith.constant 0 : index
    %3 = vector.load %arg2[%c0, %c0_1, %c0_2, %c0_3] : memref<1x8x8x16xf32, #tpu.memory_space<vmem>>, vector<1x8x8x16xf32>
    %4 = vector.shape_cast %3 : vector<1x8x8x16xf32> to vector<8x8x16xf32>
    %5 = vector.shape_cast %4 : vector<8x8x16xf32> to vector<64x16xf32>
    %c0_4 = arith.constant 0 : index
    %c0_5 = arith.constant 0 : index
    %6 = vector.load %arg3[%c0_4, %c0_5] : memref<16x512xf32, #tpu.memory_space<vmem>>, vector<16x512xf32>
    %cst = arith.constant dense<0.000000e+00> : vector<64x512xf32>
    %7 = tpu.matmul %5, %6, %cst {dimension_numbers = #tpu.dot_dimension_numbers<[1], [0], [0], [1], [0, 0, 1, 1], [], []>} : vector<64x16xf32>, vector<16x512xf32>, vector<64x512xf32> -> vector<64x512xf32>
    %8 = vector.shape_cast %7 : vector<64x512xf32> to vector<8x8x512xf32>
    %c0_6 = arith.constant 0 : index
    %c0_7 = arith.constant 0 : index
    %9 = vector.load %arg5[%c0_6, %c0_7] : memref<1x512xf32, #tpu.memory_space<vmem>>, vector<1x512xf32>
    %10 = vector.shape_cast %9 : vector<1x512xf32> to vector<1x1x512xf32>
    %11 = vector.broadcast %10 : vector<1x1x512xf32> to vector<8x8x512xf32>
    %12 = arith.addf %8, %11 : vector<8x8x512xf32>
    %c0_8 = arith.constant 0 : index
    %c0_9 = arith.constant 0 : index
    %c0_10 = arith.constant 0 : index
    %13 = vector.load %arg7[%c0_8, %c0_9, %c0_10] : memref<8x8x512xf32, #tpu.memory_space<vmem>>, vector<8x8x512xf32>
    tpu.vector_store %arg7[%c0_8, %c0_9, %c0_10], %12 {strides = array<i32>} : memref<8x8x512xf32, #tpu.memory_space<vmem>>, vector<8x8x512xf32>,
    %c0_11 = arith.constant 0 : index
    %c0_12 = arith.constant 0 : index
    %14 = vector.load %arg8[%c0_11, %c0_12] : memref<8x128xf32, #tpu.memory_space<vmem>>, vector<8x128xf32>
    %c0_13 = arith.constant 0 : index
    %c0_14 = arith.constant 0 : index
    %15 = vector.load %arg9[%c0_13, %c0_14] : memref<8x128xf32, #tpu.memory_space<vmem>>, vector<8x128xf32>
    %c0_i32_15 = arith.constant 0 : i32
    %16 = arith.index_cast %c0_i32_15 : i32 to index
    %c0_16 = arith.constant 0 : index
    %c0_17 = arith.constant 0 : index
    %17 = vector.load %arg7[%16, %c0_16, %c0_17] : memref<8x8x512xf32, #tpu.memory_space<vmem>>, vector<1x8x512xf32>
    %18 = vector.shape_cast %17 : vector<1x8x512xf32> to vector<8x512xf32>
    %c0_18 = arith.constant 0 : index
    %c0_19 = arith.constant 0 : index
    %19 = vector.load %arg4[%c0_18, %c0_19] : memref<128x512xf32, #tpu.memory_space<vmem>>, vector<128x512xf32>
    %cst_20 = arith.constant dense<0.000000e+00> : vector<8x512xf32>
    %20 = tpu.matmul %14, %19, %cst_20 {dimension_numbers = #tpu.dot_dimension_numbers<[1], [0], [0], [1], [0, 0, 1, 1], [], []>} : vector<8x128xf32>, vector<128x512xf32>, vector<8x512xf32> -> vector<8x512xf32>
    %21 = arith.addf %18, %20 : vector<8x512xf32>
    %22 = vector.extract_strided_slice %21 {offsets = [0, 0], sizes = [8, 128], strides = [1, 1]} : vector<8x512xf32> to vector<8x128xf32>
    %23 = arith.negf %22 : vector<8x128xf32>
    %24 = math.exp %23 : vector<8x128xf32>
    %cst_21 = arith.constant 1.000000e+00 : f32
    %25 = vector.broadcast %cst_21 : f32 to vector<8x128xf32>
    %26 = arith.addf %25, %24 : vector<8x128xf32>
    %27 = arith.divf %25, %26 : vector<8x128xf32>
    %28 = vector.extract_strided_slice %21 {offsets = [0, 128], sizes = [8, 128], strides = [1, 1]} : vector<8x512xf32> to vector<8x128xf32>
    %29 = arith.negf %28 : vector<8x128xf32>
    %30 = math.exp %29 : vector<8x128xf32>
    %cst_22 = arith.constant 1.000000e+00 : f32
    %31 = vector.broadcast %cst_22 : f32 to vector<8x128xf32>
    %32 = arith.addf %31, %30 : vector<8x128xf32>
    %33 = arith.divf %31, %32 : vector<8x128xf32>
    %34 = vector.extract_strided_slice %21 {offsets = [0, 256], sizes = [8, 128], strides = [1, 1]} : vector<8x512xf32> to vector<8x128xf32>
    %35 = math.tanh %34 : vector<8x128xf32>
    %36 = vector.extract_strided_slice %21 {offsets = [0, 384], sizes = [8, 128], strides = [1, 1]} : vector<8x512xf32> to vector<8x128xf32>
    %37 = arith.negf %36 : vector<8x128xf32>
    %38 = math.exp %37 : vector<8x128xf32>
    %cst_23 = arith.constant 1.000000e+00 : f32
    %39 = vector.broadcast %cst_23 : f32 to vector<8x128xf32>
    %40 = arith.addf %39, %38 : vector<8x128xf32>
    %41 = arith.divf %39, %40 : vector<8x128xf32>
    %42 = arith.mulf %33, %15 : vector<8x128xf32>
    %43 = arith.mulf %27, %35 : vector<8x128xf32>
    %44 = arith.addf %42, %43 : vector<8x128xf32>
    %45 = math.tanh %44 : vector<8x128xf32>
    %46 = arith.mulf %41, %45 : vector<8x128xf32>
    %c1_i32 = arith.constant 1 : i32
    %47 = arith.index_cast %c1_i32 : i32 to index
    %c0_24 = arith.constant 0 : index
    %c0_25 = arith.constant 0 : index
    %48 = vector.load %arg7[%47, %c0_24, %c0_25] : memref<8x8x512xf32, #tpu.memory_space<vmem>>, vector<1x8x512xf32>
    %49 = vector.shape_cast %48 : vector<1x8x512xf32> to vector<8x512xf32>
    %c0_26 = arith.constant 0 : index
    %c0_27 = arith.constant 0 : index
    %50 = vector.load %arg4[%c0_26, %c0_27] : memref<128x512xf32, #tpu.memory_space<vmem>>, vector<128x512xf32>
    %cst_28 = arith.constant dense<0.000000e+00> : vector<8x512xf32>
    %51 = tpu.matmul %46, %50, %cst_28 {dimension_numbers = #tpu.dot_dimension_numbers<[1], [0], [0], [1], [0, 0, 1, 1], [], []>} : vector<8x128xf32>, vector<128x512xf32>, vector<8x512xf32> -> vector<8x512xf32>
    %52 = arith.addf %49, %51 : vector<8x512xf32>
    %53 = vector.extract_strided_slice %52 {offsets = [0, 0], sizes = [8, 128], strides = [1, 1]} : vector<8x512xf32> to vector<8x128xf32>
    %54 = arith.negf %53 : vector<8x128xf32>
    %55 = math.exp %54 : vector<8x128xf32>
    %cst_29 = arith.constant 1.000000e+00 : f32
    %56 = vector.broadcast %cst_29 : f32 to vector<8x128xf32>
    %57 = arith.addf %56, %55 : vector<8x128xf32>
    %58 = arith.divf %56, %57 : vector<8x128xf32>
    %59 = vector.extract_strided_slice %52 {offsets = [0, 128], sizes = [8, 128], strides = [1, 1]} : vector<8x512xf32> to vector<8x128xf32>
    %60 = arith.negf %59 : vector<8x128xf32>
    %61 = math.exp %60 : vector<8x128xf32>
    %cst_30 = arith.constant 1.000000e+00 : f32
    %62 = vector.broadcast %cst_30 : f32 to vector<8x128xf32>
    %63 = arith.addf %62, %61 : vector<8x128xf32>
    %64 = arith.divf %62, %63 : vector<8x128xf32>
    %65 = vector.extract_strided_slice %52 {offsets = [0, 256], sizes = [8, 128], strides = [1, 1]} : vector<8x512xf32> to vector<8x128xf32>
    %66 = math.tanh %65 : vector<8x128xf32>
    %67 = vector.extract_strided_slice %52 {offsets = [0, 384], sizes = [8, 128], strides = [1, 1]} : vector<8x512xf32> to vector<8x128xf32>
    %68 = arith.negf %67 : vector<8x128xf32>
    %69 = math.exp %68 : vector<8x128xf32>
    %cst_31 = arith.constant 1.000000e+00 : f32
    %70 = vector.broadcast %cst_31 : f32 to vector<8x128xf32>
    %71 = arith.addf %70, %69 : vector<8x128xf32>
    %72 = arith.divf %70, %71 : vector<8x128xf32>
    %73 = arith.mulf %64, %44 : vector<8x128xf32>
    %74 = arith.mulf %58, %66 : vector<8x128xf32>
    %75 = arith.addf %73, %74 : vector<8x128xf32>
    %76 = math.tanh %75 : vector<8x128xf32>
    %77 = arith.mulf %72, %76 : vector<8x128xf32>
    %c2_i32 = arith.constant 2 : i32
    %78 = arith.index_cast %c2_i32 : i32 to index
    %c0_32 = arith.constant 0 : index
    %c0_33 = arith.constant 0 : index
    %79 = vector.load %arg7[%78, %c0_32, %c0_33] : memref<8x8x512xf32, #tpu.memory_space<vmem>>, vector<1x8x512xf32>
    %80 = vector.shape_cast %79 : vector<1x8x512xf32> to vector<8x512xf32>
    %c0_34 = arith.constant 0 : index
    %c0_35 = arith.constant 0 : index
    %81 = vector.load %arg4[%c0_34, %c0_35] : memref<128x512xf32, #tpu.memory_space<vmem>>, vector<128x512xf32>
    %cst_36 = arith.constant dense<0.000000e+00> : vector<8x512xf32>
    %82 = tpu.matmul %77, %81, %cst_36 {dimension_numbers = #tpu.dot_dimension_numbers<[1], [0], [0], [1], [0, 0, 1, 1], [], []>} : vector<8x128xf32>, vector<128x512xf32>, vector<8x512xf32> -> vector<8x512xf32>
    %83 = arith.addf %80, %82 : vector<8x512xf32>
    %84 = vector.extract_strided_slice %83 {offsets = [0, 0], sizes = [8, 128], strides = [1, 1]} : vector<8x512xf32> to vector<8x128xf32>
    %85 = arith.negf %84 : vector<8x128xf32>
    %86 = math.exp %85 : vector<8x128xf32>
    %cst_37 = arith.constant 1.000000e+00 : f32
    %87 = vector.broadcast %cst_37 : f32 to vector<8x128xf32>
    %88 = arith.addf %87, %86 : vector<8x128xf32>
    %89 = arith.divf %87, %88 : vector<8x128xf32>
    %90 = vector.extract_strided_slice %83 {offsets = [0, 128], sizes = [8, 128], strides = [1, 1]} : vector<8x512xf32> to vector<8x128xf32>
    %91 = arith.negf %90 : vector<8x128xf32>
    %92 = math.exp %91 : vector<8x128xf32>
    %cst_38 = arith.constant 1.000000e+00 : f32
    %93 = vector.broadcast %cst_38 : f32 to vector<8x128xf32>
    %94 = arith.addf %93, %92 : vector<8x128xf32>
    %95 = arith.divf %93, %94 : vector<8x128xf32>
    %96 = vector.extract_strided_slice %83 {offsets = [0, 256], sizes = [8, 128], strides = [1, 1]} : vector<8x512xf32> to vector<8x128xf32>
    %97 = math.tanh %96 : vector<8x128xf32>
    %98 = vector.extract_strided_slice %83 {offsets = [0, 384], sizes = [8, 128], strides = [1, 1]} : vector<8x512xf32> to vector<8x128xf32>
    %99 = arith.negf %98 : vector<8x128xf32>
    %100 = math.exp %99 : vector<8x128xf32>
    %cst_39 = arith.constant 1.000000e+00 : f32
    %101 = vector.broadcast %cst_39 : f32 to vector<8x128xf32>
    %102 = arith.addf %101, %100 : vector<8x128xf32>
    %103 = arith.divf %101, %102 : vector<8x128xf32>
    %104 = arith.mulf %95, %75 : vector<8x128xf32>
    %105 = arith.mulf %89, %97 : vector<8x128xf32>
    %106 = arith.addf %104, %105 : vector<8x128xf32>
    %107 = math.tanh %106 : vector<8x128xf32>
    %108 = arith.mulf %103, %107 : vector<8x128xf32>
    %c3_i32 = arith.constant 3 : i32
    %109 = arith.index_cast %c3_i32 : i32 to index
    %c0_40 = arith.constant 0 : index
    %c0_41 = arith.constant 0 : index
    %110 = vector.load %arg7[%109, %c0_40, %c0_41] : memref<8x8x512xf32, #tpu.memory_space<vmem>>, vector<1x8x512xf32>
    %111 = vector.shape_cast %110 : vector<1x8x512xf32> to vector<8x512xf32>
    %c0_42 = arith.constant 0 : index
    %c0_43 = arith.constant 0 : index
    %112 = vector.load %arg4[%c0_42, %c0_43] : memref<128x512xf32, #tpu.memory_space<vmem>>, vector<128x512xf32>
    %cst_44 = arith.constant dense<0.000000e+00> : vector<8x512xf32>
    %113 = tpu.matmul %108, %112, %cst_44 {dimension_numbers = #tpu.dot_dimension_numbers<[1], [0], [0], [1], [0, 0, 1, 1], [], []>} : vector<8x128xf32>, vector<128x512xf32>, vector<8x512xf32> -> vector<8x512xf32>
    %114 = arith.addf %111, %113 : vector<8x512xf32>
    %115 = vector.extract_strided_slice %114 {offsets = [0, 0], sizes = [8, 128], strides = [1, 1]} : vector<8x512xf32> to vector<8x128xf32>
    %116 = arith.negf %115 : vector<8x128xf32>
    %117 = math.exp %116 : vector<8x128xf32>
    %cst_45 = arith.constant 1.000000e+00 : f32
    %118 = vector.broadcast %cst_45 : f32 to vector<8x128xf32>
    %119 = arith.addf %118, %117 : vector<8x128xf32>
    %120 = arith.divf %118, %119 : vector<8x128xf32>
    %121 = vector.extract_strided_slice %114 {offsets = [0, 128], sizes = [8, 128], strides = [1, 1]} : vector<8x512xf32> to vector<8x128xf32>
    %122 = arith.negf %121 : vector<8x128xf32>
    %123 = math.exp %122 : vector<8x128xf32>
    %cst_46 = arith.constant 1.000000e+00 : f32
    %124 = vector.broadcast %cst_46 : f32 to vector<8x128xf32>
    %125 = arith.addf %124, %123 : vector<8x128xf32>
    %126 = arith.divf %124, %125 : vector<8x128xf32>
    %127 = vector.extract_strided_slice %114 {offsets = [0, 256], sizes = [8, 128], strides = [1, 1]} : vector<8x512xf32> to vector<8x128xf32>
    %128 = math.tanh %127 : vector<8x128xf32>
    %129 = vector.extract_strided_slice %114 {offsets = [0, 384], sizes = [8, 128], strides = [1, 1]} : vector<8x512xf32> to vector<8x128xf32>
    %130 = arith.negf %129 : vector<8x128xf32>
    %131 = math.exp %130 : vector<8x128xf32>
    %cst_47 = arith.constant 1.000000e+00 : f32
    %132 = vector.broadcast %cst_47 : f32 to vector<8x128xf32>
    %133 = arith.addf %132, %131 : vector<8x128xf32>
    %134 = arith.divf %132, %133 : vector<8x128xf32>
    %135 = arith.mulf %126, %106 : vector<8x128xf32>
    %136 = arith.mulf %120, %128 : vector<8x128xf32>
    %137 = arith.addf %135, %136 : vector<8x128xf32>
    %138 = math.tanh %137 : vector<8x128xf32>
    %139 = arith.mulf %134, %138 : vector<8x128xf32>
    %c4_i32 = arith.constant 4 : i32
    %140 = arith.index_cast %c4_i32 : i32 to index
    %c0_48 = arith.constant 0 : index
    %c0_49 = arith.constant 0 : index
    %141 = vector.load %arg7[%140, %c0_48, %c0_49] : memref<8x8x512xf32, #tpu.memory_space<vmem>>, vector<1x8x512xf32>
    %142 = vector.shape_cast %141 : vector<1x8x512xf32> to vector<8x512xf32>
    %c0_50 = arith.constant 0 : index
    %c0_51 = arith.constant 0 : index
    %143 = vector.load %arg4[%c0_50, %c0_51] : memref<128x512xf32, #tpu.memory_space<vmem>>, vector<128x512xf32>
    %cst_52 = arith.constant dense<0.000000e+00> : vector<8x512xf32>
    %144 = tpu.matmul %139, %143, %cst_52 {dimension_numbers = #tpu.dot_dimension_numbers<[1], [0], [0], [1], [0, 0, 1, 1], [], []>} : vector<8x128xf32>, vector<128x512xf32>, vector<8x512xf32> -> vector<8x512xf32>
    %145 = arith.addf %142, %144 : vector<8x512xf32>
    %146 = vector.extract_strided_slice %145 {offsets = [0, 0], sizes = [8, 128], strides = [1, 1]} : vector<8x512xf32> to vector<8x128xf32>
    %147 = arith.negf %146 : vector<8x128xf32>
    %148 = math.exp %147 : vector<8x128xf32>
    %cst_53 = arith.constant 1.000000e+00 : f32
    %149 = vector.broadcast %cst_53 : f32 to vector<8x128xf32>
    %150 = arith.addf %149, %148 : vector<8x128xf32>
    %151 = arith.divf %149, %150 : vector<8x128xf32>
    %152 = vector.extract_strided_slice %145 {offsets = [0, 128], sizes = [8, 128], strides = [1, 1]} : vector<8x512xf32> to vector<8x128xf32>
    %153 = arith.negf %152 : vector<8x128xf32>
    %154 = math.exp %153 : vector<8x128xf32>
    %cst_54 = arith.constant 1.000000e+00 : f32
    %155 = vector.broadcast %cst_54 : f32 to vector<8x128xf32>
    %156 = arith.addf %155, %154 : vector<8x128xf32>
    %157 = arith.divf %155, %156 : vector<8x128xf32>
    %158 = vector.extract_strided_slice %145 {offsets = [0, 256], sizes = [8, 128], strides = [1, 1]} : vector<8x512xf32> to vector<8x128xf32>
    %159 = math.tanh %158 : vector<8x128xf32>
    %160 = vector.extract_strided_slice %145 {offsets = [0, 384], sizes = [8, 128], strides = [1, 1]} : vector<8x512xf32> to vector<8x128xf32>
    %161 = arith.negf %160 : vector<8x128xf32>
    %162 = math.exp %161 : vector<8x128xf32>
    %cst_55 = arith.constant 1.000000e+00 : f32
    %163 = vector.broadcast %cst_55 : f32 to vector<8x128xf32>
    %164 = arith.addf %163, %162 : vector<8x128xf32>
    %165 = arith.divf %163, %164 : vector<8x128xf32>
    %166 = arith.mulf %157, %137 : vector<8x128xf32>
    %167 = arith.mulf %151, %159 : vector<8x128xf32>
    %168 = arith.addf %166, %167 : vector<8x128xf32>
    %169 = math.tanh %168 : vector<8x128xf32>
    %170 = arith.mulf %165, %169 : vector<8x128xf32>
    %c5_i32 = arith.constant 5 : i32
    %171 = arith.index_cast %c5_i32 : i32 to index
    %c0_56 = arith.constant 0 : index
    %c0_57 = arith.constant 0 : index
    %172 = vector.load %arg7[%171, %c0_56, %c0_57] : memref<8x8x512xf32, #tpu.memory_space<vmem>>, vector<1x8x512xf32>
    %173 = vector.shape_cast %172 : vector<1x8x512xf32> to vector<8x512xf32>
    %c0_58 = arith.constant 0 : index
    %c0_59 = arith.constant 0 : index
    %174 = vector.load %arg4[%c0_58, %c0_59] : memref<128x512xf32, #tpu.memory_space<vmem>>, vector<128x512xf32>
    %cst_60 = arith.constant dense<0.000000e+00> : vector<8x512xf32>
    %175 = tpu.matmul %170, %174, %cst_60 {dimension_numbers = #tpu.dot_dimension_numbers<[1], [0], [0], [1], [0, 0, 1, 1], [], []>} : vector<8x128xf32>, vector<128x512xf32>, vector<8x512xf32> -> vector<8x512xf32>
    %176 = arith.addf %173, %175 : vector<8x512xf32>
    %177 = vector.extract_strided_slice %176 {offsets = [0, 0], sizes = [8, 128], strides = [1, 1]} : vector<8x512xf32> to vector<8x128xf32>
    %178 = arith.negf %177 : vector<8x128xf32>
    %179 = math.exp %178 : vector<8x128xf32>
    %cst_61 = arith.constant 1.000000e+00 : f32
    %180 = vector.broadcast %cst_61 : f32 to vector<8x128xf32>
    %181 = arith.addf %180, %179 : vector<8x128xf32>
    %182 = arith.divf %180, %181 : vector<8x128xf32>
    %183 = vector.extract_strided_slice %176 {offsets = [0, 128], sizes = [8, 128], strides = [1, 1]} : vector<8x512xf32> to vector<8x128xf32>
    %184 = arith.negf %183 : vector<8x128xf32>
    %185 = math.exp %184 : vector<8x128xf32>
    %cst_62 = arith.constant 1.000000e+00 : f32
    %186 = vector.broadcast %cst_62 : f32 to vector<8x128xf32>
    %187 = arith.addf %186, %185 : vector<8x128xf32>
    %188 = arith.divf %186, %187 : vector<8x128xf32>
    %189 = vector.extract_strided_slice %176 {offsets = [0, 256], sizes = [8, 128], strides = [1, 1]} : vector<8x512xf32> to vector<8x128xf32>
    %190 = math.tanh %189 : vector<8x128xf32>
    %191 = vector.extract_strided_slice %176 {offsets = [0, 384], sizes = [8, 128], strides = [1, 1]} : vector<8x512xf32> to vector<8x128xf32>
    %192 = arith.negf %191 : vector<8x128xf32>
    %193 = math.exp %192 : vector<8x128xf32>
    %cst_63 = arith.constant 1.000000e+00 : f32
    %194 = vector.broadcast %cst_63 : f32 to vector<8x128xf32>
    %195 = arith.addf %194, %193 : vector<8x128xf32>
    %196 = arith.divf %194, %195 : vector<8x128xf32>
    %197 = arith.mulf %188, %168 : vector<8x128xf32>
    %198 = arith.mulf %182, %190 : vector<8x128xf32>
    %199 = arith.addf %197, %198 : vector<8x128xf32>
    %200 = math.tanh %199 : vector<8x128xf32>
    %201 = arith.mulf %196, %200 : vector<8x128xf32>
    %c6_i32 = arith.constant 6 : i32
    %202 = arith.index_cast %c6_i32 : i32 to index
    %c0_64 = arith.constant 0 : index
    %c0_65 = arith.constant 0 : index
    %203 = vector.load %arg7[%202, %c0_64, %c0_65] : memref<8x8x512xf32, #tpu.memory_space<vmem>>, vector<1x8x512xf32>
    %204 = vector.shape_cast %203 : vector<1x8x512xf32> to vector<8x512xf32>
    %c0_66 = arith.constant 0 : index
    %c0_67 = arith.constant 0 : index
    %205 = vector.load %arg4[%c0_66, %c0_67] : memref<128x512xf32, #tpu.memory_space<vmem>>, vector<128x512xf32>
    %cst_68 = arith.constant dense<0.000000e+00> : vector<8x512xf32>
    %206 = tpu.matmul %201, %205, %cst_68 {dimension_numbers = #tpu.dot_dimension_numbers<[1], [0], [0], [1], [0, 0, 1, 1], [], []>} : vector<8x128xf32>, vector<128x512xf32>, vector<8x512xf32> -> vector<8x512xf32>
    %207 = arith.addf %204, %206 : vector<8x512xf32>
    %208 = vector.extract_strided_slice %207 {offsets = [0, 0], sizes = [8, 128], strides = [1, 1]} : vector<8x512xf32> to vector<8x128xf32>
    %209 = arith.negf %208 : vector<8x128xf32>
    %210 = math.exp %209 : vector<8x128xf32>
    %cst_69 = arith.constant 1.000000e+00 : f32
    %211 = vector.broadcast %cst_69 : f32 to vector<8x128xf32>
    %212 = arith.addf %211, %210 : vector<8x128xf32>
    %213 = arith.divf %211, %212 : vector<8x128xf32>
    %214 = vector.extract_strided_slice %207 {offsets = [0, 128], sizes = [8, 128], strides = [1, 1]} : vector<8x512xf32> to vector<8x128xf32>
    %215 = arith.negf %214 : vector<8x128xf32>
    %216 = math.exp %215 : vector<8x128xf32>
    %cst_70 = arith.constant 1.000000e+00 : f32
    %217 = vector.broadcast %cst_70 : f32 to vector<8x128xf32>
    %218 = arith.addf %217, %216 : vector<8x128xf32>
    %219 = arith.divf %217, %218 : vector<8x128xf32>
    %220 = vector.extract_strided_slice %207 {offsets = [0, 256], sizes = [8, 128], strides = [1, 1]} : vector<8x512xf32> to vector<8x128xf32>
    %221 = math.tanh %220 : vector<8x128xf32>
    %222 = vector.extract_strided_slice %207 {offsets = [0, 384], sizes = [8, 128], strides = [1, 1]} : vector<8x512xf32> to vector<8x128xf32>
    %223 = arith.negf %222 : vector<8x128xf32>
    %224 = math.exp %223 : vector<8x128xf32>
    %cst_71 = arith.constant 1.000000e+00 : f32
    %225 = vector.broadcast %cst_71 : f32 to vector<8x128xf32>
    %226 = arith.addf %225, %224 : vector<8x128xf32>
    %227 = arith.divf %225, %226 : vector<8x128xf32>
    %228 = arith.mulf %219, %199 : vector<8x128xf32>
    %229 = arith.mulf %213, %221 : vector<8x128xf32>
    %230 = arith.addf %228, %229 : vector<8x128xf32>
    %231 = math.tanh %230 : vector<8x128xf32>
    %232 = arith.mulf %227, %231 : vector<8x128xf32>
    %c7_i32 = arith.constant 7 : i32
    %233 = arith.index_cast %c7_i32 : i32 to index
    %c0_72 = arith.constant 0 : index
    %c0_73 = arith.constant 0 : index
    %234 = vector.load %arg7[%233, %c0_72, %c0_73] : memref<8x8x512xf32, #tpu.memory_space<vmem>>, vector<1x8x512xf32>
    %235 = vector.shape_cast %234 : vector<1x8x512xf32> to vector<8x512xf32>
    %c0_74 = arith.constant 0 : index
    %c0_75 = arith.constant 0 : index
    %236 = vector.load %arg4[%c0_74, %c0_75] : memref<128x512xf32, #tpu.memory_space<vmem>>, vector<128x512xf32>
    %cst_76 = arith.constant dense<0.000000e+00> : vector<8x512xf32>
    %237 = tpu.matmul %232, %236, %cst_76 {dimension_numbers = #tpu.dot_dimension_numbers<[1], [0], [0], [1], [0, 0, 1, 1], [], []>} : vector<8x128xf32>, vector<128x512xf32>, vector<8x512xf32> -> vector<8x512xf32>
    %238 = arith.addf %235, %237 : vector<8x512xf32>
    %239 = vector.extract_strided_slice %238 {offsets = [0, 0], sizes = [8, 128], strides = [1, 1]} : vector<8x512xf32> to vector<8x128xf32>
    %240 = arith.negf %239 : vector<8x128xf32>
    %241 = math.exp %240 : vector<8x128xf32>
    %cst_77 = arith.constant 1.000000e+00 : f32
    %242 = vector.broadcast %cst_77 : f32 to vector<8x128xf32>
    %243 = arith.addf %242, %241 : vector<8x128xf32>
    %244 = arith.divf %242, %243 : vector<8x128xf32>
    %245 = vector.extract_strided_slice %238 {offsets = [0, 128], sizes = [8, 128], strides = [1, 1]} : vector<8x512xf32> to vector<8x128xf32>
    %246 = arith.negf %245 : vector<8x128xf32>
    %247 = math.exp %246 : vector<8x128xf32>
    %cst_78 = arith.constant 1.000000e+00 : f32
    %248 = vector.broadcast %cst_78 : f32 to vector<8x128xf32>
    %249 = arith.addf %248, %247 : vector<8x128xf32>
    %250 = arith.divf %248, %249 : vector<8x128xf32>
    %251 = vector.extract_strided_slice %238 {offsets = [0, 256], sizes = [8, 128], strides = [1, 1]} : vector<8x512xf32> to vector<8x128xf32>
    %252 = math.tanh %251 : vector<8x128xf32>
    %253 = vector.extract_strided_slice %238 {offsets = [0, 384], sizes = [8, 128], strides = [1, 1]} : vector<8x512xf32> to vector<8x128xf32>
    %254 = arith.negf %253 : vector<8x128xf32>
    %255 = math.exp %254 : vector<8x128xf32>
    %cst_79 = arith.constant 1.000000e+00 : f32
    %256 = vector.broadcast %cst_79 : f32 to vector<8x128xf32>
    %257 = arith.addf %256, %255 : vector<8x128xf32>
    %258 = arith.divf %256, %257 : vector<8x128xf32>
    %259 = arith.mulf %250, %230 : vector<8x128xf32>
    %260 = arith.mulf %244, %252 : vector<8x128xf32>
    %261 = arith.addf %259, %260 : vector<8x128xf32>
    %262 = math.tanh %261 : vector<8x128xf32>
    %263 = arith.mulf %258, %262 : vector<8x128xf32>
    %c8_i32 = arith.constant 8 : i32
    %c0_80 = arith.constant 0 : index
    %c0_81 = arith.constant 0 : index
    %264 = vector.load %arg8[%c0_80, %c0_81] : memref<8x128xf32, #tpu.memory_space<vmem>>, vector<8x128xf32>
    tpu.vector_store %arg8[%c0_80, %c0_81], %263 {strides = array<i32>} : memref<8x128xf32, #tpu.memory_space<vmem>>, vector<8x128xf32>,
    %c0_82 = arith.constant 0 : index
    %c0_83 = arith.constant 0 : index
    %265 = vector.load %arg9[%c0_82, %c0_83] : memref<8x128xf32, #tpu.memory_space<vmem>>, vector<8x128xf32>
    tpu.vector_store %arg9[%c0_82, %c0_83], %261 {strides = array<i32>} : memref<8x128xf32, #tpu.memory_space<vmem>>, vector<8x128xf32>,
    %c0_i32_84 = arith.constant 0 : i32
    %266 = arith.cmpi eq, %arg1, %c0_i32_84 : i32
    %267 = arith.extui %266 : i1 to i32
    %c0_i32_85 = arith.constant 0 : i32
    %268 = arith.cmpi ne, %267, %c0_i32_85 : i32
    scf.if %268 {
      %c0_86 = arith.constant 0 : index
      %c0_87 = arith.constant 0 : index
      %269 = vector.load %arg8[%c0_86, %c0_87] : memref<8x128xf32, #tpu.memory_space<vmem>>, vector<8x128xf32>
      %c0_88 = arith.constant 0 : index
      %c0_89 = arith.constant 0 : index
      %270 = vector.load %arg6[%c0_88, %c0_89] : memref<8x128xf32, #tpu.memory_space<vmem>>, vector<8x128xf32>
      tpu.vector_store %arg6[%c0_88, %c0_89], %269 {strides = array<i32>} : memref<8x128xf32, #tpu.memory_space<vmem>>, vector<8x128xf32>,
    } else {
    }
    return
  }
  func.func @transform_0(%arg0: i32, %arg1: i32) -> (i32, i32, i32, i32) {
    %c0_i32 = arith.constant 0 : i32
    %c0_i32_0 = arith.constant 0 : i32
    %c0_i32_1 = arith.constant 0 : i32
    return %arg0, %arg1, %c0_i32, %c0_i32_0 : i32, i32, i32, i32
  }
  func.func @transform_1(%arg0: i32, %arg1: i32) -> (i32, i32) {
    %c0_i32 = arith.constant 0 : i32
    %c0_i32_0 = arith.constant 0 : i32
    %c0_i32_1 = arith.constant 0 : i32
    return %c0_i32, %c0_i32_0 : i32, i32
  }
  func.func @transform_2(%arg0: i32, %arg1: i32) -> (i32, i32) {
    %c0_i32 = arith.constant 0 : i32
    %c0_i32_0 = arith.constant 0 : i32
    %c0_i32_1 = arith.constant 0 : i32
    return %c0_i32, %c0_i32_0 : i32, i32
  }
  func.func @transform_3(%arg0: i32, %arg1: i32) -> (i32, i32) {
    %c0_i32 = arith.constant 0 : i32
    %c0_i32_0 = arith.constant 0 : i32
    %c0_i32_1 = arith.constant 0 : i32
    return %c0_i32, %c0_i32_0 : i32, i32
  }
  func.func @transform_4(%arg0: i32, %arg1: i32) -> (i32, i32) {
    %c0_i32 = arith.constant 0 : i32
    %c0_i32_0 = arith.constant 0 : i32
    return %arg0, %c0_i32 : i32, i32
  }
}

</mosaic_0001>

<bundles_post_ra>
// kernel: tpu_custom_call.1
= control target key start
LH: loop header
LB: loop body
LE: loop exit
PB: predicated region body
PF: predicated region fallthrough
CT: control target
= control target key end

     0   :  { %9 = vsyncpa [#allocation6], 0  ;;  %s3286_s0 = inlined_call_operand.hbm [shape: f32[1,8,8,16], index: 0, kind: input, shape index: {}]   ;;  %s3287_s1 = inlined_call_operand.hbm [shape: f32[16,512], index: 1, kind: input, shape index: {}]   ;;  %s3288_s2 = inlined_call_operand.hbm [shape: f32[128,512], index: 2, kind: input, shape index: {}]   ;;  %s3289_s3 = inlined_call_operand.vmem [shape: f32[1,512], index: 3, kind: input, shape index: {}]   ;;  %s3290_s4 = inlined_call_operand.hbm [shape: f32[8,128], index: 4, kind: output, shape index: {}]  }
   0x1   :  { %10 = vsyncpa [#allocation9], 0 }
   0x2   :  { %11 = vsyncpa [#allocation7], 0  ;;  %s2761_s15 = smov [#allocation8]   ;;  %s2667_s19 = scalar_lea.hbm %s3287_s1, 1024 }
   0x3   :  { %s29_s16 = sshll.u32 %s2761_s15, 4  ;;  %p2668_p0 = scmp.ne.s32.totalorder %s3287_s1, %s2667_s19  ;;  %s30_s16 = int_to_ptr.vmem [resolvable:$true] %s29_s16 }
   0x4   :  { %p2671_p1 = scmp.lt.u32.totalorder %s2667_s19, %s3287_s1 }
   0x6   :  { %p2673_p2 = pnand %p2671_p1, %p2668_p0 }
   0x8   :  { %2676 = shalt.err (!%p2673_p2)
}
   0x9   :  { %s2677_s24 = scalar_lea.vmem %s30_s16, 1024  ;;  %p2682_p4 = scmp.lt.s32.totalorder %s30_s16, %s30_s16 }
   0xa   :  { %p2678_p3 = scmp.ne.s32.totalorder %s30_s16, %s2677_s24  ;;  %p2683_p5 = scmp.lt.s32.totalorder %s2677_s24, %s2677_s24 }
   0xc   :  { %p2684_p6 = por %p2683_p5, %p2682_p4 }
   0xe   :  { %p2685_p7 = pnand %p2684_p6, %p2678_p3 }
  0x10   :  { %2688 = shalt.err (!%p2685_p7)
}
  0x11   :  { %s2762_s25 = smov 512   ;;  %s2763_s26 = smov 32  }
  0x12   :  { %35 = dma.hbm_to_vmem [thread:$0]  %s3287_s1, 1024, %s30_s16, [#allocation9], %s2762_s25, %s2762_s25, %s2763_s26  }
  0x13   :  { %s2764_s29 = smov [#allocation5]   ;;  %s2689_s7 = scalar_lea.hbm %s3286_s0, 1024 }
  0x14   :  { %s17_s30 = sshll.u32 %s2764_s29, 4  ;;  %p2690_p8 = scmp.ne.s32.totalorder %s3286_s0, %s2689_s7  ;;  %s18_s30 = int_to_ptr.vmem [resolvable:$true] %s17_s30 }
  0x15   :  { %p2693_p9 = scmp.lt.u32.totalorder %s2689_s7, %s3286_s0 }
  0x17   :  { %p2695_p10 = pnand %p2693_p9, %p2690_p8 }
  0x19   :  { %2698 = shalt.err (!%p2695_p10)
}
  0x1a   :  { %s2699_s12 = scalar_lea.vmem %s18_s30, 1024  ;;  %p2704_p12 = scmp.lt.s32.totalorder %s18_s30, %s18_s30 }
  0x1b   :  { %p2700_p11 = scmp.ne.s32.totalorder %s18_s30, %s2699_s12  ;;  %p2705_p13 = scmp.lt.s32.totalorder %s2699_s12, %s2699_s12 }
  0x1d   :  { %p2706_p0 = por %p2705_p13, %p2704_p12 }
  0x1f   :  { %p2707_p1 = pnand %p2706_p0, %p2700_p11 }
  0x21   :  { %2710 = shalt.err (!%p2707_p1)
}
  0x22   :  { %s2765_s1 = smov 128   ;;  %s2766_s13 = smov 8  }
  0x23   :  { %23 = dma.hbm_to_vmem [thread:$0]  %s3286_s0, 1024, %s18_s30, [#allocation6], %s2765_s1, %s2765_s1, %s2766_s13  }
  0x24   :  { %s2767_s16 = smov [#allocation10]   ;;  %s2711_s20 = scalar_lea.hbm %s3288_s2, 8192 }
  0x25   :  { %s41_s17 = sshll.u32 %s2767_s16, 4  ;;  %p2712_p2 = scmp.ne.s32.totalorder %s3288_s2, %s2711_s20  ;;  %s42_s17 = int_to_ptr.vmem [resolvable:$true] %s41_s17 }
  0x26   :  { %p2715_p3 = scmp.lt.u32.totalorder %s2711_s20, %s3288_s2 }
  0x28   :  { %p2717_p4 = pnand %p2715_p3, %p2712_p2 }
  0x2a   :  { %2720 = shalt.err (!%p2717_p4)
}
  0x2b   :  { %s2721_s27 = scalar_lea.vmem %s42_s17, 8192  ;;  %p2726_p6 = scmp.lt.s32.totalorder %s42_s17, %s42_s17 }
  0x2c   :  { %p2722_p5 = scmp.ne.s32.totalorder %s42_s17, %s2721_s27  ;;  %p2727_p7 = scmp.lt.s32.totalorder %s2721_s27, %s2721_s27 }
  0x2e   :  { %p2728_p8 = por %p2727_p7, %p2726_p6 }
  0x30   :  { %p2729_p9 = pnand %p2728_p8, %p2722_p5 }
  0x32   :  { %2732 = shalt.err (!%p2729_p9)
}
  0x33   :  { %47 = dma.hbm_to_vmem [thread:$0]  %s3288_s2, 8192, %s42_s17, [#allocation9], %s2762_s25, %s2762_s25, %s2763_s26  }
  0x34   :  { %2755 = dma.done.wait [#allocation6], 1024  }
  0x35   :  { %2756 = vsyncadd [#allocation6], 4294966272 }
  0x36   :  { %2757 = dma.done.wait [#allocation9], 9216  }
  0x37   :  { %2758 = vsyncadd [#allocation9], 4294958080  ;;  %v2768_v0 = vmov 0.0   ;;  %v74_v1 = vld [vmem:[#allocation8 + $0x8] sm:$0xff]  ;;  %v76_v3 = vld [vmem:[#allocation8 + $0x18] sm:$0xff]  ;;  %vm81_vm0 = vcmask 130048  }
  0x38   :  { %170 = vmatprep.mubr.f32.mxu0 %v2768_v0  ;;  %283 = vmatprep.mubr.f32.mxu1 %v2768_v0  ;;  %v78_v2 = vld [vmem:[#allocation8 + $0x28] sm:$0xff]  ;;  %v80_v5 = vld [vmem:[#allocation8 + $0x38] sm:$0xff]  ;;  %v73_v6 = vld [vmem:[#allocation8] sm:$0xff] }
  0x39   :  { %v1946_v4 = vpack.c.bf16 %v78_v2, %v74_v1  ;;  %v77_v7 = vld [vmem:[#allocation8 + $0x20] sm:$0xff]  ;;  %v1950_v8 = vpack.c.bf16 %v80_v5, %v76_v3  ;;  %v75_v10 = vld [vmem:[#allocation8 + $0x10] sm:$0xff]  ;;  %v425_v14 = vld [vmem:[#allocation10 + $0x8] sm:$0xff] }
  0x3a   :  { %v1948_v9 = vpack.c.bf16 %v77_v7, %v73_v6  ;;  %v79_v11 = vld [vmem:[#allocation8 + $0x30] sm:$0xff]  ;;  %v65_v12 = vld [vmem:[#allocation5] sm:$0xff]  ;;  %v429_v15 = vld [vmem:[#allocation10 + $0x28] sm:$0xff] }
  0x3b   :  { %1947 = vmatprep.subr.bf16.mxu0 %v1946_v4  ;;  %v1952_v13 = vpack.c.bf16 %v79_v11, %v75_v10  ;;  %v427_v16 = vld [vmem:[#allocation10 + $0x18] sm:$0xff]  ;;  %1951 = vmatprep.subr.bf16.mxu1 %v1950_v8  ;;  %v2839_v17 = vpack.c.bf16 %v429_v15, %v425_v14  ;;  %v424_v19 = vld [vmem:[#allocation10] sm:$0xff]  ;;  %v426_v23 = vld [vmem:[#allocation10 + $0x10] sm:$0xff] }
  0x3c   :  { %1949 = vmatpush1.bf16.msra.mxu0 %v1948_v9  ;;  %v431_v18 = vld [vmem:[#allocation10 + $0x38] sm:$0xff]  ;;  %v428_v20 = vld [vmem:[#allocation10 + $0x20] sm:$0xff]  ;;  %v430_v24 = vld [vmem:[#allocation10 + $0x30] sm:$0xff] }
  0x3d   :  { %1953 = vmatpush1.bf16.msra.mxu1 %v1952_v13  ;;  %v2841_v21 = vpack.c.bf16 %v431_v18, %v427_v16  ;;  %v2843_v22 = vpack.c.bf16 %v428_v20, %v424_v19  ;;  %1955 = vmatprep.subr.bf16.mxu0 %v2839_v17  ;;  %v2846_v25 = vpack.c.bf16 %v430_v24, %v426_v23  ;;  %v433_v26 = vld [vmem:[#allocation10 + $0x48] sm:$0xff]  ;;  %v435_v28 = vld [vmem:[#allocation10 + $0x58] sm:$0xff]  ;;  %v432_v31 = vld [vmem:[#allocation10 + $0x40] sm:$0xff] }
  0x3e   :  { %v437_v27 = vld [vmem:[#allocation10 + $0x68] sm:$0xff]  ;;  %v439_v30 = vld [vmem:[#allocation10 + $0x78] sm:$0xff]  ;;  %v436_v32 = vld [vmem:[#allocation10 + $0x60] sm:$0xff] }
  0x3f   :  { %1906 = vmatmul.mubr.msk.f32.vlgmr.msra.gmra.mrb[0].mxu0 %vm81_vm0, %v65_v12  ;;  %1987 = vmatprep.subr.bf16.mxu1 %v2841_v21  ;;  %v2850_v29 = vpack.c.bf16 %v437_v27, %v433_v26  ;;  %v66_v33 = vld [vmem:[#allocation5 + $0x8] sm:$0xff]  ;;  %v2854_v34 = vpack.c.bf16 %v439_v30, %v435_v28  ;;  %v2856_v35 = vpack.c.bf16 %v436_v32, %v432_v31  ;;  %v434_v36 = vld [vmem:[#allocation10 + $0x50] sm:$0xff]  ;;  %v443_v41 = vld [vmem:[#allocation10 + $0x98] sm:$0xff] }
  0x40   :  { %1914 = vmatmul.mubr.msk.f32.vlgmr.msra.gmra.mrb[0].mxu1 %vm81_vm0, %v65_v12  ;;  %1957 = vmatpush1.bf16.msra.mxu0 %v2843_v22  ;;  %v438_v37 = vld [vmem:[#allocation10 + $0x70] sm:$0xff]  ;;  %v441_v39 = vld [vmem:[#allocation10 + $0x88] sm:$0xff]  ;;  %v447_v43 = vld [vmem:[#allocation10 + $0xb8] sm:$0xff] }
  0x41   :  { %1989 = vmatpush1.bf16.msra.mxu1 %v2846_v25  ;;  %176 = vmatprep.mubr.f32.mxu0 %v2768_v0  ;;  %v2860_v38 = vpack.c.bf16 %v438_v37, %v434_v36  ;;  %v445_v40 = vld [vmem:[#allocation10 + $0xa8] sm:$0xff]  ;;  %v440_v44 = vld [vmem:[#allocation10 + $0x80] sm:$0xff]  ;;  %v67_v46 = vld [vmem:[#allocation5 + $0x10] sm:$0xff]  ;;  %v2868_v47 = vpack.c.bf16 %v447_v43, %v443_v41 }
  0x42   :  { %289 = vmatprep.mubr.f32.mxu1 %v2768_v0  ;;  %1959 = vmatprep.subr.bf16.mxu0 %v2850_v29  ;;  %v2864_v42 = vpack.c.bf16 %v445_v40, %v441_v39  ;;  %v444_v45 = vld [vmem:[#allocation10 + $0xa0] sm:$0xff]  ;;  %v442_v48 = vld [vmem:[#allocation10 + $0x90] sm:$0xff]  ;;  %v449_v51 = vld [vmem:[#allocation10 + $0xc8] sm:$0xff] }
  0x43   :  { %1907 = vmatmul.mubr.msk.f32.gmra.mrb[2].mxu0 %vm81_vm0, %v66_v33  ;;  %1991 = vmatprep.subr.bf16.mxu1 %v2854_v34  ;;  %v446_v49 = vld [vmem:[#allocation10 + $0xb0] sm:$0xff]  ;;  %v2872_v50 = vpack.c.bf16 %v444_v45, %v440_v44  ;;  %v453_v52 = vld [vmem:[#allocation10 + $0xe8] sm:$0xff]  ;;  %v451_v53 = vld [vmem:[#allocation10 + $0xd8] sm:$0xff] }
  0x44   :  { %1915 = vmatmul.mubr.msk.f32.gmra.mrb[2].mxu1 %vm81_vm0, %v66_v33  ;;  %1961 = vmatpush1.bf16.msra.mxu0 %v2856_v35  ;;  %v2876_v54 = vpack.c.bf16 %v446_v49, %v442_v48  ;;  %v455_v55 = vld [vmem:[#allocation10 + $0xf8] sm:$0xff]  ;;  %v448_v56 = vld [vmem:[#allocation10 + $0xc0] sm:$0xff]  ;;  %v2880_v58 = vpack.c.bf16 %v453_v52, %v449_v51  ;;  %v450_v59 = vld [vmem:[#allocation10 + $0xd0] sm:$0xff] }
  0x45   :  { %1993 = vmatpush1.bf16.msra.mxu1 %v2860_v38  ;;  %182 = vmatprep.mubr.f32.mxu0 %v2768_v0  ;;  %v452_v57 = vld [vmem:[#allocation10 + $0xe0] sm:$0xff]  ;;  %v454_v60 = vld [vmem:[#allocation10 + $0xf0] sm:$0xff]  ;;  %v2884_v61 = vpack.c.bf16 %v455_v55, %v451_v53  ;;  %v457_v62 = vld [vmem:[#allocation10 + $0x108] sm:$0xff] }
  0x46   :  { %295 = vmatprep.mubr.f32.mxu1 %v2768_v0  ;;  %1963 = vmatprep.subr.bf16.mxu0 %v2864_v42  ;;  %v461_v63 = vld [vmem:[#allocation10 + $0x128] sm:$0xff]  ;;  %v68_v1 = vld [vmem:[#allocation5 + $0x18] sm:$0xff]  ;;  %v2888_v2 = vpack.c.bf16 %v452_v57, %v448_v56  ;;  %v2892_v5 = vpack.c.bf16 %v454_v60, %v450_v59  ;;  %v456_v6 = vld [vmem:[#allocation10 + $0x100] sm:$0xff] }
  0x47   :  { %1908 = vmatmul.mubr.msk.f32.gmra.mrb[4].mxu0 %vm81_vm0, %v67_v46  ;;  %1995 = vmatprep.subr.bf16.mxu1 %v2868_v47  ;;  %v459_v3 = vld [vmem:[#allocation10 + $0x118] sm:$0xff]  ;;  %v460_v7 = vld [vmem:[#allocation10 + $0x120] sm:$0xff]  ;;  %v2896_v8 = vpack.c.bf16 %v461_v63, %v457_v62  ;;  %v458_v9 = vld [vmem:[#allocation10 + $0x110] sm:$0xff] }
  0x48   :  { %1916 = vmatmul.mubr.msk.f32.gmra.mrb[4].mxu1 %vm81_vm0, %v67_v46  ;;  %1965 = vmatpush1.bf16.msra.mxu0 %v2872_v50  ;;  %v463_v4 = vld [vmem:[#allocation10 + $0x138] sm:$0xff]  ;;  %v462_v10 = vld [vmem:[#allocation10 + $0x130] sm:$0xff]  ;;  %v465_v12 = vld [vmem:[#allocation10 + $0x148] sm:$0xff]  ;;  %v2904_v15 = vpack.c.bf16 %v460_v7, %v456_v6  ;;  %v334_v7 = vlaneseq }
  0x49   :  { %1997 = vmatpush1.bf16.msra.mxu1 %v2876_v54  ;;  %188 = vmatprep.mubr.f32.mxu0 %v2768_v0  ;;  %v2900_v11 = vpack.c.bf16 %v463_v4, %v459_v3  ;;  %v469_v13 = vld [vmem:[#allocation10 + $0x168] sm:$0xff]  ;;  %v69_v14 = vld [vmem:[#allocation5 + $0x20] sm:$0xff]  ;;  %v467_v16 = vld [vmem:[#allocation10 + $0x158] sm:$0xff]  ;;  %v2908_v19 = vpack.c.bf16 %v462_v10, %v458_v9 }
  0x4a   :  { %301 = vmatprep.mubr.f32.mxu1 %v2768_v0  ;;  %1967 = vmatprep.subr.bf16.mxu0 %v2880_v58  ;;  %v471_v18 = vld [vmem:[#allocation10 + $0x178] sm:$0xff]  ;;  %v464_v20 = vld [vmem:[#allocation10 + $0x140] sm:$0xff]  ;;  %v2912_v24 = vpack.c.bf16 %v469_v13, %v465_v12  ;;  %v466_v26 = vld [vmem:[#allocation10 + $0x150] sm:$0xff]  ;;  %v335_v9 = vshrl.u32 %v334_v7, 7 }
  0x4b   :  { %1909 = vmatmul.mubr.msk.f32.gmra.mrb[6].mxu0 %vm81_vm0, %v68_v1  ;;  %1999 = vmatprep.subr.bf16.mxu1 %v2884_v61  ;;  %v468_v23 = vld [vmem:[#allocation10 + $0x160] sm:$0xff]  ;;  %v470_v27 = vld [vmem:[#allocation10 + $0x170] sm:$0xff]  ;;  %v2916_v28 = vpack.c.bf16 %v471_v18, %v467_v16  ;;  %v473_v30 = vld [vmem:[#allocation10 + $0x188] sm:$0xff] }
  0x4c   :  { %1917 = vmatmul.mubr.msk.f32.gmra.mrb[6].mxu1 %vm81_vm0, %v68_v1  ;;  %1969 = vmatpush1.bf16.msra.mxu0 %v2888_v2  ;;  %v477_v31 = vld [vmem:[#allocation10 + $0x1a8] sm:$0xff]  ;;  %v2920_v33 = vpack.c.bf16 %v468_v23, %v464_v20  ;;  %v475_v36 = vld [vmem:[#allocation10 + $0x198] sm:$0xff]  ;;  %v2924_v39 = vpack.c.bf16 %v470_v27, %v466_v26  ;;  %v472_v40 = vld [vmem:[#allocation10 + $0x180] sm:$0xff]  ;;  %v336_v10 = vsub.s32 0, %v335_v9  ;;  %v340_v13 = vsub.s32 1, %v335_v9 }
  0x4d   :  { %2001 = vmatpush1.bf16.msra.mxu1 %v2892_v5  ;;  %194 = vmatprep.mubr.f32.mxu0 %v2768_v0  ;;  %v70_v32 = vld [vmem:[#allocation5 + $0x28] sm:$0xff]  ;;  %v479_v37 = vld [vmem:[#allocation10 + $0x1b8] sm:$0xff]  ;;  %v476_v41 = vld [vmem:[#allocation10 + $0x1a0] sm:$0xff]  ;;  %v2928_v43 = vpack.c.bf16 %v477_v31, %v473_v30  ;;  %v348_v20 = vsub.s32 3, %v335_v9 }
  0x4e   :  { %307 = vmatprep.mubr.f32.mxu1 %v2768_v0  ;;  %1971 = vmatprep.subr.bf16.mxu0 %v2896_v8  ;;  %v474_v44 = vld [vmem:[#allocation10 + $0x190] sm:$0xff]  ;;  %v2932_v46 = vpack.c.bf16 %v479_v37, %v475_v36  ;;  %v481_v48 = vld [vmem:[#allocation10 + $0x1c8] sm:$0xff]  ;;  %v2936_v52 = vpack.c.bf16 %v476_v41, %v472_v40  ;;  %v483_v53 = vld [vmem:[#allocation10 + $0x1d8] sm:$0xff]  ;;  %v344_v40 = vsub.s32 2, %v335_v9 }
  0x4f   :  { %1910 = vmatmul.mubr.msk.f32.gmra.mrb[8].mxu0 %vm81_vm0, %v69_v14  ;;  %2003 = vmatprep.subr.bf16.mxu1 %v2900_v11  ;;  %v478_v45 = vld [vmem:[#allocation10 + $0x1b0] sm:$0xff]  ;;  %v485_v49 = vld [vmem:[#allocation10 + $0x1e8] sm:$0xff]  ;;  %v487_v55 = vld [vmem:[#allocation10 + $0x1f8] sm:$0xff] }
  0x50   :  { %1918 = vmatmul.mubr.msk.f32.gmra.mrb[8].mxu1 %vm81_vm0, %v69_v14  ;;  %1973 = vmatpush1.bf16.msra.mxu0 %v2904_v15  ;;  %v71_v51 = vld [vmem:[#allocation5 + $0x30] sm:$0xff]  ;;  %v2940_v56 = vpack.c.bf16 %v478_v45, %v474_v44  ;;  %v480_v57 = vld [vmem:[#allocation10 + $0x1c0] sm:$0xff]  ;;  %v2944_v60 = vpack.c.bf16 %v485_v49, %v481_v48  ;;  %v2948_v1 = vpack.c.bf16 %v487_v55, %v483_v53  ;;  %v72_v3 = vld [vmem:[#allocation5 + $0x38] sm:$0xff] }
  0x51   :  { %2005 = vmatpush1.bf16.msra.mxu1 %v2908_v19  ;;  %200 = vmatprep.mubr.f32.mxu0 %v2768_v0  ;;  %v484_v59 = vld [vmem:[#allocation10 + $0x1e0] sm:$0xff]  ;;  %v482_v62 = vld [vmem:[#allocation10 + $0x1d0] sm:$0xff] }
  0x52   :  { %313 = vmatprep.mubr.f32.mxu1 %v2768_v0  ;;  %1975 = vmatprep.subr.bf16.mxu0 %v2912_v24  ;;  %v486_v63 = vld [vmem:[#allocation10 + $0x1f0] sm:$0xff]  ;;  %v2952_v4 = vpack.c.bf16 %v484_v59, %v480_v57  ;;  %v332_v12 = vld [vmem:[%s3289_s3] sm:$0xf]  ;;  %s2769_s3 = smov [#allocation11]  }
  0x53   :  { %1911 = vmatmul.mubr.msk.f32.gmra.mrb[10].mxu0 %vm81_vm0, %v70_v32  ;;  %2007 = vmatprep.subr.bf16.mxu1 %v2916_v28  ;;  %v2956_v6 = vpack.c.bf16 %v486_v63, %v482_v62  ;;  %v3008_v14 = vrot.slane %v332_v12, %v336_v10  ;;  %v3010_v16 = vrot.slane %v332_v12, %v340_v13  ;;  %s1896_s26 = sshll.u32 %s2769_s3, 4  ;;  %s1897_s26 = int_to_ptr.vmem [resolvable:$true] %s1896_s26 }
  0x54   :  { %1919 = vmatmul.mubr.msk.f32.gmra.mrb[10].mxu1 %vm81_vm0, %v70_v32  ;;  %1977 = vmatpush1.bf16.msra.mxu0 %v2920_v33  ;;  %v3014_v37 = vrot.slane %v332_v12, %v348_v20  ;;  %v3017_v44 = vrot.slane %v332_v12, %v344_v40  ;;  %s2733_s29 = scalar_lea.vmem %s1897_s26, 128  ;;  %p2738_p11 = scmp.lt.s32.totalorder %s1897_s26, %s1897_s26 }
  0x55   :  { %2009 = vmatpush1.bf16.msra.mxu1 %v2924_v39  ;;  %206 = vmatprep.mubr.f32.mxu0 %v2768_v0  ;;  %p2734_p10 = scmp.ne.s32.totalorder %s1897_s26, %s2733_s29  ;;  %p2739_p12 = scmp.lt.s32.totalorder %s2733_s29, %s2733_s29 }
  0x56   :  { %319 = vmatprep.mubr.f32.mxu1 %v2768_v0  ;;  %1979 = vmatprep.subr.bf16.mxu0 %v2928_v43 }
  0x57   :  { %1912 = vmatmul.mubr.msk.f32.gmra.mrb[12].mxu0 %vm81_vm0, %v71_v51  ;;  %2011 = vmatprep.subr.bf16.mxu1 %v2932_v46  ;;  %p2740_p13 = por %p2739_p12, %p2738_p11 }
  0x58   :  { %1920 = vmatmul.mubr.msk.f32.gmra.mrb[12].mxu1 %vm81_vm0, %v71_v51  ;;  %1981 = vmatpush1.bf16.msra.mxu0 %v2936_v52 }
  0x59   :  { %2013 = vmatpush1.bf16.msra.mxu1 %v2940_v56  ;;  %212 = vmatprep.mubr.f32.mxu0 %v2768_v0  ;;  %p2741_p0 = pnand %p2740_p13, %p2734_p10 }
  0x5a   :  { %325 = vmatprep.mubr.f32.mxu1 %v2768_v0  ;;  %1983 = vmatprep.subr.bf16.mxu0 %v2944_v60 }
  0x5b   :  { %1913 = vmatmul.mubr.msk.f32.gmra.mrb[14].mxu0 %vm81_vm0, %v72_v3  ;;  %2015 = vmatprep.subr.bf16.mxu1 %v2948_v1 }
  0x5c   :  { %1921 = vmatmul.mubr.msk.f32.gmra.mrb[14].mxu1 %vm81_vm0, %v72_v3  ;;  %1985 = vmatpush1.bf16.msra.mxu0 %v2952_v4 }
  0x5d   :  { %2017 = vmatpush1.bf16.msra.mxu1 %v2956_v6  ;;  %552 = vmatprep.mubr.f32.mxu0 %v2768_v0 }
  0x5e   :  { %623 = vmatprep.mubr.f32.mxu1 %v2768_v0  ;;  %2019 = vmatprep.subr.bf16.mxu0 %v2839_v17 }
  0x5f   :  { %553 = vmatmul.mubr.f32.vlgmr.msra.gmra.mrb[0].mxu0 %v2768_v0  ;;  %2051 = vmatprep.subr.bf16.mxu1 %v2841_v21 }
  0x60   :  { %624 = vmatmul.mubr.f32.vlgmr.msra.gmra.mrb[0].mxu1 %v2768_v0  ;;  %2021 = vmatpush1.bf16.msra.mxu0 %v2843_v22 }
  0x61   :  { %2053 = vmatpush1.bf16.msra.mxu1 %v2846_v25  ;;  %2023 = vmatprep.subr.bf16.mxu0 %v2850_v29 }
  0x62   :  { %2055 = vmatprep.subr.bf16.mxu1 %v2854_v34  ;;  %727 = vmatprep.mubr.f32.mxu0 %v2768_v0 }
  0x63   :  { %798 = vmatprep.mubr.f32.mxu1 %v2768_v0 }
  0x64   :  { %2025 = vmatpush1.bf16.msra.mxu0 %v2856_v35 }
  0x65   :  { %2057 = vmatpush1.bf16.msra.mxu1 %v2860_v38  ;;  %2027 = vmatprep.subr.bf16.mxu0 %v2864_v42 }
  0x66   :  { %2059 = vmatprep.subr.bf16.mxu1 %v2868_v47 }
  0x68   :  { %2029 = vmatpush1.bf16.msra.mxu0 %v2872_v50 }
  0x69   :  { %2061 = vmatpush1.bf16.msra.mxu1 %v2876_v54  ;;  %2031 = vmatprep.subr.bf16.mxu0 %v2880_v58 }
  0x6a   :  { %2063 = vmatprep.subr.bf16.mxu1 %v2884_v61 }
  0x6c   :  { %2033 = vmatpush1.bf16.msra.mxu0 %v2888_v2 }
  0x6d   :  { %2065 = vmatpush1.bf16.msra.mxu1 %v2892_v5  ;;  %2035 = vmatprep.subr.bf16.mxu0 %v2896_v8 }
  0x6e   :  { %2067 = vmatprep.subr.bf16.mxu1 %v2900_v11 }
  0x70   :  { %2037 = vmatpush1.bf16.msra.mxu0 %v2904_v15 }
  0x71   :  { %2069 = vmatpush1.bf16.msra.mxu1 %v2908_v19  ;;  %2039 = vmatprep.subr.bf16.mxu0 %v2912_v24 }
  0x72   :  { %2071 = vmatprep.subr.bf16.mxu1 %v2916_v28 }
  0x74   :  { %2041 = vmatpush1.bf16.msra.mxu0 %v2920_v33 }
  0x75   :  { %2073 = vmatpush1.bf16.msra.mxu1 %v2924_v39  ;;  %2043 = vmatprep.subr.bf16.mxu0 %v2928_v43 }
  0x76   :  { %2075 = vmatprep.subr.bf16.mxu1 %v2932_v46 }
  0x78   :  { %2045 = vmatpush1.bf16.msra.mxu0 %v2936_v52 }
  0x79   :  { %2077 = vmatpush1.bf16.msra.mxu1 %v2940_v56  ;;  %2047 = vmatprep.subr.bf16.mxu0 %v2944_v60 }
  0x7a   :  { %2079 = vmatprep.subr.bf16.mxu1 %v2948_v1 }
  0x7c   :  { %2049 = vmatpush1.bf16.msra.mxu0 %v2952_v4 }
  0x7d   :  { %2081 = vmatpush1.bf16.msra.mxu1 %v2956_v6  ;;  %2083 = vmatprep.subr.bf16.mxu0 %v2839_v17 }
  0x7e   :  { %2115 = vmatprep.subr.bf16.mxu1 %v2841_v21 }
 0x132   :  { %v554_v18 = vpop.f32.mrb[0].mxu0 }
 0x133   :  { %v2466_v23 = vadd.f32 %v554_v18, %v3008_v14  ;;  %v625_v26 = vpop.f32.mrb[0].mxu1  ;;  %v556_v27 = vpop.f32.mrb[1].mxu0 }
 0x134   :  { %v2467_v30 = vadd.f32 %v556_v27, %v3010_v16  ;;  %v627_v31 = vpop.f32.mrb[1].mxu1  ;;  %v2482_v48 = vadd.f32 %v625_v26, %v3017_v44 }
 0x135   :  { %v1922_v32 = vmul.f32 -1.442695, %v2466_v23  ;;  %v2483_v41 = vadd.f32 %v627_v31, %v3014_v37 }
 0x136   :  { %v1923_v36 = vmul.f32 -1.442695, %v2467_v30 }
 0x137   :  { %2539 = vpow2.f32 %v1922_v32  ;;  %v1924_v45 = vmul.f32 -1.442695, %v2483_v41 }
 0x138   :  { %2541 = vpow2.f32 %v1923_v36 }
 0x139   :  { %2543 = vpow2.f32 %v1924_v45 }
 0x13a   :  { %2545 = vtanh.f32 %v2482_v48 }
 0x141   :  { %v2540_v49 = vpop.eup %2539 }
 0x142   :  { %v2542_v51 = vpop.eup %2541  ;;  %v637_v53 = vadd.f32 1.0, %v2540_v49 }
 0x143   :  { %v643_v55 = vadd.f32 1.0, %v2542_v51  ;;  %v2544_v57 = vpop.eup %2543 }
 0x144   :  { %2547 = vrcp.f32 %v637_v53  ;;  %v2546_v59 = vpop.eup %2545  ;;  %v650_v7 = vadd.f32 1.0, %v2544_v57 }
 0x145   :  { %2549 = vrcp.f32 %v643_v55 }
 0x146   :  { %2551 = vrcp.f32 %v650_v7 }
 0x14e   :  { %v2548_v62 = vpop.eup %2547 }
 0x14f   :  { %v2550_v63 = vpop.eup %2549  ;;  %v654_v3 = vmul.f32 %v2548_v62, %v2546_v59 }
 0x150   :  { %v653_v9 = vmul.f32 0.0, %v2550_v63  ;;  %v2552_v12 = vpop.eup %2551 }
 0x152   :  { %v3020_v10 = vadd.f32 %v654_v3, %v653_v9 }
 0x154   :  { %2553 = vtanh.f32 %v3020_v10 }
 0x15e   :  { %v2554_v13 = vpop.eup %2553 }
 0x15f   :  { %v657_v18 = vmul.f32 %v2554_v13, %v2552_v12 }
 0x161   :  { %728 = vmatmul.mubr.f32.vlgmr.msra.gmra.mrb[2].mxu0 %v657_v18  ;;  %799 = vmatmul.mubr.f32.vlgmr.msra.gmra.mrb[2].mxu1 %v657_v18 }
 0x162   :  { %2085 = vmatpush1.bf16.msra.mxu0 %v2843_v22  ;;  %2117 = vmatpush1.bf16.msra.mxu1 %v2846_v25 }
 0x163   :  { %2087 = vmatprep.subr.bf16.mxu0 %v2850_v29  ;;  %2119 = vmatprep.subr.bf16.mxu1 %v2854_v34 }
 0x164   :  { %902 = vmatprep.mubr.f32.mxu0 %v2768_v0  ;;  %973 = vmatprep.mubr.f32.mxu1 %v2768_v0 }
 0x166   :  { %2089 = vmatpush1.bf16.msra.mxu0 %v2856_v35  ;;  %2121 = vmatpush1.bf16.msra.mxu1 %v2860_v38 }
 0x167   :  { %2091 = vmatprep.subr.bf16.mxu0 %v2864_v42  ;;  %2123 = vmatprep.subr.bf16.mxu1 %v2868_v47 }
 0x16a   :  { %2093 = vmatpush1.bf16.msra.mxu0 %v2872_v50  ;;  %2125 = vmatpush1.bf16.msra.mxu1 %v2876_v54 }
 0x16b   :  { %2095 = vmatprep.subr.bf16.mxu0 %v2880_v58  ;;  %2127 = vmatprep.subr.bf16.mxu1 %v2884_v61 }
 0x16e   :  { %2097 = vmatpush1.bf16.msra.mxu0 %v2888_v2  ;;  %2129 = vmatpush1.bf16.msra.mxu1 %v2892_v5 }
 0x16f   :  { %2099 = vmatprep.subr.bf16.mxu0 %v2896_v8  ;;  %2131 = vmatprep.subr.bf16.mxu1 %v2900_v11 }
 0x172   :  { %2101 = vmatpush1.bf16.msra.mxu0 %v2904_v15  ;;  %2133 = vmatpush1.bf16.msra.mxu1 %v2908_v19 }
 0x173   :  { %2103 = vmatprep.subr.bf16.mxu0 %v2912_v24  ;;  %2135 = vmatprep.subr.bf16.mxu1 %v2916_v28 }
 0x176   :  { %2105 = vmatpush1.bf16.msra.mxu0 %v2920_v33  ;;  %2137 = vmatpush1.bf16.msra.mxu1 %v2924_v39 }
 0x177   :  { %2107 = vmatprep.subr.bf16.mxu0 %v2928_v43  ;;  %2139 = vmatprep.subr.bf16.mxu1 %v2932_v46 }
 0x17a   :  { %2109 = vmatpush1.bf16.msra.mxu0 %v2936_v52  ;;  %2141 = vmatpush1.bf16.msra.mxu1 %v2940_v56 }
 0x17b   :  { %2111 = vmatprep.subr.bf16.mxu0 %v2944_v60  ;;  %2143 = vmatprep.subr.bf16.mxu1 %v2948_v1 }
 0x17e   :  { %2113 = vmatpush1.bf16.msra.mxu0 %v2952_v4  ;;  %2145 = vmatpush1.bf16.msra.mxu1 %v2956_v6 }
 0x17f   :  { %2147 = vmatprep.subr.bf16.mxu0 %v2839_v17  ;;  %2179 = vmatprep.subr.bf16.mxu1 %v2841_v21 }
 0x234   :  { %v729_v20 = vpop.f32.mrb[2].mxu0  ;;  %v800_v23 = vpop.f32.mrb[2].mxu1 }
 0x235   :  { %v2468_v26 = vadd.f32 %v729_v20, %v3008_v14  ;;  %v731_v27 = vpop.f32.mrb[3].mxu0  ;;  %v802_v30 = vpop.f32.mrb[3].mxu1  ;;  %v2484_v45 = vadd.f32 %v800_v23, %v3017_v44 }
 0x236   :  { %v2469_v31 = vadd.f32 %v731_v27, %v3010_v16  ;;  %v2485_v40 = vadd.f32 %v802_v30, %v3014_v37 }
 0x237   :  { %v1925_v32 = vmul.f32 -1.442695, %v2468_v26 }
 0x238   :  { %v1926_v36 = vmul.f32 -1.442695, %v2469_v31  ;;  %v1927_v41 = vmul.f32 -1.442695, %v2485_v40 }
 0x239   :  { %2555 = vpow2.f32 %v1925_v32 }
 0x23a   :  { %2557 = vpow2.f32 %v1926_v36 }
 0x23b   :  { %2559 = vpow2.f32 %v1927_v41 }
 0x23c   :  { %2561 = vtanh.f32 %v2484_v45 }
 0x243   :  { %v2556_v48 = vpop.eup %2555 }
 0x244   :  { %v2558_v49 = vpop.eup %2557  ;;  %v812_v51 = vadd.f32 1.0, %v2556_v48 }
 0x245   :  { %v818_v53 = vadd.f32 1.0, %v2558_v49  ;;  %v2560_v55 = vpop.eup %2559 }
 0x246   :  { %2563 = vrcp.f32 %v812_v51  ;;  %v2562_v57 = vpop.eup %2561  ;;  %v825_v3 = vadd.f32 1.0, %v2560_v55 }
 0x247   :  { %2565 = vrcp.f32 %v818_v53 }
 0x248   :  { %2567 = vrcp.f32 %v825_v3 }
 0x250   :  { %v2564_v59 = vpop.eup %2563 }
 0x251   :  { %v2566_v62 = vpop.eup %2565  ;;  %v829_v63 = vmul.f32 %v2564_v59, %v2562_v57 }
 0x252   :  { %v828_v7 = vmul.f32 %v2566_v62, %v3020_v10  ;;  %v2568_v12 = vpop.eup %2567 }
 0x254   :  { %v3062_v9 = vadd.f32 %v829_v63, %v828_v7 }
 0x256   :  { %2569 = vtanh.f32 %v3062_v9 }
 0x260   :  { %v2570_v13 = vpop.eup %2569 }
 0x261   :  { %v832_v18 = vmul.f32 %v2570_v13, %v2568_v12 }
 0x263   :  { %903 = vmatmul.mubr.f32.vlgmr.msra.gmra.mrb[4].mxu0 %v832_v18  ;;  %974 = vmatmul.mubr.f32.vlgmr.msra.gmra.mrb[4].mxu1 %v832_v18 }
 0x264   :  { %2149 = vmatpush1.bf16.msra.mxu0 %v2843_v22  ;;  %2181 = vmatpush1.bf16.msra.mxu1 %v2846_v25 }
 0x265   :  { %2151 = vmatprep.subr.bf16.mxu0 %v2850_v29  ;;  %2183 = vmatprep.subr.bf16.mxu1 %v2854_v34 }
 0x266   :  { %1077 = vmatprep.mubr.f32.mxu0 %v2768_v0  ;;  %1148 = vmatprep.mubr.f32.mxu1 %v2768_v0 }
 0x268   :  { %2153 = vmatpush1.bf16.msra.mxu0 %v2856_v35  ;;  %2185 = vmatpush1.bf16.msra.mxu1 %v2860_v38 }
 0x269   :  { %2155 = vmatprep.subr.bf16.mxu0 %v2864_v42  ;;  %2187 = vmatprep.subr.bf16.mxu1 %v2868_v47 }
 0x26c   :  { %2157 = vmatpush1.bf16.msra.mxu0 %v2872_v50  ;;  %2189 = vmatpush1.bf16.msra.mxu1 %v2876_v54 }
 0x26d   :  { %2159 = vmatprep.subr.bf16.mxu0 %v2880_v58  ;;  %2191 = vmatprep.subr.bf16.mxu1 %v2884_v61 }
 0x270   :  { %2161 = vmatpush1.bf16.msra.mxu0 %v2888_v2  ;;  %2193 = vmatpush1.bf16.msra.mxu1 %v2892_v5 }
 0x271   :  { %2163 = vmatprep.subr.bf16.mxu0 %v2896_v8  ;;  %2195 = vmatprep.subr.bf16.mxu1 %v2900_v11 }
 0x274   :  { %2165 = vmatpush1.bf16.msra.mxu0 %v2904_v15  ;;  %2197 = vmatpush1.bf16.msra.mxu1 %v2908_v19 }
 0x275   :  { %2167 = vmatprep.subr.bf16.mxu0 %v2912_v24  ;;  %2199 = vmatprep.subr.bf16.mxu1 %v2916_v28 }
 0x278   :  { %2169 = vmatpush1.bf16.msra.mxu0 %v2920_v33  ;;  %2201 = vmatpush1.bf16.msra.mxu1 %v2924_v39 }
 0x279   :  { %2171 = vmatprep.subr.bf16.mxu0 %v2928_v43  ;;  %2203 = vmatprep.subr.bf16.mxu1 %v2932_v46 }
 0x27c   :  { %2173 = vmatpush1.bf16.msra.mxu0 %v2936_v52  ;;  %2205 = vmatpush1.bf16.msra.mxu1 %v2940_v56 }
 0x27d   :  { %2175 = vmatprep.subr.bf16.mxu0 %v2944_v60  ;;  %2207 = vmatprep.subr.bf16.mxu1 %v2948_v1 }
 0x280   :  { %2177 = vmatpush1.bf16.msra.mxu0 %v2952_v4  ;;  %2209 = vmatpush1.bf16.msra.mxu1 %v2956_v6 }
 0x281   :  { %2211 = vmatprep.subr.bf16.mxu0 %v2839_v17  ;;  %2243 = vmatprep.subr.bf16.mxu1 %v2841_v21 }
 0x336   :  { %v904_v10 = vpop.f32.mrb[4].mxu0  ;;  %v975_v20 = vpop.f32.mrb[4].mxu1 }
 0x337   :  { %v2470_v23 = vadd.f32 %v904_v10, %v3008_v14  ;;  %v906_v26 = vpop.f32.mrb[5].mxu0  ;;  %v977_v27 = vpop.f32.mrb[5].mxu1  ;;  %v2486_v41 = vadd.f32 %v975_v20, %v3017_v44 }
 0x338   :  { %v2471_v30 = vadd.f32 %v906_v26, %v3010_v16  ;;  %v2487_v36 = vadd.f32 %v977_v27, %v3014_v37 }
 0x339   :  { %v1928_v31 = vmul.f32 -1.442695, %v2470_v23 }
 0x33a   :  { %v1929_v32 = vmul.f32 -1.442695, %v2471_v30  ;;  %v1930_v40 = vmul.f32 -1.442695, %v2487_v36 }
 0x33b   :  { %2571 = vpow2.f32 %v1928_v31 }
 0x33c   :  { %2573 = vpow2.f32 %v1929_v32 }
 0x33d   :  { %2575 = vpow2.f32 %v1930_v40 }
 0x33e   :  { %2577 = vtanh.f32 %v2486_v41 }
 0x345   :  { %v2572_v45 = vpop.eup %2571 }
 0x346   :  { %v2574_v48 = vpop.eup %2573  ;;  %v987_v49 = vadd.f32 1.0, %v2572_v45 }
 0x347   :  { %v993_v51 = vadd.f32 1.0, %v2574_v48  ;;  %v2576_v53 = vpop.eup %2575 }
 0x348   :  { %2579 = vrcp.f32 %v987_v49  ;;  %v2578_v55 = vpop.eup %2577  ;;  %v1000_v63 = vadd.f32 1.0, %v2576_v53 }
 0x349   :  { %2581 = vrcp.f32 %v993_v51 }
 0x34a   :  { %2583 = vrcp.f32 %v1000_v63 }
 0x352   :  { %v2580_v57 = vpop.eup %2579 }
 0x353   :  { %v2582_v59 = vpop.eup %2581  ;;  %v1004_v62 = vmul.f32 %v2580_v57, %v2578_v55 }
 0x354   :  { %v1003_v3 = vmul.f32 %v2582_v59, %v3062_v9  ;;  %v2584_v12 = vpop.eup %2583 }
 0x356   :  { %v3104_v7 = vadd.f32 %v1004_v62, %v1003_v3 }
 0x358   :  { %2585 = vtanh.f32 %v3104_v7 }
 0x362   :  { %v2586_v13 = vpop.eup %2585 }
 0x363   :  { %v1007_v18 = vmul.f32 %v2586_v13, %v2584_v12 }
 0x365   :  { %1078 = vmatmul.mubr.f32.vlgmr.msra.gmra.mrb[6].mxu0 %v1007_v18  ;;  %1149 = vmatmul.mubr.f32.vlgmr.msra.gmra.mrb[6].mxu1 %v1007_v18 }
 0x366   :  { %2213 = vmatpush1.bf16.msra.mxu0 %v2843_v22  ;;  %2245 = vmatpush1.bf16.msra.mxu1 %v2846_v25 }
 0x367   :  { %2215 = vmatprep.subr.bf16.mxu0 %v2850_v29  ;;  %2247 = vmatprep.subr.bf16.mxu1 %v2854_v34 }
 0x368   :  { %1252 = vmatprep.mubr.f32.mxu0 %v2768_v0  ;;  %1323 = vmatprep.mubr.f32.mxu1 %v2768_v0 }
 0x36a   :  { %2217 = vmatpush1.bf16.msra.mxu0 %v2856_v35  ;;  %2249 = vmatpush1.bf16.msra.mxu1 %v2860_v38 }
 0x36b   :  { %2219 = vmatprep.subr.bf16.mxu0 %v2864_v42  ;;  %2251 = vmatprep.subr.bf16.mxu1 %v2868_v47 }
 0x36e   :  { %2221 = vmatpush1.bf16.msra.mxu0 %v2872_v50  ;;  %2253 = vmatpush1.bf16.msra.mxu1 %v2876_v54 }
 0x36f   :  { %2223 = vmatprep.subr.bf16.mxu0 %v2880_v58  ;;  %2255 = vmatprep.subr.bf16.mxu1 %v2884_v61 }
 0x372   :  { %2225 = vmatpush1.bf16.msra.mxu0 %v2888_v2  ;;  %2257 = vmatpush1.bf16.msra.mxu1 %v2892_v5 }
 0x373   :  { %2227 = vmatprep.subr.bf16.mxu0 %v2896_v8  ;;  %2259 = vmatprep.subr.bf16.mxu1 %v2900_v11 }
 0x376   :  { %2229 = vmatpush1.bf16.msra.mxu0 %v2904_v15  ;;  %2261 = vmatpush1.bf16.msra.mxu1 %v2908_v19 }
 0x377   :  { %2231 = vmatprep.subr.bf16.mxu0 %v2912_v24  ;;  %2263 = vmatprep.subr.bf16.mxu1 %v2916_v28 }
 0x37a   :  { %2233 = vmatpush1.bf16.msra.mxu0 %v2920_v33  ;;  %2265 = vmatpush1.bf16.msra.mxu1 %v2924_v39 }
 0x37b   :  { %2235 = vmatprep.subr.bf16.mxu0 %v2928_v43  ;;  %2267 = vmatprep.subr.bf16.mxu1 %v2932_v46 }
 0x37e   :  { %2237 = vmatpush1.bf16.msra.mxu0 %v2936_v52  ;;  %2269 = vmatpush1.bf16.msra.mxu1 %v2940_v56 }
 0x37f   :  { %2239 = vmatprep.subr.bf16.mxu0 %v2944_v60  ;;  %2271 = vmatprep.subr.bf16.mxu1 %v2948_v1 }
 0x382   :  { %2241 = vmatpush1.bf16.msra.mxu0 %v2952_v4  ;;  %2273 = vmatpush1.bf16.msra.mxu1 %v2956_v6 }
 0x383   :  { %2275 = vmatprep.subr.bf16.mxu0 %v2839_v17  ;;  %2307 = vmatprep.subr.bf16.mxu1 %v2841_v21 }
 0x438   :  { %v1079_v9 = vpop.f32.mrb[6].mxu0  ;;  %v1150_v10 = vpop.f32.mrb[6].mxu1 }
 0x439   :  { %v2472_v20 = vadd.f32 %v1079_v9, %v3008_v14  ;;  %v1081_v23 = vpop.f32.mrb[7].mxu0  ;;  %v1152_v26 = vpop.f32.mrb[7].mxu1  ;;  %v2488_v40 = vadd.f32 %v1150_v10, %v3017_v44 }
 0x43a   :  { %v2473_v27 = vadd.f32 %v1081_v23, %v3010_v16  ;;  %v2489_v32 = vadd.f32 %v1152_v26, %v3014_v37 }
 0x43b   :  { %v1931_v30 = vmul.f32 -1.442695, %v2472_v20 }
 0x43c   :  { %v1932_v31 = vmul.f32 -1.442695, %v2473_v27  ;;  %v1933_v36 = vmul.f32 -1.442695, %v2489_v32 }
 0x43d   :  { %2587 = vpow2.f32 %v1931_v30 }
 0x43e   :  { %2589 = vpow2.f32 %v1932_v31 }
 0x43f   :  { %2591 = vpow2.f32 %v1933_v36 }
 0x440   :  { %2593 = vtanh.f32 %v2488_v40 }
 0x447   :  { %v2588_v41 = vpop.eup %2587 }
 0x448   :  { %v2590_v45 = vpop.eup %2589  ;;  %v1162_v48 = vadd.f32 1.0, %v2588_v41 }
 0x449   :  { %v1168_v49 = vadd.f32 1.0, %v2590_v45  ;;  %v2592_v51 = vpop.eup %2591 }
 0x44a   :  { %2595 = vrcp.f32 %v1162_v48  ;;  %v2594_v53 = vpop.eup %2593  ;;  %v1175_v62 = vadd.f32 1.0, %v2592_v51 }
 0x44b   :  { %2597 = vrcp.f32 %v1168_v49 }
 0x44c   :  { %2599 = vrcp.f32 %v1175_v62 }
 0x454   :  { %v2596_v55 = vpop.eup %2595 }
 0x455   :  { %v2598_v57 = vpop.eup %2597  ;;  %v1179_v59 = vmul.f32 %v2596_v55, %v2594_v53 }
 0x456   :  { %v1178_v63 = vmul.f32 %v2598_v57, %v3104_v7  ;;  %v2600_v12 = vpop.eup %2599 }
 0x458   :  { %v3146_v3 = vadd.f32 %v1179_v59, %v1178_v63 }
 0x45a   :  { %2601 = vtanh.f32 %v3146_v3 }
 0x464   :  { %v2602_v13 = vpop.eup %2601 }
 0x465   :  { %v1182_v18 = vmul.f32 %v2602_v13, %v2600_v12 }
 0x467   :  { %1253 = vmatmul.mubr.f32.vlgmr.msra.gmra.mrb[8].mxu0 %v1182_v18  ;;  %1324 = vmatmul.mubr.f32.vlgmr.msra.gmra.mrb[8].mxu1 %v1182_v18 }
 0x468   :  { %2277 = vmatpush1.bf16.msra.mxu0 %v2843_v22  ;;  %2309 = vmatpush1.bf16.msra.mxu1 %v2846_v25 }
 0x469   :  { %2279 = vmatprep.subr.bf16.mxu0 %v2850_v29  ;;  %2311 = vmatprep.subr.bf16.mxu1 %v2854_v34 }
 0x46a   :  { %1427 = vmatprep.mubr.f32.mxu0 %v2768_v0  ;;  %1498 = vmatprep.mubr.f32.mxu1 %v2768_v0 }
 0x46c   :  { %2281 = vmatpush1.bf16.msra.mxu0 %v2856_v35  ;;  %2313 = vmatpush1.bf16.msra.mxu1 %v2860_v38 }
 0x46d   :  { %2283 = vmatprep.subr.bf16.mxu0 %v2864_v42  ;;  %2315 = vmatprep.subr.bf16.mxu1 %v2868_v47 }
 0x470   :  { %2285 = vmatpush1.bf16.msra.mxu0 %v2872_v50  ;;  %2317 = vmatpush1.bf16.msra.mxu1 %v2876_v54 }
 0x471   :  { %2287 = vmatprep.subr.bf16.mxu0 %v2880_v58  ;;  %2319 = vmatprep.subr.bf16.mxu1 %v2884_v61 }
 0x474   :  { %2289 = vmatpush1.bf16.msra.mxu0 %v2888_v2  ;;  %2321 = vmatpush1.bf16.msra.mxu1 %v2892_v5 }
 0x475   :  { %2291 = vmatprep.subr.bf16.mxu0 %v2896_v8  ;;  %2323 = vmatprep.subr.bf16.mxu1 %v2900_v11 }
 0x478   :  { %2293 = vmatpush1.bf16.msra.mxu0 %v2904_v15  ;;  %2325 = vmatpush1.bf16.msra.mxu1 %v2908_v19 }
 0x479   :  { %2295 = vmatprep.subr.bf16.mxu0 %v2912_v24  ;;  %2327 = vmatprep.subr.bf16.mxu1 %v2916_v28 }
 0x47c   :  { %2297 = vmatpush1.bf16.msra.mxu0 %v2920_v33  ;;  %2329 = vmatpush1.bf16.msra.mxu1 %v2924_v39 }
 0x47d   :  { %2299 = vmatprep.subr.bf16.mxu0 %v2928_v43  ;;  %2331 = vmatprep.subr.bf16.mxu1 %v2932_v46 }
 0x480   :  { %2301 = vmatpush1.bf16.msra.mxu0 %v2936_v52  ;;  %2333 = vmatpush1.bf16.msra.mxu1 %v2940_v56 }
 0x481   :  { %2303 = vmatprep.subr.bf16.mxu0 %v2944_v60  ;;  %2335 = vmatprep.subr.bf16.mxu1 %v2948_v1 }
 0x484   :  { %2305 = vmatpush1.bf16.msra.mxu0 %v2952_v4  ;;  %2337 = vmatpush1.bf16.msra.mxu1 %v2956_v6 }
 0x485   :  { %2339 = vmatprep.subr.bf16.mxu0 %v2839_v17  ;;  %2371 = vmatprep.subr.bf16.mxu1 %v2841_v21 }
 0x53a   :  { %v1254_v7 = vpop.f32.mrb[8].mxu0  ;;  %v1325_v9 = vpop.f32.mrb[8].mxu1 }
 0x53b   :  { %v2474_v10 = vadd.f32 %v1254_v7, %v3008_v14  ;;  %v1256_v20 = vpop.f32.mrb[9].mxu0  ;;  %v1327_v23 = vpop.f32.mrb[9].mxu1  ;;  %v2490_v36 = vadd.f32 %v1325_v9, %v3017_v44 }
 0x53c   :  { %v2475_v26 = vadd.f32 %v1256_v20, %v3010_v16  ;;  %v2491_v31 = vadd.f32 %v1327_v23, %v3014_v37 }
 0x53d   :  { %v1934_v27 = vmul.f32 -1.442695, %v2474_v10 }
 0x53e   :  { %v1935_v30 = vmul.f32 -1.442695, %v2475_v26  ;;  %v1936_v32 = vmul.f32 -1.442695, %v2491_v31 }
 0x53f   :  { %2603 = vpow2.f32 %v1934_v27 }
 0x540   :  { %2605 = vpow2.f32 %v1935_v30 }
 0x541   :  { %2607 = vpow2.f32 %v1936_v32 }
 0x542   :  { %2609 = vtanh.f32 %v2490_v36 }
 0x549   :  { %v2604_v40 = vpop.eup %2603 }
 0x54a   :  { %v2606_v41 = vpop.eup %2605  ;;  %v1337_v45 = vadd.f32 1.0, %v2604_v40 }
 0x54b   :  { %v1343_v48 = vadd.f32 1.0, %v2606_v41  ;;  %v2608_v49 = vpop.eup %2607 }
 0x54c   :  { %2611 = vrcp.f32 %v1337_v45  ;;  %v2610_v51 = vpop.eup %2609  ;;  %v1350_v59 = vadd.f32 1.0, %v2608_v49 }
 0x54d   :  { %2613 = vrcp.f32 %v1343_v48 }
 0x54e   :  { %2615 = vrcp.f32 %v1350_v59 }
 0x556   :  { %v2612_v53 = vpop.eup %2611 }
 0x557   :  { %v2614_v55 = vpop.eup %2613  ;;  %v1354_v57 = vmul.f32 %v2612_v53, %v2610_v51 }
 0x558   :  { %v1353_v62 = vmul.f32 %v2614_v55, %v3146_v3  ;;  %v2616_v12 = vpop.eup %2615 }
 0x55a   :  { %v3188_v63 = vadd.f32 %v1354_v57, %v1353_v62 }
 0x55c   :  { %2617 = vtanh.f32 %v3188_v63 }
 0x566   :  { %v2618_v13 = vpop.eup %2617 }
 0x567   :  { %v1357_v18 = vmul.f32 %v2618_v13, %v2616_v12 }
 0x569   :  { %1428 = vmatmul.mubr.f32.vlgmr.msra.gmra.mrb[10].mxu0 %v1357_v18  ;;  %1499 = vmatmul.mubr.f32.vlgmr.msra.gmra.mrb[10].mxu1 %v1357_v18 }
 0x56a   :  { %2341 = vmatpush1.bf16.msra.mxu0 %v2843_v22  ;;  %2373 = vmatpush1.bf16.msra.mxu1 %v2846_v25 }
 0x56b   :  { %2343 = vmatprep.subr.bf16.mxu0 %v2850_v29  ;;  %2375 = vmatprep.subr.bf16.mxu1 %v2854_v34 }
 0x56c   :  { %1602 = vmatprep.mubr.f32.mxu0 %v2768_v0  ;;  %1673 = vmatprep.mubr.f32.mxu1 %v2768_v0 }
 0x56e   :  { %2345 = vmatpush1.bf16.msra.mxu0 %v2856_v35  ;;  %2377 = vmatpush1.bf16.msra.mxu1 %v2860_v38 }
 0x56f   :  { %2347 = vmatprep.subr.bf16.mxu0 %v2864_v42  ;;  %2379 = vmatprep.subr.bf16.mxu1 %v2868_v47 }
 0x572   :  { %2349 = vmatpush1.bf16.msra.mxu0 %v2872_v50  ;;  %2381 = vmatpush1.bf16.msra.mxu1 %v2876_v54 }
 0x573   :  { %2351 = vmatprep.subr.bf16.mxu0 %v2880_v58  ;;  %2383 = vmatprep.subr.bf16.mxu1 %v2884_v61 }
 0x576   :  { %2353 = vmatpush1.bf16.msra.mxu0 %v2888_v2  ;;  %2385 = vmatpush1.bf16.msra.mxu1 %v2892_v5 }
 0x577   :  { %2355 = vmatprep.subr.bf16.mxu0 %v2896_v8  ;;  %2387 = vmatprep.subr.bf16.mxu1 %v2900_v11 }
 0x57a   :  { %2357 = vmatpush1.bf16.msra.mxu0 %v2904_v15  ;;  %2389 = vmatpush1.bf16.msra.mxu1 %v2908_v19 }
 0x57b   :  { %2359 = vmatprep.subr.bf16.mxu0 %v2912_v24  ;;  %2391 = vmatprep.subr.bf16.mxu1 %v2916_v28 }
 0x57e   :  { %2361 = vmatpush1.bf16.msra.mxu0 %v2920_v33  ;;  %2393 = vmatpush1.bf16.msra.mxu1 %v2924_v39 }
 0x57f   :  { %2363 = vmatprep.subr.bf16.mxu0 %v2928_v43  ;;  %2395 = vmatprep.subr.bf16.mxu1 %v2932_v46 }
 0x582   :  { %2365 = vmatpush1.bf16.msra.mxu0 %v2936_v52  ;;  %2397 = vmatpush1.bf16.msra.mxu1 %v2940_v56 }
 0x583   :  { %2367 = vmatprep.subr.bf16.mxu0 %v2944_v60  ;;  %2399 = vmatprep.subr.bf16.mxu1 %v2948_v1 }
 0x586   :  { %2369 = vmatpush1.bf16.msra.mxu0 %v2952_v4  ;;  %2401 = vmatpush1.bf16.msra.mxu1 %v2956_v6 }
 0x587   :  { %2403 = vmatprep.subr.bf16.mxu0 %v2839_v17  ;;  %2435 = vmatprep.subr.bf16.mxu1 %v2841_v21 }
 0x63c   :  { %v1429_v3 = vpop.f32.mrb[10].mxu0  ;;  %v1500_v7 = vpop.f32.mrb[10].mxu1 }
 0x63d   :  { %v2476_v9 = vadd.f32 %v1429_v3, %v3008_v14  ;;  %v1431_v10 = vpop.f32.mrb[11].mxu0  ;;  %v1502_v20 = vpop.f32.mrb[11].mxu1  ;;  %v2492_v32 = vadd.f32 %v1500_v7, %v3017_v44 }
 0x63e   :  { %v2477_v23 = vadd.f32 %v1431_v10, %v3010_v16  ;;  %v2493_v30 = vadd.f32 %v1502_v20, %v3014_v37 }
 0x63f   :  { %v1937_v26 = vmul.f32 -1.442695, %v2476_v9 }
 0x640   :  { %v1938_v27 = vmul.f32 -1.442695, %v2477_v23  ;;  %v1939_v31 = vmul.f32 -1.442695, %v2493_v30 }
 0x641   :  { %2619 = vpow2.f32 %v1937_v26 }
 0x642   :  { %2621 = vpow2.f32 %v1938_v27 }
 0x643   :  { %2623 = vpow2.f32 %v1939_v31 }
 0x644   :  { %2625 = vtanh.f32 %v2492_v32 }
 0x64b   :  { %v2620_v17 = vpop.eup %2619 }
 0x64c   :  { %v2622_v36 = vpop.eup %2621  ;;  %v1512_v21 = vadd.f32 1.0, %v2620_v17 }
 0x64d   :  { %v1518_v40 = vadd.f32 1.0, %v2622_v36  ;;  %v2624_v41 = vpop.eup %2623 }
 0x64e   :  { %2627 = vrcp.f32 %v1512_v21  ;;  %v2626_v45 = vpop.eup %2625  ;;  %v1525_v53 = vadd.f32 1.0, %v2624_v41 }
 0x64f   :  { %2629 = vrcp.f32 %v1518_v40 }
 0x650   :  { %2631 = vrcp.f32 %v1525_v53 }
 0x658   :  { %v2628_v48 = vpop.eup %2627 }
 0x659   :  { %v2630_v49 = vpop.eup %2629  ;;  %v1529_v51 = vmul.f32 %v2628_v48, %v2626_v45 }
 0x65a   :  { %v1528_v55 = vmul.f32 %v2630_v49, %v3188_v63  ;;  %v2632_v59 = vpop.eup %2631 }
 0x65c   :  { %v3230_v57 = vadd.f32 %v1529_v51, %v1528_v55 }
 0x65e   :  { %2633 = vtanh.f32 %v3230_v57 }
 0x668   :  { %v2634_v62 = vpop.eup %2633 }
 0x669   :  { %v1532_v12 = vmul.f32 %v2634_v62, %v2632_v59 }
 0x66b   :  { %1603 = vmatmul.mubr.f32.vlgmr.msra.gmra.mrb[12].mxu0 %v1532_v12  ;;  %1674 = vmatmul.mubr.f32.vlgmr.msra.gmra.mrb[12].mxu1 %v1532_v12 }
 0x66c   :  { %2405 = vmatpush1.bf16.msra.mxu0 %v2843_v22  ;;  %2437 = vmatpush1.bf16.msra.mxu1 %v2846_v25 }
 0x66d   :  { %2407 = vmatprep.subr.bf16.mxu0 %v2850_v29  ;;  %2439 = vmatprep.subr.bf16.mxu1 %v2854_v34 }
 0x66e   :  { %1777 = vmatprep.mubr.f32.mxu0 %v2768_v0  ;;  %1848 = vmatprep.mubr.f32.mxu1 %v2768_v0 }
 0x670   :  { %2409 = vmatpush1.bf16.msra.mxu0 %v2856_v35  ;;  %2441 = vmatpush1.bf16.msra.mxu1 %v2860_v38 }
 0x671   :  { %2411 = vmatprep.subr.bf16.mxu0 %v2864_v42  ;;  %2443 = vmatprep.subr.bf16.mxu1 %v2868_v47 }
 0x674   :  { %2413 = vmatpush1.bf16.msra.mxu0 %v2872_v50  ;;  %2445 = vmatpush1.bf16.msra.mxu1 %v2876_v54 }
 0x675   :  { %2415 = vmatprep.subr.bf16.mxu0 %v2880_v58  ;;  %2447 = vmatprep.subr.bf16.mxu1 %v2884_v61 }
 0x678   :  { %2417 = vmatpush1.bf16.msra.mxu0 %v2888_v2  ;;  %2449 = vmatpush1.bf16.msra.mxu1 %v2892_v5 }
 0x679   :  { %2419 = vmatprep.subr.bf16.mxu0 %v2896_v8  ;;  %2451 = vmatprep.subr.bf16.mxu1 %v2900_v11 }
 0x67c   :  { %2421 = vmatpush1.bf16.msra.mxu0 %v2904_v15  ;;  %2453 = vmatpush1.bf16.msra.mxu1 %v2908_v19 }
 0x67d   :  { %2423 = vmatprep.subr.bf16.mxu0 %v2912_v24  ;;  %2455 = vmatprep.subr.bf16.mxu1 %v2916_v28 }
 0x680   :  { %2425 = vmatpush1.bf16.msra.mxu0 %v2920_v33  ;;  %2457 = vmatpush1.bf16.msra.mxu1 %v2924_v39 }
 0x681   :  { %2427 = vmatprep.subr.bf16.mxu0 %v2928_v43  ;;  %2459 = vmatprep.subr.bf16.mxu1 %v2932_v46 }
 0x684   :  { %2429 = vmatpush1.bf16.msra.mxu0 %v2936_v52  ;;  %2461 = vmatpush1.bf16.msra.mxu1 %v2940_v56 }
 0x685   :  { %2431 = vmatprep.subr.bf16.mxu0 %v2944_v60  ;;  %2463 = vmatprep.subr.bf16.mxu1 %v2948_v1 }
 0x688   :  { %2433 = vmatpush1.bf16.msra.mxu0 %v2952_v4  ;;  %2465 = vmatpush1.bf16.msra.mxu1 %v2956_v6 }
 0x73e   :  { %v1604_v0 = vpop.f32.mrb[12].mxu0  ;;  %v1675_v22 = vpop.f32.mrb[12].mxu1 }
 0x73f   :  { %v2478_v25 = vadd.f32 %v1604_v0, %v3008_v14  ;;  %v1606_v29 = vpop.f32.mrb[13].mxu0  ;;  %v1677_v34 = vpop.f32.mrb[13].mxu1  ;;  %v2494_v54 = vadd.f32 %v1675_v22, %v3017_v44 }
 0x740   :  { %v2479_v35 = vadd.f32 %v1606_v29, %v3010_v16  ;;  %v2495_v47 = vadd.f32 %v1677_v34, %v3014_v37 }
 0x741   :  { %v1940_v38 = vmul.f32 -1.442695, %v2478_v25 }
 0x742   :  { %v1941_v42 = vmul.f32 -1.442695, %v2479_v35  ;;  %v1942_v50 = vmul.f32 -1.442695, %v2495_v47 }
 0x743   :  { %2635 = vpow2.f32 %v1940_v38 }
 0x744   :  { %2637 = vpow2.f32 %v1941_v42 }
 0x745   :  { %2639 = vpow2.f32 %v1942_v50 }
 0x746   :  { %2641 = vtanh.f32 %v2494_v54 }
 0x74d   :  { %v2636_v58 = vpop.eup %2635 }
 0x74e   :  { %v2638_v61 = vpop.eup %2637  ;;  %v1687_v2 = vadd.f32 1.0, %v2636_v58 }
 0x74f   :  { %v1693_v5 = vadd.f32 1.0, %v2638_v61  ;;  %v2640_v8 = vpop.eup %2639 }
 0x750   :  { %2643 = vrcp.f32 %v1687_v2  ;;  %v2642_v11 = vpop.eup %2641  ;;  %v1700_v28 = vadd.f32 1.0, %v2640_v8 }
 0x751   :  { %2645 = vrcp.f32 %v1693_v5 }
 0x752   :  { %2647 = vrcp.f32 %v1700_v28 }
 0x75a   :  { %v2644_v15 = vpop.eup %2643 }
 0x75b   :  { %v2646_v19 = vpop.eup %2645  ;;  %v1704_v24 = vmul.f32 %v2644_v15, %v2642_v11 }
 0x75c   :  { %v1703_v33 = vmul.f32 %v2646_v19, %v3230_v57  ;;  %v2648_v43 = vpop.eup %2647 }
 0x75e   :  { %v1705_v39 = vadd.f32 %v1704_v24, %v1703_v33 }
 0x760   :  { %2649 = vtanh.f32 %v1705_v39 }
 0x76a   :  { %v2650_v46 = vpop.eup %2649 }
 0x76b   :  { %v1707_v52 = vmul.f32 %v2650_v46, %v2648_v43 }
 0x76d   :  { %1778 = vmatmul.mubr.f32.vlgmr.msra.gmra.mrb[14].mxu0 %v1707_v52  ;;  %1849 = vmatmul.mubr.f32.vlgmr.msra.gmra.mrb[14].mxu1 %v1707_v52 }
 0x840   :  { %v1779_v56 = vpop.f32.mrb[14].mxu0  ;;  %v1850_v60 = vpop.f32.mrb[14].mxu1 }
 0x841   :  { %v2480_v1 = vadd.f32 %v1779_v56, %v3008_v14  ;;  %v1781_v4 = vpop.f32.mrb[15].mxu0  ;;  %v1852_v6 = vpop.f32.mrb[15].mxu1  ;;  %v2496_v9 = vadd.f32 %v1850_v60, %v3017_v44 }
 0x842   :  { %v2481_v63 = vadd.f32 %v1781_v4, %v3010_v16  ;;  %v2497_v3 = vadd.f32 %v1852_v6, %v3014_v37 }
 0x843   :  { %v1943_v13 = vmul.f32 -1.442695, %v2480_v1 }
 0x844   :  { %v1944_v18 = vmul.f32 -1.442695, %v2481_v63  ;;  %v1945_v7 = vmul.f32 -1.442695, %v2497_v3 }
 0x845   :  { %2651 = vpow2.f32 %v1943_v13 }
 0x846   :  { %2653 = vpow2.f32 %v1944_v18 }
 0x847   :  { %2655 = vpow2.f32 %v1945_v7 }
 0x848   :  { %2657 = vtanh.f32 %v2496_v9 }
 0x84f   :  { %v2652_v10 = vpop.eup %2651 }
 0x850   :  { %v2654_v20 = vpop.eup %2653  ;;  %v1862_v23 = vadd.f32 1.0, %v2652_v10 }
 0x851   :  { %v1868_v26 = vadd.f32 1.0, %v2654_v20  ;;  %v2656_v14 = vpop.eup %2655 }
 0x852   :  { %2659 = vrcp.f32 %v1862_v23  ;;  %v2658_v27 = vpop.eup %2657  ;;  %v1875_v32 = vadd.f32 1.0, %v2656_v14 }
 0x853   :  { %2661 = vrcp.f32 %v1868_v26 }
 0x854   :  { %2663 = vrcp.f32 %v1875_v32 }
 0x85c   :  { %v2660_v16 = vpop.eup %2659 }
 0x85d   :  { %v2662_v30 = vpop.eup %2661  ;;  %v1879_v31 = vmul.f32 %v2660_v16, %v2658_v27 }
 0x85e   :  { %v1878_v17 = vmul.f32 %v2662_v30, %v1705_v39  ;;  %v2664_v37 = vpop.eup %2663 }
 0x860   :  { %v1880_v36 = vadd.f32 %v1879_v31, %v1878_v17 }
 0x862   :  { %2665 = vtanh.f32 %v1880_v36 }
 0x86c   :  { %v2666_v44 = vpop.eup %2665 }
 0x86d   :  { %v1882_v21 = vmul.f32 %v2666_v44, %v2664_v37 }
 0x86f   :  { %1889 = vst [vmem:[#allocation11] sm:$0xff] %v1882_v21 }
 0x870   :  { %2744 = shalt.err (!%p2741_p0)
}
 0x871   :  { %s2745_s6 = scalar_lea.hbm %s3290_s4, 128 }
 0x872   :  { %p2746_p1 = scmp.ne.s32.totalorder %s3290_s4, %s2745_s6  ;;  %p2749_p2 = scmp.lt.u32.totalorder %s2745_s6, %s3290_s4 }
 0x874   :  { %p2751_p3 = pnand %p2749_p2, %p2746_p1 }
 0x876   :  { %2754 = shalt.err (!%p2751_p3)
}
 0x877   :  { %1899 = dma.vmem_to_hbm [thread:$0]  %s1897_s26, 128, %s3290_s4, [#allocation7]  }
 0x878   :  { %2759 = dma.done.wait [#allocation7], 128  }
 0x879   :  { %2760 = vsyncadd [#allocation7], 4294967168 }
 0x87a   :  { %1903 = vsyncpa [#allocation6], 1 }
 0x87b   :  { %1904 = vsyncpa [#allocation9], 1 }
 0x87c   :  { %1905 = vsyncpa [#allocation7], 1 }

// kernel: tpu_custom_call.1
= control target key start
LH: loop header
LB: loop body
LE: loop exit
PB: predicated region body
PF: predicated region fallthrough
CT: control target
= control target key end

     0   :  { %9 = vsyncpa [#allocation6], 0  ;;  %s3286_s0 = inlined_call_operand.hbm [shape: f32[1,8,8,16], index: 0, kind: input, shape index: {}]   ;;  %s3287_s1 = inlined_call_operand.hbm [shape: f32[16,512], index: 1, kind: input, shape index: {}]   ;;  %s3288_s2 = inlined_call_operand.hbm [shape: f32[128,512], index: 2, kind: input, shape index: {}]   ;;  %s3289_s3 = inlined_call_operand.vmem [shape: f32[1,512], index: 3, kind: input, shape index: {}]   ;;  %s3290_s4 = inlined_call_operand.hbm [shape: f32[8,128], index: 4, kind: output, shape index: {}]  }
   0x1   :  { %10 = vsyncpa [#allocation9], 0 }
   0x2   :  { %11 = vsyncpa [#allocation7], 0  ;;  %s2761_s15 = smov [#allocation8]   ;;  %s2667_s19 = scalar_lea.hbm %s3287_s1, 1024 }
   0x3   :  { %s29_s16 = sshll.u32 %s2761_s15, 4  ;;  %p2668_p0 = scmp.ne.s32.totalorder %s3287_s1, %s2667_s19  ;;  %s30_s16 = int_to_ptr.vmem [resolvable:$true] %s29_s16 }
   0x4   :  { %p2671_p1 = scmp.lt.u32.totalorder %s2667_s19, %s3287_s1 }
   0x6   :  { %p2673_p2 = pnand %p2671_p1, %p2668_p0 }
   0x8   :  { %2676 = shalt.err (!%p2673_p2)
}
   0x9   :  { %s2677_s24 = scalar_lea.vmem %s30_s16, 1024  ;;  %p2682_p4 = scmp.lt.s32.totalorder %s30_s16, %s30_s16 }
   0xa   :  { %p2678_p3 = scmp.ne.s32.totalorder %s30_s16, %s2677_s24  ;;  %p2683_p5 = scmp.lt.s32.totalorder %s2677_s24, %s2677_s24 }
   0xc   :  { %p2684_p6 = por %p2683_p5, %p2682_p4 }
   0xe   :  { %p2685_p7 = pnand %p2684_p6, %p2678_p3 }
  0x10   :  { %2688 = shalt.err (!%p2685_p7)
}
  0x11   :  { %s2762_s25 = smov 512   ;;  %s2763_s26 = smov 32  }
  0x12   :  { %35 = dma.hbm_to_vmem [thread:$0]  %s3287_s1, 1024, %s30_s16, [#allocation9], %s2762_s25, %s2762_s25, %s2763_s26  }
  0x13   :  { %s2764_s29 = smov [#allocation5]   ;;  %s2689_s7 = scalar_lea.hbm %s3286_s0, 1024 }
  0x14   :  { %s17_s30 = sshll.u32 %s2764_s29, 4  ;;  %p2690_p8 = scmp.ne.s32.totalorder %s3286_s0, %s2689_s7  ;;  %s18_s30 = int_to_ptr.vmem [resolvable:$true] %s17_s30 }
  0x15   :  { %p2693_p9 = scmp.lt.u32.totalorder %s2689_s7, %s3286_s0 }
  0x17   :  { %p2695_p10 = pnand %p2693_p9, %p2690_p8 }
  0x19   :  { %2698 = shalt.err (!%p2695_p10)
}
  0x1a   :  { %s2699_s12 = scalar_lea.vmem %s18_s30, 1024  ;;  %p2704_p12 = scmp.lt.s32.totalorder %s18_s30, %s18_s30 }
  0x1b   :  { %p2700_p11 = scmp.ne.s32.totalorder %s18_s30, %s2699_s12  ;;  %p2705_p13 = scmp.lt.s32.totalorder %s2699_s12, %s2699_s12 }
  0x1d   :  { %p2706_p0 = por %p2705_p13, %p2704_p12 }
  0x1f   :  { %p2707_p1 = pnand %p2706_p0, %p2700_p11 }
  0x21   :  { %2710 = shalt.err (!%p2707_p1)
}
  0x22   :  { %s2765_s1 = smov 128   ;;  %s2766_s13 = smov 8  }
  0x23   :  { %23 = dma.hbm_to_vmem [thread:$0]  %s3286_s0, 1024, %s18_s30, [#allocation6], %s2765_s1, %s2765_s1, %s2766_s13  }
  0x24   :  { %s2767_s16 = smov [#allocation10]   ;;  %s2711_s20 = scalar_lea.hbm %s3288_s2, 8192 }
  0x25   :  { %s41_s17 = sshll.u32 %s2767_s16, 4  ;;  %p2712_p2 = scmp.ne.s32.totalorder %s3288_s2, %s2711_s20  ;;  %s42_s17 = int_to_ptr.vmem [resolvable:$true] %s41_s17 }
  0x26   :  { %p2715_p3 = scmp.lt.u32.totalorder %s2711_s20, %s3288_s2 }
  0x28   :  { %p2717_p4 = pnand %p2715_p3, %p2712_p2 }
  0x2a   :  { %2720 = shalt.err (!%p2717_p4)
}
  0x2b   :  { %s2721_s27 = scalar_lea.vmem %s42_s17, 8192  ;;  %p2726_p6 = scmp.lt.s32.totalorder %s42_s17, %s42_s17 }
  0x2c   :  { %p2722_p5 = scmp.ne.s32.totalorder %s42_s17, %s2721_s27  ;;  %p2727_p7 = scmp.lt.s32.totalorder %s2721_s27, %s2721_s27 }
  0x2e   :  { %p2728_p8 = por %p2727_p7, %p2726_p6 }
  0x30   :  { %p2729_p9 = pnand %p2728_p8, %p2722_p5 }
  0x32   :  { %2732 = shalt.err (!%p2729_p9)
}
  0x33   :  { %47 = dma.hbm_to_vmem [thread:$0]  %s3288_s2, 8192, %s42_s17, [#allocation9], %s2762_s25, %s2762_s25, %s2763_s26  }
  0x34   :  { %2755 = dma.done.wait [#allocation6], 1024  }
  0x35   :  { %2756 = vsyncadd [#allocation6], 4294966272 }
  0x36   :  { %2757 = dma.done.wait [#allocation9], 9216  }
  0x37   :  { %2758 = vsyncadd [#allocation9], 4294958080  ;;  %v2768_v0 = vmov 0.0   ;;  %v74_v1 = vld [vmem:[#allocation8 + $0x8] sm:$0xff]  ;;  %v76_v3 = vld [vmem:[#allocation8 + $0x18] sm:$0xff]  ;;  %vm81_vm0 = vcmask 130048  }
  0x38   :  { %170 = vmatprep.mubr.f32.mxu0 %v2768_v0  ;;  %283 = vmatprep.mubr.f32.mxu1 %v2768_v0  ;;  %v78_v2 = vld [vmem:[#allocation8 + $0x28] sm:$0xff]  ;;  %v80_v5 = vld [vmem:[#allocation8 + $0x38] sm:$0xff]  ;;  %v73_v6 = vld [vmem:[#allocation8] sm:$0xff] }
  0x39   :  { %v1946_v4 = vpack.c.bf16 %v78_v2, %v74_v1  ;;  %v77_v7 = vld [vmem:[#allocation8 + $0x20] sm:$0xff]  ;;  %v1950_v8 = vpack.c.bf16 %v80_v5, %v76_v3  ;;  %v75_v10 = vld [vmem:[#allocation8 + $0x10] sm:$0xff]  ;;  %v425_v14 = vld [vmem:[#allocation10 + $0x8] sm:$0xff] }
  0x3a   :  { %v1948_v9 = vpack.c.bf16 %v77_v7, %v73_v6  ;;  %v79_v11 = vld [vmem:[#allocation8 + $0x30] sm:$0xff]  ;;  %v65_v12 = vld [vmem:[#allocation5] sm:$0xff]  ;;  %v429_v15 = vld [vmem:[#allocation10 + $0x28] sm:$0xff] }
  0x3b   :  { %1947 = vmatprep.subr.bf16.mxu0 %v1946_v4  ;;  %v1952_v13 = vpack.c.bf16 %v79_v11, %v75_v10  ;;  %v427_v16 = vld [vmem:[#allocation10 + $0x18] sm:$0xff]  ;;  %1951 = vmatprep.subr.bf16.mxu1 %v1950_v8  ;;  %v2839_v17 = vpack.c.bf16 %v429_v15, %v425_v14  ;;  %v424_v19 = vld [vmem:[#allocation10] sm:$0xff]  ;;  %v426_v23 = vld [vmem:[#allocation10 + $0x10] sm:$0xff] }
  0x3c   :  { %1949 = vmatpush1.bf16.msra.mxu0 %v1948_v9  ;;  %v431_v18 = vld [vmem:[#allocation10 + $0x38] sm:$0xff]  ;;  %v428_v20 = vld [vmem:[#allocation10 + $0x20] sm:$0xff]  ;;  %v430_v24 = vld [vmem:[#allocation10 + $0x30] sm:$0xff] }
  0x3d   :  { %1953 = vmatpush1.bf16.msra.mxu1 %v1952_v13  ;;  %v2841_v21 = vpack.c.bf16 %v431_v18, %v427_v16  ;;  %v2843_v22 = vpack.c.bf16 %v428_v20, %v424_v19  ;;  %1955 = vmatprep.subr.bf16.mxu0 %v2839_v17  ;;  %v2846_v25 = vpack.c.bf16 %v430_v24, %v426_v23  ;;  %v433_v26 = vld [vmem:[#allocation10 + $0x48] sm:$0xff]  ;;  %v435_v28 = vld [vmem:[#allocation10 + $0x58] sm:$0xff]  ;;  %v432_v31 = vld [vmem:[#allocation10 + $0x40] sm:$0xff] }
  0x3e   :  { %v437_v27 = vld [vmem:[#allocation10 + $0x68] sm:$0xff]  ;;  %v439_v30 = vld [vmem:[#allocation10 + $0x78] sm:$0xff]  ;;  %v436_v32 = vld [vmem:[#allocation10 + $0x60] sm:$0xff] }
  0x3f   :  { %1906 = vmatmul.mubr.msk.f32.vlgmr.msra.gmra.mrb[0].mxu0 %vm81_vm0, %v65_v12  ;;  %1987 = vmatprep.subr.bf16.mxu1 %v2841_v21  ;;  %v2850_v29 = vpack.c.bf16 %v437_v27, %v433_v26  ;;  %v66_v33 = vld [vmem:[#allocation5 + $0x8] sm:$0xff]  ;;  %v2854_v34 = vpack.c.bf16 %v439_v30, %v435_v28  ;;  %v2856_v35 = vpack.c.bf16 %v436_v32, %v432_v31  ;;  %v434_v36 = vld [vmem:[#allocation10 + $0x50] sm:$0xff]  ;;  %v443_v41 = vld [vmem:[#allocation10 + $0x98] sm:$0xff] }
  0x40   :  { %1914 = vmatmul.mubr.msk.f32.vlgmr.msra.gmra.mrb[0].mxu1 %vm81_vm0, %v65_v12  ;;  %1957 = vmatpush1.bf16.msra.mxu0 %v2843_v22  ;;  %v438_v37 = vld [vmem:[#allocation10 + $0x70] sm:$0xff]  ;;  %v441_v39 = vld [vmem:[#allocation10 + $0x88] sm:$0xff]  ;;  %v447_v43 = vld [vmem:[#allocation10 + $0xb8] sm:$0xff] }
  0x41   :  { %1989 = vmatpush1.bf16.msra.mxu1 %v2846_v25  ;;  %176 = vmatprep.mubr.f32.mxu0 %v2768_v0  ;;  %v2860_v38 = vpack.c.bf16 %v438_v37, %v434_v36  ;;  %v445_v40 = vld [vmem:[#allocation10 + $0xa8] sm:$0xff]  ;;  %v440_v44 = vld [vmem:[#allocation10 + $0x80] sm:$0xff]  ;;  %v67_v46 = vld [vmem:[#allocation5 + $0x10] sm:$0xff]  ;;  %v2868_v47 = vpack.c.bf16 %v447_v43, %v443_v41 }
  0x42   :  { %289 = vmatprep.mubr.f32.mxu1 %v2768_v0  ;;  %1959 = vmatprep.subr.bf16.mxu0 %v2850_v29  ;;  %v2864_v42 = vpack.c.bf16 %v445_v40, %v441_v39  ;;  %v444_v45 = vld [vmem:[#allocation10 + $0xa0] sm:$0xff]  ;;  %v442_v48 = vld [vmem:[#allocation10 + $0x90] sm:$0xff]  ;;  %v449_v51 = vld [vmem:[#allocation10 + $0xc8] sm:$0xff] }
  0x43   :  { %1907 = vmatmul.mubr.msk.f32.gmra.mrb[2].mxu0 %vm81_vm0, %v66_v33  ;;  %1991 = vmatprep.subr.bf16.mxu1 %v2854_v34  ;;  %v446_v49 = vld [vmem:[#allocation10 + $0xb0] sm:$0xff]  ;;  %v2872_v50 = vpack.c.bf16 %v444_v45, %v440_v44  ;;  %v453_v52 = vld [vmem:[#allocation10 + $0xe8] sm:$0xff]  ;;  %v451_v53 = vld [vmem:[#allocation10 + $0xd8] sm:$0xff] }
  0x44   :  { %1915 = vmatmul.mubr.msk.f32.gmra.mrb[2].mxu1 %vm81_vm0, %v66_v33  ;;  %1961 = vmatpush1.bf16.msra.mxu0 %v2856_v35  ;;  %v2876_v54 = vpack.c.bf16 %v446_v49, %v442_v48  ;;  %v455_v55 = vld [vmem:[#allocation10 + $0xf8] sm:$0xff]  ;;  %v448_v56 = vld [vmem:[#allocation10 + $0xc0] sm:$0xff]  ;;  %v2880_v58 = vpack.c.bf16 %v453_v52, %v449_v51  ;;  %v450_v59 = vld [vmem:[#allocation10 + $0xd0] sm:$0xff] }
  0x45   :  { %1993 = vmatpush1.bf16.msra.mxu1 %v2860_v38  ;;  %182 = vmatprep.mubr.f32.mxu0 %v2768_v0  ;;  %v452_v57 = vld [vmem:[#allocation10 + $0xe0] sm:$0xff]  ;;  %v454_v60 = vld [vmem:[#allocation10 + $0xf0] sm:$0xff]  ;;  %v2884_v61 = vpack.c.bf16 %v455_v55, %v451_v53  ;;  %v457_v62 = vld [vmem:[#allocation10 + $0x108] sm:$0xff] }
  0x46   :  { %295 = vmatprep.mubr.f32.mxu1 %v2768_v0  ;;  %1963 = vmatprep.subr.bf16.mxu0 %v2864_v42  ;;  %v461_v63 = vld [vmem:[#allocation10 + $0x128] sm:$0xff]  ;;  %v68_v1 = vld [vmem:[#allocation5 + $0x18] sm:$0xff]  ;;  %v2888_v2 = vpack.c.bf16 %v452_v57, %v448_v56  ;;  %v2892_v5 = vpack.c.bf16 %v454_v60, %v450_v59  ;;  %v456_v6 = vld [vmem:[#allocation10 + $0x100] sm:$0xff] }
  0x47   :  { %1908 = vmatmul.mubr.msk.f32.gmra.mrb[4].mxu0 %vm81_vm0, %v67_v46  ;;  %1995 = vmatprep.subr.bf16.mxu1 %v2868_v47  ;;  %v459_v3 = vld [vmem:[#allocation10 + $0x118] sm:$0xff]  ;;  %v460_v7 = vld [vmem:[#allocation10 + $0x120] sm:$0xff]  ;;  %v2896_v8 = vpack.c.bf16 %v461_v63, %v457_v62  ;;  %v458_v9 = vld [vmem:[#allocation10 + $0x110] sm:$0xff] }
  0x48   :  { %1916 = vmatmul.mubr.msk.f32.gmra.mrb[4].mxu1 %vm81_vm0, %v67_v46  ;;  %1965 = vmatpush1.bf16.msra.mxu0 %v2872_v50  ;;  %v463_v4 = vld [vmem:[#allocation10 + $0x138] sm:$0xff]  ;;  %v462_v10 = vld [vmem:[#allocation10 + $0x130] sm:$0xff]  ;;  %v465_v12 = vld [vmem:[#allocation10 + $0x148] sm:$0xff]  ;;  %v2904_v15 = vpack.c.bf16 %v460_v7, %v456_v6  ;;  %v334_v7 = vlaneseq }
  0x49   :  { %1997 = vmatpush1.bf16.msra.mxu1 %v2876_v54  ;;  %188 = vmatprep.mubr.f32.mxu0 %v2768_v0  ;;  %v2900_v11 = vpack.c.bf16 %v463_v4, %v459_v3  ;;  %v469_v13 = vld [vmem:[#allocation10 + $0x168] sm:$0xff]  ;;  %v69_v14 = vld [vmem:[#allocation5 + $0x20] sm:$0xff]  ;;  %v467_v16 = vld [vmem:[#allocation10 + $0x158] sm:$0xff]  ;;  %v2908_v19 = vpack.c.bf16 %v462_v10, %v458_v9 }
  0x4a   :  { %301 = vmatprep.mubr.f32.mxu1 %v2768_v0  ;;  %1967 = vmatprep.subr.bf16.mxu0 %v2880_v58  ;;  %v471_v18 = vld [vmem:[#allocation10 + $0x178] sm:$0xff]  ;;  %v464_v20 = vld [vmem:[#allocation10 + $0x140] sm:$0xff]  ;;  %v2912_v24 = vpack.c.bf16 %v469_v13, %v465_v12  ;;  %v466_v26 = vld [vmem:[#allocation10 + $0x150] sm:$0xff]  ;;  %v335_v9 = vshrl.u32 %v334_v7, 7 }
  0x4b   :  { %1909 = vmatmul.mubr.msk.f32.gmra.mrb[6].mxu0 %vm81_vm0, %v68_v1  ;;  %1999 = vmatprep.subr.bf16.mxu1 %v2884_v61  ;;  %v468_v23 = vld [vmem:[#allocation10 + $0x160] sm:$0xff]  ;;  %v470_v27 = vld [vmem:[#allocation10 + $0x170] sm:$0xff]  ;;  %v2916_v28 = vpack.c.bf16 %v471_v18, %v467_v16  ;;  %v473_v30 = vld [vmem:[#allocation10 + $0x188] sm:$0xff] }
  0x4c   :  { %1917 = vmatmul.mubr.msk.f32.gmra.mrb[6].mxu1 %vm81_vm0, %v68_v1  ;;  %1969 = vmatpush1.bf16.msra.mxu0 %v2888_v2  ;;  %v477_v31 = vld [vmem:[#allocation10 + $0x1a8] sm:$0xff]  ;;  %v2920_v33 = vpack.c.bf16 %v468_v23, %v464_v20  ;;  %v475_v36 = vld [vmem:[#allocation10 + $0x198] sm:$0xff]  ;;  %v2924_v39 = vpack.c.bf16 %v470_v27, %v466_v26  ;;  %v472_v40 = vld [vmem:[#allocation10 + $0x180] sm:$0xff]  ;;  %v336_v10 = vsub.s32 0, %v335_v9  ;;  %v340_v13 = vsub.s32 1, %v335_v9 }
  0x4d   :  { %2001 = vmatpush1.bf16.msra.mxu1 %v2892_v5  ;;  %194 = vmatprep.mubr.f32.mxu0 %v2768_v0  ;;  %v70_v32 = vld [vmem:[#allocation5 + $0x28] sm:$0xff]  ;;  %v479_v37 = vld [vmem:[#allocation10 + $0x1b8] sm:$0xff]  ;;  %v476_v41 = vld [vmem:[#allocation10 + $0x1a0] sm:$0xff]  ;;  %v2928_v43 = vpack.c.bf16 %v477_v31, %v473_v30  ;;  %v348_v20 = vsub.s32 3, %v335_v9 }
  0x4e   :  { %307 = vmatprep.mubr.f32.mxu1 %v2768_v0  ;;  %1971 = vmatprep.subr.bf16.mxu0 %v2896_v8  ;;  %v474_v44 = vld [vmem:[#allocation10 + $0x190] sm:$0xff]  ;;  %v2932_v46 = vpack.c.bf16 %v479_v37, %v475_v36  ;;  %v481_v48 = vld [vmem:[#allocation10 + $0x1c8] sm:$0xff]  ;;  %v2936_v52 = vpack.c.bf16 %v476_v41, %v472_v40  ;;  %v483_v53 = vld [vmem:[#allocation10 + $0x1d8] sm:$0xff]  ;;  %v344_v40 = vsub.s32 2, %v335_v9 }
  0x4f   :  { %1910 = vmatmul.mubr.msk.f32.gmra.mrb[8].mxu0 %vm81_vm0, %v69_v14  ;;  %2003 = vmatprep.subr.bf16.mxu1 %v2900_v11  ;;  %v478_v45 = vld [vmem:[#allocation10 + $0x1b0] sm:$0xff]  ;;  %v485_v49 = vld [vmem:[#allocation10 + $0x1e8] sm:$0xff]  ;;  %v487_v55 = vld [vmem:[#allocation10 + $0x1f8] sm:$0xff] }
  0x50   :  { %1918 = vmatmul.mubr.msk.f32.gmra.mrb[8].mxu1 %vm81_vm0, %v69_v14  ;;  %1973 = vmatpush1.bf16.msra.mxu0 %v2904_v15  ;;  %v71_v51 = vld [vmem:[#allocation5 + $0x30] sm:$0xff]  ;;  %v2940_v56 = vpack.c.bf16 %v478_v45, %v474_v44  ;;  %v480_v57 = vld [vmem:[#allocation10 + $0x1c0] sm:$0xff]  ;;  %v2944_v60 = vpack.c.bf16 %v485_v49, %v481_v48  ;;  %v2948_v1 = vpack.c.bf16 %v487_v55, %v483_v53  ;;  %v72_v3 = vld [vmem:[#allocation5 + $0x38] sm:$0xff] }
  0x51   :  { %2005 = vmatpush1.bf16.msra.mxu1 %v2908_v19  ;;  %200 = vmatprep.mubr.f32.mxu0 %v2768_v0  ;;  %v484_v59 = vld [vmem:[#allocation10 + $0x1e0] sm:$0xff]  ;;  %v482_v62 = vld [vmem:[#allocation10 + $0x1d0] sm:$0xff] }
  0x52   :  { %313 = vmatprep.mubr.f32.mxu1 %v2768_v0  ;;  %1975 = vmatprep.subr.bf16.mxu0 %v2912_v24  ;;  %v486_v63 = vld [vmem:[#allocation10 + $0x1f0] sm:$0xff]  ;;  %v2952_v4 = vpack.c.bf16 %v484_v59, %v480_v57  ;;  %v332_v12 = vld [vmem:[%s3289_s3] sm:$0xf]  ;;  %s2769_s3 = smov [#allocation11]  }
  0x53   :  { %1911 = vmatmul.mubr.msk.f32.gmra.mrb[10].mxu0 %vm81_vm0, %v70_v32  ;;  %2007 = vmatprep.subr.bf16.mxu1 %v2916_v28  ;;  %v2956_v6 = vpack.c.bf16 %v486_v63, %v482_v62  ;;  %v3008_v14 = vrot.slane %v332_v12, %v336_v10  ;;  %v3010_v16 = vrot.slane %v332_v12, %v340_v13  ;;  %s1896_s26 = sshll.u32 %s2769_s3, 4  ;;  %s1897_s26 = int_to_ptr.vmem [resolvable:$true] %s1896_s26 }
  0x54   :  { %1919 = vmatmul.mubr.msk.f32.gmra.mrb[10].mxu1 %vm81_vm0, %v70_v32  ;;  %1977 = vmatpush1.bf16.msra.mxu0 %v2920_v33  ;;  %v3014_v37 = vrot.slane %v332_v12, %v348_v20  ;;  %v3017_v44 = vrot.slane %v332_v12, %v344_v40  ;;  %s2733_s29 = scalar_lea.vmem %s1897_s26, 128  ;;  %p2738_p11 = scmp.lt.s32.totalorder %s1897_s26, %s1897_s26 }
  0x55   :  { %2009 = vmatpush1.bf16.msra.mxu1 %v2924_v39  ;;  %206 = vmatprep.mubr.f32.mxu0 %v2768_v0  ;;  %p2734_p10 = scmp.ne.s32.totalorder %s1897_s26, %s2733_s29  ;;  %p2739_p12 = scmp.lt.s32.totalorder %s2733_s29, %s2733_s29 }
  0x56   :  { %319 = vmatprep.mubr.f32.mxu1 %v2768_v0  ;;  %1979 = vmatprep.subr.bf16.mxu0 %v2928_v43 }
  0x57   :  { %1912 = vmatmul.mubr.msk.f32.gmra.mrb[12].mxu0 %vm81_vm0, %v71_v51  ;;  %2011 = vmatprep.subr.bf16.mxu1 %v2932_v46  ;;  %p2740_p13 = por %p2739_p12, %p2738_p11 }
  0x58   :  { %1920 = vmatmul.mubr.msk.f32.gmra.mrb[12].mxu1 %vm81_vm0, %v71_v51  ;;  %1981 = vmatpush1.bf16.msra.mxu0 %v2936_v52 }
  0x59   :  { %2013 = vmatpush1.bf16.msra.mxu1 %v2940_v56  ;;  %212 = vmatprep.mubr.f32.mxu0 %v2768_v0  ;;  %p2741_p0 = pnand %p2740_p13, %p2734_p10 }
  0x5a   :  { %325 = vmatprep.mubr.f32.mxu1 %v2768_v0  ;;  %1983 = vmatprep.subr.bf16.mxu0 %v2944_v60 }
  0x5b   :  { %1913 = vmatmul.mubr.msk.f32.gmra.mrb[14].mxu0 %vm81_vm0, %v72_v3  ;;  %2015 = vmatprep.subr.bf16.mxu1 %v2948_v1 }
  0x5c   :  { %1921 = vmatmul.mubr.msk.f32.gmra.mrb[14].mxu1 %vm81_vm0, %v72_v3  ;;  %1985 = vmatpush1.bf16.msra.mxu0 %v2952_v4 }
  0x5d   :  { %2017 = vmatpush1.bf16.msra.mxu1 %v2956_v6  ;;  %552 = vmatprep.mubr.f32.mxu0 %v2768_v0 }
  0x5e   :  { %623 = vmatprep.mubr.f32.mxu1 %v2768_v0  ;;  %2019 = vmatprep.subr.bf16.mxu0 %v2839_v17 }
  0x5f   :  { %553 = vmatmul.mubr.f32.vlgmr.msra.gmra.mrb[0].mxu0 %v2768_v0  ;;  %2051 = vmatprep.subr.bf16.mxu1 %v2841_v21 }
  0x60   :  { %624 = vmatmul.mubr.f32.vlgmr.msra.gmra.mrb[0].mxu1 %v2768_v0  ;;  %2021 = vmatpush1.bf16.msra.mxu0 %v2843_v22 }
  0x61   :  { %2053 = vmatpush1.bf16.msra.mxu1 %v2846_v25  ;;  %2023 = vmatprep.subr.bf16.mxu0 %v2850_v29 }
  0x62   :  { %2055 = vmatprep.subr.bf16.mxu1 %v2854_v34  ;;  %727 = vmatprep.mubr.f32.mxu0 %v2768_v0 }
  0x63   :  { %798 = vmatprep.mubr.f32.mxu1 %v2768_v0 }
  0x64   :  { %2025 = vmatpush1.bf16.msra.mxu0 %v2856_v35 }
  0x65   :  { %2057 = vmatpush1.bf16.msra.mxu1 %v2860_v38  ;;  %2027 = vmatprep.subr.bf16.mxu0 %v2864_v42 }
  0x66   :  { %2059 = vmatprep.subr.bf16.mxu1 %v2868_v47 }
  0x68   :  { %2029 = vmatpush1.bf16.msra.mxu0 %v2872_v50 }
  0x69   :  { %2061 = vmatpush1.bf16.msra.mxu1 %v2876_v54  ;;  %2031 = vmatprep.subr.bf16.mxu0 %v2880_v58 }
  0x6a   :  { %2063 = vmatprep.subr.bf16.mxu1 %v2884_v61 }
  0x6c   :  { %2033 = vmatpush1.bf16.msra.mxu0 %v2888_v2 }
  0x6d   :  { %2065 = vmatpush1.bf16.msra.mxu1 %v2892_v5  ;;  %2035 = vmatprep.subr.bf16.mxu0 %v2896_v8 }
  0x6e   :  { %2067 = vmatprep.subr.bf16.mxu1 %v2900_v11 }
  0x70   :  { %2037 = vmatpush1.bf16.msra.mxu0 %v2904_v15 }
  0x71   :  { %2069 = vmatpush1.bf16.msra.mxu1 %v2908_v19  ;;  %2039 = vmatprep.subr.bf16.mxu0 %v2912_v24 }
  0x72   :  { %2071 = vmatprep.subr.bf16.mxu1 %v2916_v28 }
  0x74   :  { %2041 = vmatpush1.bf16.msra.mxu0 %v2920_v33 }
  0x75   :  { %2073 = vmatpush1.bf16.msra.mxu1 %v2924_v39  ;;  %2043 = vmatprep.subr.bf16.mxu0 %v2928_v43 }
  0x76   :  { %2075 = vmatprep.subr.bf16.mxu1 %v2932_v46 }
  0x78   :  { %2045 = vmatpush1.bf16.msra.mxu0 %v2936_v52 }
  0x79   :  { %2077 = vmatpush1.bf16.msra.mxu1 %v2940_v56  ;;  %2047 = vmatprep.subr.bf16.mxu0 %v2944_v60 }
  0x7a   :  { %2079 = vmatprep.subr.bf16.mxu1 %v2948_v1 }
  0x7c   :  { %2049 = vmatpush1.bf16.msra.mxu0 %v2952_v4 }
  0x7d   :  { %2081 = vmatpush1.bf16.msra.mxu1 %v2956_v6  ;;  %2083 = vmatprep.subr.bf16.mxu0 %v2839_v17 }
  0x7e   :  { %2115 = vmatprep.subr.bf16.mxu1 %v2841_v21 }
 0x132   :  { %v554_v18 = vpop.f32.mrb[0].mxu0 }
 0x133   :  { %v2466_v23 = vadd.f32 %v554_v18, %v3008_v14  ;;  %v625_v26 = vpop.f32.mrb[0].mxu1  ;;  %v556_v27 = vpop.f32.mrb[1].mxu0 }
 0x134   :  { %v2467_v30 = vadd.f32 %v556_v27, %v3010_v16  ;;  %v627_v31 = vpop.f32.mrb[1].mxu1  ;;  %v2482_v48 = vadd.f32 %v625_v26, %v3017_v44 }
 0x135   :  { %v1922_v32 = vmul.f32 -1.442695, %v2466_v23  ;;  %v2483_v41 = vadd.f32 %v627_v31, %v3014_v37 }
 0x136   :  { %v1923_v36 = vmul.f32 -1.442695, %v2467_v30 }
 0x137   :  { %2539 = vpow2.f32 %v1922_v32  ;;  %v1924_v45 = vmul.f32 -1.442695, %v2483_v41 }
 0x138   :  { %2541 = vpow2.f32 %v1923_v36 }
 0x139   :  { %2543 = vpow2.f32 %v1924_v45 }
 0x13a   :  { %2545 = vtanh.f32 %v2482_v48 }
 0x141   :  { %v2540_v49 = vpop.eup %2539 }
 0x142   :  { %v2542_v51 = vpop.eup %2541  ;;  %v637_v53 = vadd.f32 1.0, %v2540_v49 }
 0x143   :  { %v643_v55 = vadd.f32 1.0, %v2542_v51  ;;  %v2544_v57 = vpop.eup %2543 }
 0x144   :  { %2547 = vrcp.f32 %v637_v53  ;;  %v2546_v59 = vpop.eup %2545  ;;  %v650_v7 = vadd.f32 1.0, %v2544_v57 }
 0x145   :  { %2549 = vrcp.f32 %v643_v55 }
 0x146   :  { %2551 = vrcp.f32 %v650_v7 }
 0x14e   :  { %v2548_v62 = vpop.eup %2547 }
 0x14f   :  { %v2550_v63 = vpop.eup %2549  ;;  %v654_v3 = vmul.f32 %v2548_v62, %v2546_v59 }
 0x150   :  { %v653_v9 = vmul.f32 0.0, %v2550_v63  ;;  %v2552_v12 = vpop.eup %2551 }
 0x152   :  { %v3020_v10 = vadd.f32 %v654_v3, %v653_v9 }
 0x154   :  { %2553 = vtanh.f32 %v3020_v10 }
 0x15e   :  { %v2554_v13 = vpop.eup %2553 }
 0x15f   :  { %v657_v18 = vmul.f32 %v2554_v13, %v2552_v12 }
 0x161   :  { %728 = vmatmul.mubr.f32.vlgmr.msra.gmra.mrb[2].mxu0 %v657_v18  ;;  %799 = vmatmul.mubr.f32.vlgmr.msra.gmra.mrb[2].mxu1 %v657_v18 }
 0x162   :  { %2085 = vmatpush1.bf16.msra.mxu0 %v2843_v22  ;;  %2117 = vmatpush1.bf16.msra.mxu1 %v2846_v25 }
 0x163   :  { %2087 = vmatprep.subr.bf16.mxu0 %v2850_v29  ;;  %2119 = vmatprep.subr.bf16.mxu1 %v2854_v34 }
 0x164   :  { %902 = vmatprep.mubr.f32.mxu0 %v2768_v0  ;;  %973 = vmatprep.mubr.f32.mxu1 %v2768_v0 }
 0x166   :  { %2089 = vmatpush1.bf16.msra.mxu0 %v2856_v35  ;;  %2121 = vmatpush1.bf16.msra.mxu1 %v2860_v38 }
 0x167   :  { %2091 = vmatprep.subr.bf16.mxu0 %v2864_v42  ;;  %2123 = vmatprep.subr.bf16.mxu1 %v2868_v47 }
 0x16a   :  { %2093 = vmatpush1.bf16.msra.mxu0 %v2872_v50  ;;  %2125 = vmatpush1.bf16.msra.mxu1 %v2876_v54 }
 0x16b   :  { %2095 = vmatprep.subr.bf16.mxu0 %v2880_v58  ;;  %2127 = vmatprep.subr.bf16.mxu1 %v2884_v61 }
 0x16e   :  { %2097 = vmatpush1.bf16.msra.mxu0 %v2888_v2  ;;  %2129 = vmatpush1.bf16.msra.mxu1 %v2892_v5 }
 0x16f   :  { %2099 = vmatprep.subr.bf16.mxu0 %v2896_v8  ;;  %2131 = vmatprep.subr.bf16.mxu1 %v2900_v11 }
 0x172   :  { %2101 = vmatpush1.bf16.msra.mxu0 %v2904_v15  ;;  %2133 = vmatpush1.bf16.msra.mxu1 %v2908_v19 }
 0x173   :  { %2103 = vmatprep.subr.bf16.mxu0 %v2912_v24  ;;  %2135 = vmatprep.subr.bf16.mxu1 %v2916_v28 }
 0x176   :  { %2105 = vmatpush1.bf16.msra.mxu0 %v2920_v33  ;;  %2137 = vmatpush1.bf16.msra.mxu1 %v2924_v39 }
 0x177   :  { %2107 = vmatprep.subr.bf16.mxu0 %v2928_v43  ;;  %2139 = vmatprep.subr.bf16.mxu1 %v2932_v46 }
 0x17a   :  { %2109 = vmatpush1.bf16.msra.mxu0 %v2936_v52  ;;  %2141 = vmatpush1.bf16.msra.mxu1 %v2940_v56 }
 0x17b   :  { %2111 = vmatprep.subr.bf16.mxu0 %v2944_v60  ;;  %2143 = vmatprep.subr.bf16.mxu1 %v2948_v1 }
 0x17e   :  { %2113 = vmatpush1.bf16.msra.mxu0 %v2952_v4  ;;  %2145 = vmatpush1.bf16.msra.mxu1 %v2956_v6 }
 0x17f   :  { %2147 = vmatprep.subr.bf16.mxu0 %v2839_v17  ;;  %2179 = vmatprep.subr.bf16.mxu1 %v2841_v21 }
 0x234   :  { %v729_v20 = vpop.f32.mrb[2].mxu0  ;;  %v800_v23 = vpop.f32.mrb[2].mxu1 }
 0x235   :  { %v2468_v26 = vadd.f32 %v729_v20, %v3008_v14  ;;  %v731_v27 = vpop.f32.mrb[3].mxu0  ;;  %v802_v30 = vpop.f32.mrb[3].mxu1  ;;  %v2484_v45 = vadd.f32 %v800_v23, %v3017_v44 }
 0x236   :  { %v2469_v31 = vadd.f32 %v731_v27, %v3010_v16  ;;  %v2485_v40 = vadd.f32 %v802_v30, %v3014_v37 }
 0x237   :  { %v1925_v32 = vmul.f32 -1.442695, %v2468_v26 }
 0x238   :  { %v1926_v36 = vmul.f32 -1.442695, %v2469_v31  ;;  %v1927_v41 = vmul.f32 -1.442695, %v2485_v40 }
 0x239   :  { %2555 = vpow2.f32 %v1925_v32 }
 0x23a   :  { %2557 = vpow2.f32 %v1926_v36 }
 0x23b   :  { %2559 = vpow2.f32 %v1927_v41 }
 0x23c   :  { %2561 = vtanh.f32 %v2484_v45 }
 0x243   :  { %v2556_v48 = vpop.eup %2555 }
 0x244   :  { %v2558_v49 = vpop.eup %2557  ;;  %v812_v51 = vadd.f32 1.0, %v2556_v48 }
 0x245   :  { %v818_v53 = vadd.f32 1.0, %v2558_v49  ;;  %v2560_v55 = vpop.eup %2559 }
 0x246   :  { %2563 = vrcp.f32 %v812_v51  ;;  %v2562_v57 = vpop.eup %2561  ;;  %v825_v3 = vadd.f32 1.0, %v2560_v55 }
 0x247   :  { %2565 = vrcp.f32 %v818_v53 }
 0x248   :  { %2567 = vrcp.f32 %v825_v3 }
 0x250   :  { %v2564_v59 = vpop.eup %2563 }
 0x251   :  { %v2566_v62 = vpop.eup %2565  ;;  %v829_v63 = vmul.f32 %v2564_v59, %v2562_v57 }
 0x252   :  { %v828_v7 = vmul.f32 %v2566_v62, %v3020_v10  ;;  %v2568_v12 = vpop.eup %2567 }
 0x254   :  { %v3062_v9 = vadd.f32 %v829_v63, %v828_v7 }
 0x256   :  { %2569 = vtanh.f32 %v3062_v9 }
 0x260   :  { %v2570_v13 = vpop.eup %2569 }
 0x261   :  { %v832_v18 = vmul.f32 %v2570_v13, %v2568_v12 }
 0x263   :  { %903 = vmatmul.mubr.f32.vlgmr.msra.gmra.mrb[4].mxu0 %v832_v18  ;;  %974 = vmatmul.mubr.f32.vlgmr.msra.gmra.mrb[4].mxu1 %v832_v18 }
 0x264   :  { %2149 = vmatpush1.bf16.msra.mxu0 %v2843_v22  ;;  %2181 = vmatpush1.bf16.msra.mxu1 %v2846_v25 }
 0x265   :  { %2151 = vmatprep.subr.bf16.mxu0 %v2850_v29  ;;  %2183 = vmatprep.subr.bf16.mxu1 %v2854_v34 }
 0x266   :  { %1077 = vmatprep.mubr.f32.mxu0 %v2768_v0  ;;  %1148 = vmatprep.mubr.f32.mxu1 %v2768_v0 }
 0x268   :  { %2153 = vmatpush1.bf16.msra.mxu0 %v2856_v35  ;;  %2185 = vmatpush1.bf16.msra.mxu1 %v2860_v38 }
 0x269   :  { %2155 = vmatprep.subr.bf16.mxu0 %v2864_v42  ;;  %2187 = vmatprep.subr.bf16.mxu1 %v2868_v47 }
 0x26c   :  { %2157 = vmatpush1.bf16.msra.mxu0 %v2872_v50  ;;  %2189 = vmatpush1.bf16.msra.mxu1 %v2876_v54 }
 0x26d   :  { %2159 = vmatprep.subr.bf16.mxu0 %v2880_v58  ;;  %2191 = vmatprep.subr.bf16.mxu1 %v2884_v61 }
 0x270   :  { %2161 = vmatpush1.bf16.msra.mxu0 %v2888_v2  ;;  %2193 = vmatpush1.bf16.msra.mxu1 %v2892_v5 }
 0x271   :  { %2163 = vmatprep.subr.bf16.mxu0 %v2896_v8  ;;  %2195 = vmatprep.subr.bf16.mxu1 %v2900_v11 }
 0x274   :  { %2165 = vmatpush1.bf16.msra.mxu0 %v2904_v15  ;;  %2197 = vmatpush1.bf16.msra.mxu1 %v2908_v19 }
 0x275   :  { %2167 = vmatprep.subr.bf16.mxu0 %v2912_v24  ;;  %2199 = vmatprep.subr.bf16.mxu1 %v2916_v28 }
 0x278   :  { %2169 = vmatpush1.bf16.msra.mxu0 %v2920_v33  ;;  %2201 = vmatpush1.bf16.msra.mxu1 %v2924_v39 }
 0x279   :  { %2171 = vmatprep.subr.bf16.mxu0 %v2928_v43  ;;  %2203 = vmatprep.subr.bf16.mxu1 %v2932_v46 }
 0x27c   :  { %2173 = vmatpush1.bf16.msra.mxu0 %v2936_v52  ;;  %2205 = vmatpush1.bf16.msra.mxu1 %v2940_v56 }
 0x27d   :  { %2175 = vmatprep.subr.bf16.mxu0 %v2944_v60  ;;  %2207 = vmatprep.subr.bf16.mxu1 %v2948_v1 }
 0x280   :  { %2177 = vmatpush1.bf16.msra.mxu0 %v2952_v4  ;;  %2209 = vmatpush1.bf16.msra.mxu1 %v2956_v6 }
 0x281   :  { %2211 = vmatprep.subr.bf16.mxu0 %v2839_v17  ;;  %2243 = vmatprep.subr.bf16.mxu1 %v2841_v21 }
 0x336   :  { %v904_v10 = vpop.f32.mrb[4].mxu0  ;;  %v975_v20 = vpop.f32.mrb[4].mxu1 }
 0x337   :  { %v2470_v23 = vadd.f32 %v904_v10, %v3008_v14  ;;  %v906_v26 = vpop.f32.mrb[5].mxu0  ;;  %v977_v27 = vpop.f32.mrb[5].mxu1  ;;  %v2486_v41 = vadd.f32 %v975_v20, %v3017_v44 }
 0x338   :  { %v2471_v30 = vadd.f32 %v906_v26, %v3010_v16  ;;  %v2487_v36 = vadd.f32 %v977_v27, %v3014_v37 }
 0x339   :  { %v1928_v31 = vmul.f32 -1.442695, %v2470_v23 }
 0x33a   :  { %v1929_v32 = vmul.f32 -1.442695, %v2471_v30  ;;  %v1930_v40 = vmul.f32 -1.442695, %v2487_v36 }
 0x33b   :  { %2571 = vpow2.f32 %v1928_v31 }
 0x33c   :  { %2573 = vpow2.f32 %v1929_v32 }
 0x33d   :  { %2575 = vpow2.f32 %v1930_v40 }
 0x33e   :  { %2577 = vtanh.f32 %v2486_v41 }
 0x345   :  { %v2572_v45 = vpop.eup %2571 }
 0x346   :  { %v2574_v48 = vpop.eup %2573  ;;  %v987_v49 = vadd.f32 1.0, %v2572_v45 }
 0x347   :  { %v993_v51 = vadd.f32 1.0, %v2574_v48  ;;  %v2576_v53 = vpop.eup %2575 }
 0x348   :  { %2579 = vrcp.f32 %v987_v49  ;;  %v2578_v55 = vpop.eup %2577  ;;  %v1000_v63 = vadd.f32 1.0, %v2576_v53 }
 0x349   :  { %2581 = vrcp.f32 %v993_v51 }
 0x34a   :  { %2583 = vrcp.f32 %v1000_v63 }
 0x352   :  { %v2580_v57 = vpop.eup %2579 }
 0x353   :  { %v2582_v59 = vpop.eup %2581  ;;  %v1004_v62 = vmul.f32 %v2580_v57, %v2578_v55 }
 0x354   :  { %v1003_v3 = vmul.f32 %v2582_v59, %v3062_v9  ;;  %v2584_v12 = vpop.eup %2583 }
 0x356   :  { %v3104_v7 = vadd.f32 %v1004_v62, %v1003_v3 }
 0x358   :  { %2585 = vtanh.f32 %v3104_v7 }
 0x362   :  { %v2586_v13 = vpop.eup %2585 }
 0x363   :  { %v1007_v18 = vmul.f32 %v2586_v13, %v2584_v12 }
 0x365   :  { %1078 = vmatmul.mubr.f32.vlgmr.msra.gmra.mrb[6].mxu0 %v1007_v18  ;;  %1149 = vmatmul.mubr.f32.vlgmr.msra.gmra.mrb[6].mxu1 %v1007_v18 }
 0x366   :  { %2213 = vmatpush1.bf16.msra.mxu0 %v2843_v22  ;;  %2245 = vmatpush1.bf16.msra.mxu1 %v2846_v25 }
 0x367   :  { %2215 = vmatprep.subr.bf16.mxu0 %v2850_v29  ;;  %2247 = vmatprep.subr.bf16.mxu1 %v2854_v34 }
 0x368   :  { %1252 = vmatprep.mubr.f32.mxu0 %v2768_v0  ;;  %1323 = vmatprep.mubr.f32.mxu1 %v2768_v0 }
 0x36a   :  { %2217 = vmatpush1.bf16.msra.mxu0 %v2856_v35  ;;  %2249 = vmatpush1.bf16.msra.mxu1 %v2860_v38 }
 0x36b   :  { %2219 = vmatprep.subr.bf16.mxu0 %v2864_v42  ;;  %2251 = vmatprep.subr.bf16.mxu1 %v2868_v47 }
 0x36e   :  { %2221 = vmatpush1.bf16.msra.mxu0 %v2872_v50  ;;  %2253 = vmatpush1.bf16.msra.mxu1 %v2876_v54 }
 0x36f   :  { %2223 = vmatprep.subr.bf16.mxu0 %v2880_v58  ;;  %2255 = vmatprep.subr.bf16.mxu1 %v2884_v61 }
 0x372   :  { %2225 = vmatpush1.bf16.msra.mxu0 %v2888_v2  ;;  %2257 = vmatpush1.bf16.msra.mxu1 %v2892_v5 }
 0x373   :  { %2227 = vmatprep.subr.bf16.mxu0 %v2896_v8  ;;  %2259 = vmatprep.subr.bf16.mxu1 %v2900_v11 }
 0x376   :  { %2229 = vmatpush1.bf16.msra.mxu0 %v2904_v15  ;;  %2261 = vmatpush1.bf16.msra.mxu1 %v2908_v19 }
 0x377   :  { %2231 = vmatprep.subr.bf16.mxu0 %v2912_v24  ;;  %2263 = vmatprep.subr.bf16.mxu1 %v2916_v28 }
 0x37a   :  { %2233 = vmatpush1.bf16.msra.mxu0 %v2920_v33  ;;  %2265 = vmatpush1.bf16.msra.mxu1 %v2924_v39 }
 0x37b   :  { %2235 = vmatprep.subr.bf16.mxu0 %v2928_v43  ;;  %2267 = vmatprep.subr.bf16.mxu1 %v2932_v46 }
 0x37e   :  { %2237 = vmatpush1.bf16.msra.mxu0 %v2936_v52  ;;  %2269 = vmatpush1.bf16.msra.mxu1 %v2940_v56 }
 0x37f   :  { %2239 = vmatprep.subr.bf16.mxu0 %v2944_v60  ;;  %2271 = vmatprep.subr.bf16.mxu1 %v2948_v1 }
 0x382   :  { %2241 = vmatpush1.bf16.msra.mxu0 %v2952_v4  ;;  %2273 = vmatpush1.bf16.msra.mxu1 %v2956_v6 }
 0x383   :  { %2275 = vmatprep.subr.bf16.mxu0 %v2839_v17  ;;  %2307 = vmatprep.subr.bf16.mxu1 %v2841_v21 }
 0x438   :  { %v1079_v9 = vpop.f32.mrb[6].mxu0  ;;  %v1150_v10 = vpop.f32.mrb[6].mxu1 }
 0x439   :  { %v2472_v20 = vadd.f32 %v1079_v9, %v3008_v14  ;;  %v1081_v23 = vpop.f32.mrb[7].mxu0  ;;  %v1152_v26 = vpop.f32.mrb[7].mxu1  ;;  %v2488_v40 = vadd.f32 %v1150_v10, %v3017_v44 }
 0x43a   :  { %v2473_v27 = vadd.f32 %v1081_v23, %v3010_v16  ;;  %v2489_v32 = vadd.f32 %v1152_v26, %v3014_v37 }
 0x43b   :  { %v1931_v30 = vmul.f32 -1.442695, %v2472_v20 }
 0x43c   :  { %v1932_v31 = vmul.f32 -1.442695, %v2473_v27  ;;  %v1933_v36 = vmul.f32 -1.442695, %v2489_v32 }
 0x43d   :  { %2587 = vpow2.f32 %v1931_v30 }
 0x43e   :  { %2589 = vpow2.f32 %v1932_v31 }
 0x43f   :  { %2591 = vpow2.f32 %v1933_v36 }
 0x440   :  { %2593 = vtanh.f32 %v2488_v40 }
 0x447   :  { %v2588_v41 = vpop.eup %2587 }
 0x448   :  { %v2590_v45 = vpop.eup %2589  ;;  %v1162_v48 = vadd.f32 1.0, %v2588_v41 }
 0x449   :  { %v1168_v49 = vadd.f32 1.0, %v2590_v45  ;;  %v2592_v51 = vpop.eup %2591 }
 0x44a   :  { %2595 = vrcp.f32 %v1162_v48  ;;  %v2594_v53 = vpop.eup %2593  ;;  %v1175_v62 = vadd.f32 1.0, %v2592_v51 }
 0x44b   :  { %2597 = vrcp.f32 %v1168_v49 }
 0x44c   :  { %2599 = vrcp.f32 %v1175_v62 }
 0x454   :  { %v2596_v55 = vpop.eup %2595 }
 0x455   :  { %v2598_v57 = vpop.eup %2597  ;;  %v1179_v59 = vmul.f32 %v2596_v55, %v2594_v53 }
 0x456   :  { %v1178_v63 = vmul.f32 %v2598_v57, %v3104_v7  ;;  %v2600_v12 = vpop.eup %2599 }
 0x458   :  { %v3146_v3 = vadd.f32 %v1179_v59, %v1178_v63 }
 0x45a   :  { %2601 = vtanh.f32 %v3146_v3 }
 0x464   :  { %v2602_v13 = vpop.eup %2601 }
 0x465   :  { %v1182_v18 = vmul.f32 %v2602_v13, %v2600_v12 }
 0x467   :  { %1253 = vmatmul.mubr.f32.vlgmr.msra.gmra.mrb[8].mxu0 %v1182_v18  ;;  %1324 = vmatmul.mubr.f32.vlgmr.msra.gmra.mrb[8].mxu1 %v1182_v18 }
 0x468   :  { %2277 = vmatpush1.bf16.msra.mxu0 %v2843_v22  ;;  %2309 = vmatpush1.bf16.msra.mxu1 %v2846_v25 }
 0x469   :  { %2279 = vmatprep.subr.bf16.mxu0 %v2850_v29  ;;  %2311 = vmatprep.subr.bf16.mxu1 %v2854_v34 }
 0x46a   :  { %1427 = vmatprep.mubr.f32.mxu0 %v2768_v0  ;;  %1498 = vmatprep.mubr.f32.mxu1 %v2768_v0 }
 0x46c   :  { %2281 = vmatpush1.bf16.msra.mxu0 %v2856_v35  ;;  %2313 = vmatpush1.bf16.msra.mxu1 %v2860_v38 }
 0x46d   :  { %2283 = vmatprep.subr.bf16.mxu0 %v2864_v42  ;;  %2315 = vmatprep.subr.bf16.mxu1 %v2868_v47 }
 0x470   :  { %2285 = vmatpush1.bf16.msra.mxu0 %v2872_v50  ;;  %2317 = vmatpush1.bf16.msra.mxu1 %v2876_v54 }
 0x471   :  { %2287 = vmatprep.subr.bf16.mxu0 %v2880_v58  ;;  %2319 = vmatprep.subr.bf16.mxu1 %v2884_v61 }
 0x474   :  { %2289 = vmatpush1.bf16.msra.mxu0 %v2888_v2  ;;  %2321 = vmatpush1.bf16.msra.mxu1 %v2892_v5 }
 0x475   :  { %2291 = vmatprep.subr.bf16.mxu0 %v2896_v8  ;;  %2323 = vmatprep.subr.bf16.mxu1 %v2900_v11 }
 0x478   :  { %2293 = vmatpush1.bf16.msra.mxu0 %v2904_v15  ;;  %2325 = vmatpush1.bf16.msra.mxu1 %v2908_v19 }
 0x479   :  { %2295 = vmatprep.subr.bf16.mxu0 %v2912_v24  ;;  %2327 = vmatprep.subr.bf16.mxu1 %v2916_v28 }
 0x47c   :  { %2297 = vmatpush1.bf16.msra.mxu0 %v2920_v33  ;;  %2329 = vmatpush1.bf16.msra.mxu1 %v2924_v39 }
 0x47d   :  { %2299 = vmatprep.subr.bf16.mxu0 %v2928_v43  ;;  %2331 = vmatprep.subr.bf16.mxu1 %v2932_v46 }
 0x480   :  { %2301 = vmatpush1.bf16.msra.mxu0 %v2936_v52  ;;  %2333 = vmatpush1.bf16.msra.mxu1 %v2940_v56 }
 0x481   :  { %2303 = vmatprep.subr.bf16.mxu0 %v2944_v60  ;;  %2335 = vmatprep.subr.bf16.mxu1 %v2948_v1 }
 0x484   :  { %2305 = vmatpush1.bf16.msra.mxu0 %v2952_v4  ;;  %2337 = vmatpush1.bf16.msra.mxu1 %v2956_v6 }
 0x485   :  { %2339 = vmatprep.subr.bf16.mxu0 %v2839_v17  ;;  %2371 = vmatprep.subr.bf16.mxu1 %v2841_v21 }
 0x53a   :  { %v1254_v7 = vpop.f32.mrb[8].mxu0  ;;  %v1325_v9 = vpop.f32.mrb[8].mxu1 }
 0x53b   :  { %v2474_v10 = vadd.f32 %v1254_v7, %v3008_v14  ;;  %v1256_v20 = vpop.f32.mrb[9].mxu0  ;;  %v1327_v23 = vpop.f32.mrb[9].mxu1  ;;  %v2490_v36 = vadd.f32 %v1325_v9, %v3017_v44 }
 0x53c   :  { %v2475_v26 = vadd.f32 %v1256_v20, %v3010_v16  ;;  %v2491_v31 = vadd.f32 %v1327_v23, %v3014_v37 }
 0x53d   :  { %v1934_v27 = vmul.f32 -1.442695, %v2474_v10 }
 0x53e   :  { %v1935_v30 = vmul.f32 -1.442695, %v2475_v26  ;;  %v1936_v32 = vmul.f32 -1.442695, %v2491_v31 }
 0x53f   :  { %2603 = vpow2.f32 %v1934_v27 }
 0x540   :  { %2605 = vpow2.f32 %v1935_v30 }
 0x541   :  { %2607 = vpow2.f32 %v1936_v32 }
 0x542   :  { %2609 = vtanh.f32 %v2490_v36 }
 0x549   :  { %v2604_v40 = vpop.eup %2603 }
 0x54a   :  { %v2606_v41 = vpop.eup %2605  ;;  %v1337_v45 = vadd.f32 1.0, %v2604_v40 }
 0x54b   :  { %v1343_v48 = vadd.f32 1.0, %v2606_v41  ;;  %v2608_v49 = vpop.eup %2607 }
 0x54c   :  { %2611 = vrcp.f32 %v1337_v45  ;;  %v2610_v51 = vpop.eup %2609  ;;  %v1350_v59 = vadd.f32 1.0, %v2608_v49 }
 0x54d   :  { %2613 = vrcp.f32 %v1343_v48 }
 0x54e   :  { %2615 = vrcp.f32 %v1350_v59 }
 0x556   :  { %v2612_v53 = vpop.eup %2611 }
 0x557   :  { %v2614_v55 = vpop.eup %2613  ;;  %v1354_v57 = vmul.f32 %v2612_v53, %v2610_v51 }
 0x558   :  { %v1353_v62 = vmul.f32 %v2614_v55, %v3146_v3  ;;  %v2616_v12 = vpop.eup %2615 }
 0x55a   :  { %v3188_v63 = vadd.f32 %v1354_v57, %v1353_v62 }
 0x55c   :  { %2617 = vtanh.f32 %v3188_v63 }
 0x566   :  { %v2618_v13 = vpop.eup %2617 }
 0x567   :  { %v1357_v18 = vmul.f32 %v2618_v13, %v2616_v12 }
 0x569   :  { %1428 = vmatmul.mubr.f32.vlgmr.msra.gmra.mrb[10].mxu0 %v1357_v18  ;;  %1499 = vmatmul.mubr.f32.vlgmr.msra.gmra.mrb[10].mxu1 %v1357_v18 }
 0x56a   :  { %2341 = vmatpush1.bf16.msra.mxu0 %v2843_v22  ;;  %2373 = vmatpush1.bf16.msra.mxu1 %v2846_v25 }
 0x56b   :  { %2343 = vmatprep.subr.bf16.mxu0 %v2850_v29  ;;  %2375 = vmatprep.subr.bf16.mxu1 %v2854_v34 }
 0x56c   :  { %1602 = vmatprep.mubr.f32.mxu0 %v2768_v0  ;;  %1673 = vmatprep.mubr.f32.mxu1 %v2768_v0 }
 0x56e   :  { %2345 = vmatpush1.bf16.msra.mxu0 %v2856_v35  ;;  %2377 = vmatpush1.bf16.msra.mxu1 %v2860_v38 }
 0x56f   :  { %2347 = vmatprep.subr.bf16.mxu0 %v2864_v42  ;;  %2379 = vmatprep.subr.bf16.mxu1 %v2868_v47 }
 0x572   :  { %2349 = vmatpush1.bf16.msra.mxu0 %v2872_v50  ;;  %2381 = vmatpush1.bf16.msra.mxu1 %v2876_v54 }
 0x573   :  { %2351 = vmatprep.subr.bf16.mxu0 %v2880_v58  ;;  %2383 = vmatprep.subr.bf16.mxu1 %v2884_v61 }
 0x576   :  { %2353 = vmatpush1.bf16.msra.mxu0 %v2888_v2  ;;  %2385 = vmatpush1.bf16.msra.mxu1 %v2892_v5 }
 0x577   :  { %2355 = vmatprep.subr.bf16.mxu0 %v2896_v8  ;;  %2387 = vmatprep.subr.bf16.mxu1 %v2900_v11 }
 0x57a   :  { %2357 = vmatpush1.bf16.msra.mxu0 %v2904_v15  ;;  %2389 = vmatpush1.bf16.msra.mxu1 %v2908_v19 }
 0x57b   :  { %2359 = vmatprep.subr.bf16.mxu0 %v2912_v24  ;;  %2391 = vmatprep.subr.bf16.mxu1 %v2916_v28 }
 0x57e   :  { %2361 = vmatpush1.bf16.msra.mxu0 %v2920_v33  ;;  %2393 = vmatpush1.bf16.msra.mxu1 %v2924_v39 }
 0x57f   :  { %2363 = vmatprep.subr.bf16.mxu0 %v2928_v43  ;;  %2395 = vmatprep.subr.bf16.mxu1 %v2932_v46 }
 0x582   :  { %2365 = vmatpush1.bf16.msra.mxu0 %v2936_v52  ;;  %2397 = vmatpush1.bf16.msra.mxu1 %v2940_v56 }
 0x583   :  { %2367 = vmatprep.subr.bf16.mxu0 %v2944_v60  ;;  %2399 = vmatprep.subr.bf16.mxu1 %v2948_v1 }
 0x586   :  { %2369 = vmatpush1.bf16.msra.mxu0 %v2952_v4  ;;  %2401 = vmatpush1.bf16.msra.mxu1 %v2956_v6 }
 0x587   :  { %2403 = vmatprep.subr.bf16.mxu0 %v2839_v17  ;;  %2435 = vmatprep.subr.bf16.mxu1 %v2841_v21 }
 0x63c   :  { %v1429_v3 = vpop.f32.mrb[10].mxu0  ;;  %v1500_v7 = vpop.f32.mrb[10].mxu1 }
 0x63d   :  { %v2476_v9 = vadd.f32 %v1429_v3, %v3008_v14  ;;  %v1431_v10 = vpop.f32.mrb[11].mxu0  ;;  %v1502_v20 = vpop.f32.mrb[11].mxu1  ;;  %v2492_v32 = vadd.f32 %v1500_v7, %v3017_v44 }
 0x63e   :  { %v2477_v23 = vadd.f32 %v1431_v10, %v3010_v16  ;;  %v2493_v30 = vadd.f32 %v1502_v20, %v3014_v37 }
 0x63f   :  { %v1937_v26 = vmul.f32 -1.442695, %v2476_v9 }
 0x640   :  { %v1938_v27 = vmul.f32 -1.442695, %v2477_v23  ;;  %v1939_v31 = vmul.f32 -1.442695, %v2493_v30 }
 0x641   :  { %2619 = vpow2.f32 %v1937_v26 }
 0x642   :  { %2621 = vpow2.f32 %v1938_v27 }
 0x643   :  { %2623 = vpow2.f32 %v1939_v31 }
 0x644   :  { %2625 = vtanh.f32 %v2492_v32 }
 0x64b   :  { %v2620_v17 = vpop.eup %2619 }
 0x64c   :  { %v2622_v36 = vpop.eup %2621  ;;  %v1512_v21 = vadd.f32 1.0, %v2620_v17 }
 0x64d   :  { %v1518_v40 = vadd.f32 1.0, %v2622_v36  ;;  %v2624_v41 = vpop.eup %2623 }
 0x64e   :  { %2627 = vrcp.f32 %v1512_v21  ;;  %v2626_v45 = vpop.eup %2625  ;;  %v1525_v53 = vadd.f32 1.0, %v2624_v41 }
 0x64f   :  { %2629 = vrcp.f32 %v1518_v40 }
 0x650   :  { %2631 = vrcp.f32 %v1525_v53 }
 0x658   :  { %v2628_v48 = vpop.eup %2627 }
 0x659   :  { %v2630_v49 = vpop.eup %2629  ;;  %v1529_v51 = vmul.f32 %v2628_v48, %v2626_v45 }
 0x65a   :  { %v1528_v55 = vmul.f32 %v2630_v49, %v3188_v63  ;;  %v2632_v59 = vpop.eup %2631 }
 0x65c   :  { %v3230_v57 = vadd.f32 %v1529_v51, %v1528_v55 }
 0x65e   :  { %2633 = vtanh.f32 %v3230_v57 }
 0x668   :  { %v2634_v62 = vpop.eup %2633 }
 0x669   :  { %v1532_v12 = vmul.f32 %v2634_v62, %v2632_v59 }
 0x66b   :  { %1603 = vmatmul.mubr.f32.vlgmr.msra.gmra.mrb[12].mxu0 %v1532_v12  ;;  %1674 = vmatmul.mubr.f32.vlgmr.msra.gmra.mrb[12].mxu1 %v1532_v12 }
 0x66c   :  { %2405 = vmatpush1.bf16.msra.mxu0 %v2843_v22  ;;  %2437 = vmatpush1.bf16.msra.mxu1 %v2846_v25 }
 0x66d   :  { %2407 = vmatprep.subr.bf16.mxu0 %v2850_v29  ;;  %2439 = vmatprep.subr.bf16.mxu1 %v2854_v34 }
 0x66e   :  { %1777 = vmatprep.mubr.f32.mxu0 %v2768_v0  ;;  %1848 = vmatprep.mubr.f32.mxu1 %v2768_v0 }
 0x670   :  { %2409 = vmatpush1.bf16.msra.mxu0 %v2856_v35  ;;  %2441 = vmatpush1.bf16.msra.mxu1 %v2860_v38 }
 0x671   :  { %2411 = vmatprep.subr.bf16.mxu0 %v2864_v42  ;;  %2443 = vmatprep.subr.bf16.mxu1 %v2868_v47 }
 0x674   :  { %2413 = vmatpush1.bf16.msra.mxu0 %v2872_v50  ;;  %2445 = vmatpush1.bf16.msra.mxu1 %v2876_v54 }
 0x675   :  { %2415 = vmatprep.subr.bf16.mxu0 %v2880_v58  ;;  %2447 = vmatprep.subr.bf16.mxu1 %v2884_v61 }
 0x678   :  { %2417 = vmatpush1.bf16.msra.mxu0 %v2888_v2  ;;  %2449 = vmatpush1.bf16.msra.mxu1 %v2892_v5 }
 0x679   :  { %2419 = vmatprep.subr.bf16.mxu0 %v2896_v8  ;;  %2451 = vmatprep.subr.bf16.mxu1 %v2900_v11 }
 0x67c   :  { %2421 = vmatpush1.bf16.msra.mxu0 %v2904_v15  ;;  %2453 = vmatpush1.bf16.msra.mxu1 %v2908_v19 }
 0x67d   :  { %2423 = vmatprep.subr.bf16.mxu0 %v2912_v24  ;;  %2455 = vmatprep.subr.bf16.mxu1 %v2916_v28 }
 0x680   :  { %2425 = vmatpush1.bf16.msra.mxu0 %v2920_v33  ;;  %2457 = vmatpush1.bf16.msra.mxu1 %v2924_v39 }
 0x681   :  { %2427 = vmatprep.subr.bf16.mxu0 %v2928_v43  ;;  %2459 = vmatprep.subr.bf16.mxu1 %v2932_v46 }
 0x684   :  { %2429 = vmatpush1.bf16.msra.mxu0 %v2936_v52  ;;  %2461 = vmatpush1.bf16.msra.mxu1 %v2940_v56 }
 0x685   :  { %2431 = vmatprep.subr.bf16.mxu0 %v2944_v60  ;;  %2463 = vmatprep.subr.bf16.mxu1 %v2948_v1 }
 0x688   :  { %2433 = vmatpush1.bf16.msra.mxu0 %v2952_v4  ;;  %2465 = vmatpush1.bf16.msra.mxu1 %v2956_v6 }
 0x73e   :  { %v1604_v0 = vpop.f32.mrb[12].mxu0  ;;  %v1675_v22 = vpop.f32.mrb[12].mxu1 }
 0x73f   :  { %v2478_v25 = vadd.f32 %v1604_v0, %v3008_v14  ;;  %v1606_v29 = vpop.f32.mrb[13].mxu0  ;;  %v1677_v34 = vpop.f32.mrb[13].mxu1  ;;  %v2494_v54 = vadd.f32 %v1675_v22, %v3017_v44 }
 0x740   :  { %v2479_v35 = vadd.f32 %v1606_v29, %v3010_v16  ;;  %v2495_v47 = vadd.f32 %v1677_v34, %v3014_v37 }
 0x741   :  { %v1940_v38 = vmul.f32 -1.442695, %v2478_v25 }
 0x742   :  { %v1941_v42 = vmul.f32 -1.442695, %v2479_v35  ;;  %v1942_v50 = vmul.f32 -1.442695, %v2495_v47 }
 0x743   :  { %2635 = vpow2.f32 %v1940_v38 }
 0x744   :  { %2637 = vpow2.f32 %v1941_v42 }
 0x745   :  { %2639 = vpow2.f32 %v1942_v50 }
 0x746   :  { %2641 = vtanh.f32 %v2494_v54 }
 0x74d   :  { %v2636_v58 = vpop.eup %2635 }
 0x74e   :  { %v2638_v61 = vpop.eup %2637  ;;  %v1687_v2 = vadd.f32 1.0, %v2636_v58 }
 0x74f   :  { %v1693_v5 = vadd.f32 1.0, %v2638_v61  ;;  %v2640_v8 = vpop.eup %2639 }
 0x750   :  { %2643 = vrcp.f32 %v1687_v2  ;;  %v2642_v11 = vpop.eup %2641  ;;  %v1700_v28 = vadd.f32 1.0, %v2640_v8 }
 0x751   :  { %2645 = vrcp.f32 %v1693_v5 }
 0x752   :  { %2647 = vrcp.f32 %v1700_v28 }
 0x75a   :  { %v2644_v15 = vpop.eup %2643 }
 0x75b   :  { %v2646_v19 = vpop.eup %2645  ;;  %v1704_v24 = vmul.f32 %v2644_v15, %v2642_v11 }
 0x75c   :  { %v1703_v33 = vmul.f32 %v2646_v19, %v3230_v57  ;;  %v2648_v43 = vpop.eup %2647 }
 0x75e   :  { %v1705_v39 = vadd.f32 %v1704_v24, %v1703_v33 }
 0x760   :  { %2649 = vtanh.f32 %v1705_v39 }
 0x76a   :  { %v2650_v46 = vpop.eup %2649 }
 0x76b   :  { %v1707_v52 = vmul.f32 %v2650_v46, %v2648_v43 }
 0x76d   :  { %1778 = vmatmul.mubr.f32.vlgmr.msra.gmra.mrb[14].mxu0 %v1707_v52  ;;  %1849 = vmatmul.mubr.f32.vlgmr.msra.gmra.mrb[14].mxu1 %v1707_v52 }
 0x840   :  { %v1779_v56 = vpop.f32.mrb[14].mxu0  ;;  %v1850_v60 = vpop.f32.mrb[14].mxu1 }
 0x841   :  { %v2480_v1 = vadd.f32 %v1779_v56, %v3008_v14  ;;  %v1781_v4 = vpop.f32.mrb[15].mxu0  ;;  %v1852_v6 = vpop.f32.mrb[15].mxu1  ;;  %v2496_v9 = vadd.f32 %v1850_v60, %v3017_v44 }
 0x842   :  { %v2481_v63 = vadd.f32 %v1781_v4, %v3010_v16  ;;  %v2497_v3 = vadd.f32 %v1852_v6, %v3014_v37 }
 0x843   :  { %v1943_v13 = vmul.f32 -1.442695, %v2480_v1 }
 0x844   :  { %v1944_v18 = vmul.f32 -1.442695, %v2481_v63  ;;  %v1945_v7 = vmul.f32 -1.442695, %v2497_v3 }
 0x845   :  { %2651 = vpow2.f32 %v1943_v13 }
 0x846   :  { %2653 = vpow2.f32 %v1944_v18 }
 0x847   :  { %2655 = vpow2.f32 %v1945_v7 }
 0x848   :  { %2657 = vtanh.f32 %v2496_v9 }
 0x84f   :  { %v2652_v10 = vpop.eup %2651 }
 0x850   :  { %v2654_v20 = vpop.eup %2653  ;;  %v1862_v23 = vadd.f32 1.0, %v2652_v10 }
 0x851   :  { %v1868_v26 = vadd.f32 1.0, %v2654_v20  ;;  %v2656_v14 = vpop.eup %2655 }
 0x852   :  { %2659 = vrcp.f32 %v1862_v23  ;;  %v2658_v27 = vpop.eup %2657  ;;  %v1875_v32 = vadd.f32 1.0, %v2656_v14 }
 0x853   :  { %2661 = vrcp.f32 %v1868_v26 }
 0x854   :  { %2663 = vrcp.f32 %v1875_v32 }
 0x85c   :  { %v2660_v16 = vpop.eup %2659 }
 0x85d   :  { %v2662_v30 = vpop.eup %2661  ;;  %v1879_v31 = vmul.f32 %v2660_v16, %v2658_v27 }
 0x85e   :  { %v1878_v17 = vmul.f32 %v2662_v30, %v1705_v39  ;;  %v2664_v37 = vpop.eup %2663 }
 0x860   :  { %v1880_v36 = vadd.f32 %v1879_v31, %v1878_v17 }
 0x862   :  { %2665 = vtanh.f32 %v1880_v36 }
 0x86c   :  { %v2666_v44 = vpop.eup %2665 }
 0x86d   :  { %v1882_v21 = vmul.f32 %v2666_v44, %v2664_v37 }
 0x86f   :  { %1889 = vst [vmem:[#allocation11] sm:$0xff] %v1882_v21 }
 0x870   :  { %2744 = shalt.err (!%p2741_p0)
}
 0x871   :  { %s2745_s6 = scalar_lea.hbm %s3290_s4, 128 }
 0x872   :  { %p2746_p1 = scmp.ne.s32.totalorder %s3290_s4, %s2745_s6  ;;  %p2749_p2 = scmp.lt.u32.totalorder %s2745_s6, %s3290_s4 }
 0x874   :  { %p2751_p3 = pnand %p2749_p2, %p2746_p1 }
 0x876   :  { %2754 = shalt.err (!%p2751_p3)
}
 0x877   :  { %1899 = dma.vmem_to_hbm [thread:$0]  %s1897_s26, 128, %s3290_s4, [#allocation7]  }
 0x878   :  { %2759 = dma.done.wait [#allocation7], 128  }
 0x879   :  { %2760 = vsyncadd [#allocation7], 4294967168 }
 0x87a   :  { %1903 = vsyncpa [#allocation6], 1 }
 0x87b   :  { %1904 = vsyncpa [#allocation9], 1 }
 0x87c   :  { %1905 = vsyncpa [#allocation7], 1 }

</bundles_post_ra>
